<compile_context>
chip_gen: v5e
topology: v5e:2x2
jax: 0.10.0
libtpu: 0.0.40
codegen_flags: <defaults>
</compile_context>

<pallas_src>
import functools

import numpy as np
import jax
import jax.numpy as jnp
from jax import lax
from jax.experimental import pallas as pl
from jax.experimental.pallas import tpu as pltpu

EPS = 1e-5


# ----------------------------------------------------------------------------
# Kernels
# ----------------------------------------------------------------------------
def _conv1_conv2_kernel(x_ref, w1_ref, b1_ref, w2_ref, b2_ref, o_ref, ypad_ref,
                        *, H, W, R):
    """Fused conv1 (1x1 + bias + ReLU) and conv2 (3x3, s=1, p=1, + bias + ReLU).

    Grid: (N, H // R).  x_ref holds the whole image (re-fetched only when the
    batch index changes); conv1 runs once per image (rb == 0) and writes its
    output zero-padded (1-pixel halo) into VMEM scratch.  Each grid step then
    produces R output rows of conv2 with 9 MXU matmuls of M = R*W.
    """
    Cm = w2_ref.shape[-1]
    rb = pl.program_id(1)

    @pl.when(rb == 0)
    def _():
        ypad_ref[...] = jnp.zeros_like(ypad_ref)      # halo stays zero
        xv = x_ref[...].reshape(H * W, x_ref.shape[-1])
        y1 = jnp.dot(xv, w1_ref[...], preferred_element_type=jnp.float32)
        y1 = jnp.maximum(y1 + b1_ref[...], 0.0)
        ypad_ref[pl.ds(1, H), pl.ds(1, W), :] = (
            y1.reshape(H, W, Cm).astype(ypad_ref.dtype))

    r0 = rb * R
    acc = jnp.zeros((R * W, Cm), jnp.float32)
    for ky in range(3):
        slab = ypad_ref[pl.ds(r0 + ky, R)]            # (R, W+2, Cm)
        for kx in range(3):
            acc = acc + jnp.dot(slab[:, kx:kx + W, :].reshape(R * W, Cm),
                                w2_ref[ky, kx],
                                preferred_element_type=jnp.float32)
    out = jnp.maximum(acc + b2_ref[...], 0.0)
    o_ref[...] = out.reshape(R, W, Cm).astype(o_ref.dtype)


def _conv3_proj_kernel(y_ref, w3_ref, b3_ref, x_ref, w4_ref, b4_ref, o_ref):
    """conv3 (1x1) + projection shortcut conv4 (1x1) + residual add + ReLU.

    Two matmuls into one f32 accumulator; the (M, Cexp) shortcut never hits HBM.
    """
    acc = jnp.dot(y_ref[...], w3_ref[...], preferred_element_type=jnp.float32)
    acc = acc + jnp.dot(x_ref[...], w4_ref[...],
                        preferred_element_type=jnp.float32)
    out = acc + b3_ref[...] + b4_ref[...]
    o_ref[...] = jnp.maximum(out, 0.0).astype(o_ref.dtype)


def _conv3_identity_kernel(y_ref, w3_ref, b3_ref, x_ref, o_ref):
    """conv3 (1x1) + identity shortcut + residual add + ReLU."""
    acc = jnp.dot(y_ref[...], w3_ref[...], preferred_element_type=jnp.float32)
    out = acc + b3_ref[...] + x_ref[...].astype(jnp.float32)
    o_ref[...] = jnp.maximum(out, 0.0).astype(o_ref.dtype)


# ----------------------------------------------------------------------------
# Wrappers (pallas_call plumbing)
# ----------------------------------------------------------------------------
def _pick_row_block(H, W, target=256):
    """Smallest divisor R of H with R*W >= target (fills the 256-wide MXU)."""
    for r in range(1, H + 1):
        if H % r == 0 and r * W >= target:
            return r
    return H


def _pick_cout_tile(C, limit=512, tile=256):
    """Tile wide Cout in lane-dense 256 blocks; keep narrow Cout whole."""
    if C <= limit or C % tile != 0:
        return C
    return tile


def conv1_conv2_fused(x_nhwc, w1, b1, w2, b2):
    """(N,H,W,Cin) -> (N,H,W,Cm): 1x1+ReLU then 3x3(s=1,p=1)+ReLU, fully fused."""
    N, H, W, Cin = x_nhwc.shape
    Cm = w1.shape[1]
    R = _pick_row_block(H, W)

    kernel = functools.partial(_conv1_conv2_kernel, H=H, W=W, R=R)
    return pl.pallas_call(
        kernel,
        out_shape=jax.ShapeDtypeStruct((N, H, W, Cm), x_nhwc.dtype),
        grid=(N, H // R),
        in_specs=[
            pl.BlockSpec((None, H, W, Cin), lambda n, rb: (n, 0, 0, 0)),
            pl.BlockSpec((Cin, Cm), lambda n, rb: (0, 0)),
            pl.BlockSpec((1, Cm), lambda n, rb: (0, 0)),
            pl.BlockSpec((3, 3, Cm, Cm), lambda n, rb: (0, 0, 0, 0)),
            pl.BlockSpec((1, Cm), lambda n, rb: (0, 0)),
        ],
        out_specs=pl.BlockSpec((None, R, W, Cm), lambda n, rb: (n, rb, 0, 0)),
        scratch_shapes=[pltpu.VMEM((H + 2, W + 2, Cm), jnp.float32)],
        compiler_params=pltpu.CompilerParams(
            dimension_semantics=("parallel", "arbitrary")),
    )(x_nhwc, w1, b1.reshape(1, Cm), w2, b2.reshape(1, Cm))


def conv3_shortcut_fused(y_2d, w3, b3, x_2d, w4=None, b4=None, *, tm=512):
    """(M,Cm) -> (M,Cexp): conv3 + (conv4 | identity) shortcut + add + ReLU."""
    M, Cm = y_2d.shape
    Cexp = w3.shape[1]
    tn = _pick_cout_tile(Cexp)

    in_specs = [
        pl.BlockSpec((tm, Cm), lambda i, j: (i, 0)),
        pl.BlockSpec((Cm, tn), lambda i, j: (0, j)),
        pl.BlockSpec((1, tn), lambda i, j: (0, j)),
    ]
    if w4 is not None:
        Cin = x_2d.shape[1]
        kernel = _conv3_proj_kernel
        in_specs += [
            pl.BlockSpec((tm, Cin), lambda i, j: (i, 0)),
            pl.BlockSpec((Cin, tn), lambda i, j: (0, j)),
            pl.BlockSpec((1, tn), lambda i, j: (0, j)),
        ]
        args = (y_2d, w3, b3.reshape(1, Cexp), x_2d, w4, b4.reshape(1, Cexp))
    else:
        kernel = _conv3_identity_kernel
        in_specs += [pl.BlockSpec((tm, tn), lambda i, j: (i, j))]
        args = (y_2d, w3, b3.reshape(1, Cexp), x_2d)

    return pl.pallas_call(
        kernel,
        out_shape=jax.ShapeDtypeStruct((M, Cexp), y_2d.dtype),
        grid=(pl.cdiv(M, tm), pl.cdiv(Cexp, tn)),
        in_specs=in_specs,
        out_specs=pl.BlockSpec((tm, tn), lambda i, j: (i, j)),
        compiler_params=pltpu.CompilerParams(
            dimension_semantics=("parallel", "parallel")),
    )(*args)


def bottleneck_forward(x_nchw, params, s=1):
    """Pallas Bottleneck forward.  Input/output are NCHW (PyTorch convention)."""
    # TODO(synk): strided (s > 1) conv2 / conv4 path not implemented in-kernel.
    assert s == 1, "only stride 1 supported by this kernel"
    N, Cin, H, W = x_nchw.shape
    Cm = params["w1"].shape[1]
    Cexp = params["w3"].shape[1]

    # Fold BN scale into the conv weights (per output channel); kernels add bias.
    w1 = params["w1"] * params["s1"][None, :]
    w2 = params["w2"] * params["s2"][None, None, None, :]
    w3 = params["w3"] * params["s3"][None, :]

    # NCHW -> NHWC boundary glue (PyTorch I/O convention kept at the API edge).
    x = jnp.transpose(x_nchw, (0, 2, 3, 1))

    # conv1 + conv2 fused (no intermediate / pad HBM round trips).
    y = conv1_conv2_fused(x, w1, params["b1"], w2, params["b2"])

    x2 = x.reshape(N * H * W, Cin)
    y2 = y.reshape(N * H * W, Cm)

    # conv3 + shortcut + residual + final ReLU fused.
    if params["w4"] is not None:
        w4 = params["w4"] * params["s4"][None, :]
        out = conv3_shortcut_fused(y2, w3, params["b3"], x2, w4, params["b4"])
    else:
        out = conv3_shortcut_fused(y2, w3, params["b3"], x2)

    out = out.reshape(N, H, W, Cexp)
    return jnp.transpose(out, (0, 3, 1, 2))            # NHWC -> NCHW


# ----------------------------------------------------------------------------
# Deterministic parameter init (synthetic; no checkpoint loading)
# ----------------------------------------------------------------------------
def fold_bn(gamma, beta, mean, var):
    scale = gamma / jnp.sqrt(var + EPS)
    bias = beta - mean * scale
    return scale, bias


def init_params(key, in_channels, out_channels, s=1):
    expansion = 4
    Cm = out_channels
    Cexp = expansion * out_channels
    ks = jax.random.split(key, 8)

    def bn(k, c):
        k1, k2, k3, k4 = jax.random.split(k, 4)
        gamma = jax.random.uniform(k1, (c,), jnp.float32, 0.5, 1.5)
        beta = 0.1 * jax.random.normal(k2, (c,), jnp.float32)
        mean = 0.1 * jax.random.normal(k3, (c,), jnp.float32)
        var = jax.random.uniform(k4, (c,), jnp.float32, 0.5, 1.5)
        return fold_bn(gamma, beta, mean, var)

    p = {}
    p["w1"] = 0.3 * jax.random.normal(ks[0], (in_channels, Cm), jnp.float32)
    p["s1"], p["b1"] = bn(ks[1], Cm)
    p["w2"] = 0.3 * jax.random.normal(ks[2], (3, 3, Cm, Cm), jnp.float32)   # HWIO
    p["s2"], p["b2"] = bn(ks[3], Cm)
    p["w3"] = 0.3 * jax.random.normal(ks[4], (Cm, Cexp), jnp.float32)
    p["s3"], p["b3"] = bn(ks[5], Cexp)
    add_m = (s != 1) or (in_channels != Cexp)
    if add_m:
        p["w4"] = 0.3 * jax.random.normal(ks[6], (in_channels, Cexp), jnp.float32)
        p["s4"], p["b4"] = bn(ks[7], Cexp)
    else:
        p["w4"] = None
    return p


# ----------------------------------------------------------------------------
# Pure-JAX reference (for correctness check)
# ----------------------------------------------------------------------------
def reference_forward(x_nchw, params, s=1):
    dn = ("NHWC", "HWIO", "NHWC")
    x = jnp.transpose(x_nchw, (0, 2, 3, 1))

    def conv_bn(inp, w, scale, bias, k, stride, relu):
        w4 = w if w.ndim == 4 else w[None, None, :, :]
        pad = (k - 1) // 2
        y = lax.conv_general_dilated(inp, w4, (stride, stride),
                                     [(pad, pad), (pad, pad)],
                                     dimension_numbers=dn)
        y = y * scale + bias
        return jnp.maximum(y, 0.0) if relu else y

    y = conv_bn(x, params["w1"], params["s1"], params["b1"], 1, 1, True)
    y = conv_bn(y, params["w2"], params["s2"], params["b2"], 3, s, True)
    y = conv_bn(y, params["w3"], params["s3"], params["b3"], 1, 1, False)
    if params["w4"] is not None:
        sc = conv_bn(x, params["w4"], params["s4"], params["b4"], 1, s, False)
    else:
        sc = x
    out = jnp.maximum(y + sc, 0.0)
    return jnp.transpose(out, (0, 3, 1, 2))


# ----------------------------------------------------------------------------
if __name__ == "__main__":
    key = jax.random.PRNGKey(0)
    kx, kp, kx2, kp2 = jax.random.split(key, 4)

    # Case 1: projection shortcut active (in != expansion * out).
    N, Cin, H, W = 2, 4, 16, 16
    out_channels = 4
    x = jax.random.normal(kx, (N, Cin, H, W), jnp.float32)
    params = init_params(kp, Cin, out_channels, s=1)

    out = bottleneck_forward(x, params, s=1)
    out = jax.block_until_ready(out)
    ref = reference_forward(x, params, s=1)
    assert out.shape == (N, 4 * out_channels, H, W)
    np.testing.assert_allclose(np.asarray(out), np.asarray(ref),
                               rtol=1e-4, atol=1e-4)

    # Case 2: identity shortcut (in == expansion * out).
    Cin2 = 16
    x2 = jax.random.normal(kx2, (N, Cin2, H, W), jnp.float32)
    params2 = init_params(kp2, Cin2, out_channels, s=1)
    assert params2["w4"] is None
    out2 = bottleneck_forward(x2, params2, s=1)
    out2 = jax.block_until_ready(out2)
    ref2 = reference_forward(x2, params2, s=1)
    np.testing.assert_allclose(np.asarray(out2), np.asarray(ref2),
                               rtol=1e-4, atol=1e-4)

    print("KERNEL_OK")
</pallas_src>

<mosaic_0001>
module attributes {stable_mosaic.version = 11 : i64} {
  func.func @_conv1_conv2_kernel(%arg0: i32, %arg1: i32, %arg2: memref<1x16x16x4xf32, #tpu.memory_space<vmem>>, %arg3: memref<4x4xf32, #tpu.memory_space<vmem>>, %arg4: memref<1x4xf32, #tpu.memory_space<vmem>>, %arg5: memref<3x3x4x4xf32, #tpu.memory_space<vmem>>, %arg6: memref<1x4xf32, #tpu.memory_space<vmem>>, %arg7: memref<1x16x16x4xf32, #tpu.memory_space<vmem>>, %arg8: memref<18x18x4xf32, #tpu.memory_space<vmem>>) attributes {dimension_semantics = [#tpu.dimension_semantics<parallel>, #tpu.dimension_semantics<arbitrary>], iteration_bounds = array<i64: 2, 1>, scalar_prefetch = 0 : i64, scratch_operands = 1 : i64, tpu.core_type = #tpu.core_type<tc>, window_params = [{transform_indices = @transform_0, window_bounds = array<i64: 1, 16, 16, 4>}, {pipeline_mode = #tpu.pipeline_mode<synchronous>, transform_indices = @transform_1, window_bounds = array<i64: 4, 4>}, {pipeline_mode = #tpu.pipeline_mode<synchronous>, transform_indices = @transform_2, window_bounds = array<i64: 1, 4>}, {pipeline_mode = #tpu.pipeline_mode<synchronous>, transform_indices = @transform_3, window_bounds = array<i64: 3, 3, 4, 4>}, {pipeline_mode = #tpu.pipeline_mode<synchronous>, transform_indices = @transform_4, window_bounds = array<i64: 1, 4>}, {transform_indices = @transform_5, window_bounds = array<i64: 1, 16, 16, 4>}]} {
    %c0_i32 = arith.constant 0 : i32
    %0 = arith.cmpi eq, %arg1, %c0_i32 : i32
    %1 = arith.extui %0 : i1 to i32
    %c0_i32_0 = arith.constant 0 : i32
    %2 = arith.cmpi ne, %1, %c0_i32_0 : i32
    scf.if %2 {
      %cst_57 = arith.constant 0.000000e+00 : f32
      %77 = vector.broadcast %cst_57 : f32 to vector<18x18x4xf32>
      %c0_58 = arith.constant 0 : index
      %c0_59 = arith.constant 0 : index
      %c0_60 = arith.constant 0 : index
      %78 = vector.load %arg8[%c0_58, %c0_59, %c0_60] : memref<18x18x4xf32, #tpu.memory_space<vmem>>, vector<18x18x4xf32>
      tpu.vector_store %arg8[%c0_58, %c0_59, %c0_60], %77 {strides = array<i32>} : memref<18x18x4xf32, #tpu.memory_space<vmem>>, vector<18x18x4xf32>,
      %c0_61 = arith.constant 0 : index
      %c0_62 = arith.constant 0 : index
      %c0_63 = arith.constant 0 : index
      %c0_64 = arith.constant 0 : index
      %79 = vector.load %arg2[%c0_61, %c0_62, %c0_63, %c0_64] : memref<1x16x16x4xf32, #tpu.memory_space<vmem>>, vector<1x16x16x4xf32>
      %80 = vector.shape_cast %79 : vector<1x16x16x4xf32> to vector<16x16x4xf32>
      %81 = vector.shape_cast %80 : vector<16x16x4xf32> to vector<256x4xf32>
      %c0_65 = arith.constant 0 : index
      %c0_66 = arith.constant 0 : index
      %82 = vector.load %arg3[%c0_65, %c0_66] : memref<4x4xf32, #tpu.memory_space<vmem>>, vector<4x4xf32>
      %cst_67 = arith.constant dense<0.000000e+00> : vector<256x4xf32>
      %83 = tpu.matmul %81, %82, %cst_67 {dimension_numbers = #tpu.dot_dimension_numbers<[1], [0], [0], [1], [0, 0, 1, 1], [], []>} : vector<256x4xf32>, vector<4x4xf32>, vector<256x4xf32> -> vector<256x4xf32>
      %c0_68 = arith.constant 0 : index
      %c0_69 = arith.constant 0 : index
      %84 = vector.load %arg4[%c0_68, %c0_69] : memref<1x4xf32, #tpu.memory_space<vmem>>, vector<1x4xf32>
      %85 = vector.broadcast %84 : vector<1x4xf32> to vector<256x4xf32>
      %86 = arith.addf %83, %85 : vector<256x4xf32>
      %cst_70 = arith.constant 0.000000e+00 : f32
      %87 = vector.broadcast %cst_70 : f32 to vector<256x4xf32>
      %88 = arith.maximumf %86, %87 : vector<256x4xf32>
      %89 = vector.shape_cast %88 : vector<256x4xf32> to vector<16x16x4xf32>
      %c1_71 = arith.constant 1 : index
      %c1_72 = arith.constant 1 : index
      %c0_73 = arith.constant 0 : index
      %90 = vector.load %arg8[%c1_71, %c1_72, %c0_73] : memref<18x18x4xf32, #tpu.memory_space<vmem>>, vector<16x16x4xf32>
      tpu.vector_store %arg8[%c1_71, %c1_72, %c0_73], %89 {strides = array<i32>} : memref<18x18x4xf32, #tpu.memory_space<vmem>>, vector<16x16x4xf32>,
    } else {
    }
    %c16_i32 = arith.constant 16 : i32
    %3 = arith.muli %arg1, %c16_i32 : i32
    %cst = arith.constant 0.000000e+00 : f32
    %4 = vector.broadcast %cst : f32 to vector<256x4xf32>
    %c0_i32_1 = arith.constant 0 : i32
    %5 = arith.addi %3, %c0_i32_1 : i32
    %6 = arith.index_cast %5 : i32 to index
    %c0 = arith.constant 0 : index
    %c0_2 = arith.constant 0 : index
    %7 = vector.load %arg8[%6, %c0, %c0_2] : memref<18x18x4xf32, #tpu.memory_space<vmem>>, vector<16x18x4xf32>
    %8 = vector.extract_strided_slice %7 {offsets = [0, 0, 0], sizes = [16, 16, 4], strides = [1, 1, 1]} : vector<16x18x4xf32> to vector<16x16x4xf32>
    %9 = vector.shape_cast %8 : vector<16x16x4xf32> to vector<256x4xf32>
    %c0_3 = arith.constant 0 : index
    %c0_4 = arith.constant 0 : index
    %c0_5 = arith.constant 0 : index
    %c0_6 = arith.constant 0 : index
    %10 = vector.load %arg5[%c0_3, %c0_4, %c0_5, %c0_6] : memref<3x3x4x4xf32, #tpu.memory_space<vmem>>, vector<1x1x4x4xf32>
    %11 = vector.shape_cast %10 : vector<1x1x4x4xf32> to vector<4x4xf32>
    %cst_7 = arith.constant dense<0.000000e+00> : vector<256x4xf32>
    %12 = tpu.matmul %9, %11, %cst_7 {dimension_numbers = #tpu.dot_dimension_numbers<[1], [0], [0], [1], [0, 0, 1, 1], [], []>} : vector<256x4xf32>, vector<4x4xf32>, vector<256x4xf32> -> vector<256x4xf32>
    %13 = arith.addf %4, %12 : vector<256x4xf32>
    %14 = vector.extract_strided_slice %7 {offsets = [0, 1, 0], sizes = [16, 16, 4], strides = [1, 1, 1]} : vector<16x18x4xf32> to vector<16x16x4xf32>
    %15 = vector.shape_cast %14 : vector<16x16x4xf32> to vector<256x4xf32>
    %c0_8 = arith.constant 0 : index
    %c1 = arith.constant 1 : index
    %c0_9 = arith.constant 0 : index
    %c0_10 = arith.constant 0 : index
    %16 = vector.load %arg5[%c0_8, %c1, %c0_9, %c0_10] : memref<3x3x4x4xf32, #tpu.memory_space<vmem>>, vector<1x1x4x4xf32>
    %17 = vector.shape_cast %16 : vector<1x1x4x4xf32> to vector<4x4xf32>
    %cst_11 = arith.constant dense<0.000000e+00> : vector<256x4xf32>
    %18 = tpu.matmul %15, %17, %cst_11 {dimension_numbers = #tpu.dot_dimension_numbers<[1], [0], [0], [1], [0, 0, 1, 1], [], []>} : vector<256x4xf32>, vector<4x4xf32>, vector<256x4xf32> -> vector<256x4xf32>
    %19 = arith.addf %13, %18 : vector<256x4xf32>
    %20 = vector.extract_strided_slice %7 {offsets = [0, 2, 0], sizes = [16, 16, 4], strides = [1, 1, 1]} : vector<16x18x4xf32> to vector<16x16x4xf32>
    %21 = vector.shape_cast %20 : vector<16x16x4xf32> to vector<256x4xf32>
    %c0_12 = arith.constant 0 : index
    %c2 = arith.constant 2 : index
    %c0_13 = arith.constant 0 : index
    %c0_14 = arith.constant 0 : index
    %22 = vector.load %arg5[%c0_12, %c2, %c0_13, %c0_14] : memref<3x3x4x4xf32, #tpu.memory_space<vmem>>, vector<1x1x4x4xf32>
    %23 = vector.shape_cast %22 : vector<1x1x4x4xf32> to vector<4x4xf32>
    %cst_15 = arith.constant dense<0.000000e+00> : vector<256x4xf32>
    %24 = tpu.matmul %21, %23, %cst_15 {dimension_numbers = #tpu.dot_dimension_numbers<[1], [0], [0], [1], [0, 0, 1, 1], [], []>} : vector<256x4xf32>, vector<4x4xf32>, vector<256x4xf32> -> vector<256x4xf32>
    %25 = arith.addf %19, %24 : vector<256x4xf32>
    %c1_i32 = arith.constant 1 : i32
    %26 = arith.addi %3, %c1_i32 : i32
    %27 = arith.index_cast %26 : i32 to index
    %c0_16 = arith.constant 0 : index
    %c0_17 = arith.constant 0 : index
    %28 = vector.load %arg8[%27, %c0_16, %c0_17] : memref<18x18x4xf32, #tpu.memory_space<vmem>>, vector<16x18x4xf32>
    %29 = vector.extract_strided_slice %28 {offsets = [0, 0, 0], sizes = [16, 16, 4], strides = [1, 1, 1]} : vector<16x18x4xf32> to vector<16x16x4xf32>
    %30 = vector.shape_cast %29 : vector<16x16x4xf32> to vector<256x4xf32>
    %c1_18 = arith.constant 1 : index
    %c0_19 = arith.constant 0 : index
    %c0_20 = arith.constant 0 : index
    %c0_21 = arith.constant 0 : index
    %31 = vector.load %arg5[%c1_18, %c0_19, %c0_20, %c0_21] : memref<3x3x4x4xf32, #tpu.memory_space<vmem>>, vector<1x1x4x4xf32>
    %32 = vector.shape_cast %31 : vector<1x1x4x4xf32> to vector<4x4xf32>
    %cst_22 = arith.constant dense<0.000000e+00> : vector<256x4xf32>
    %33 = tpu.matmul %30, %32, %cst_22 {dimension_numbers = #tpu.dot_dimension_numbers<[1], [0], [0], [1], [0, 0, 1, 1], [], []>} : vector<256x4xf32>, vector<4x4xf32>, vector<256x4xf32> -> vector<256x4xf32>
    %34 = arith.addf %25, %33 : vector<256x4xf32>
    %35 = vector.extract_strided_slice %28 {offsets = [0, 1, 0], sizes = [16, 16, 4], strides = [1, 1, 1]} : vector<16x18x4xf32> to vector<16x16x4xf32>
    %36 = vector.shape_cast %35 : vector<16x16x4xf32> to vector<256x4xf32>
    %c1_23 = arith.constant 1 : index
    %c1_24 = arith.constant 1 : index
    %c0_25 = arith.constant 0 : index
    %c0_26 = arith.constant 0 : index
    %37 = vector.load %arg5[%c1_23, %c1_24, %c0_25, %c0_26] : memref<3x3x4x4xf32, #tpu.memory_space<vmem>>, vector<1x1x4x4xf32>
    %38 = vector.shape_cast %37 : vector<1x1x4x4xf32> to vector<4x4xf32>
    %cst_27 = arith.constant dense<0.000000e+00> : vector<256x4xf32>
    %39 = tpu.matmul %36, %38, %cst_27 {dimension_numbers = #tpu.dot_dimension_numbers<[1], [0], [0], [1], [0, 0, 1, 1], [], []>} : vector<256x4xf32>, vector<4x4xf32>, vector<256x4xf32> -> vector<256x4xf32>
    %40 = arith.addf %34, %39 : vector<256x4xf32>
    %41 = vector.extract_strided_slice %28 {offsets = [0, 2, 0], sizes = [16, 16, 4], strides = [1, 1, 1]} : vector<16x18x4xf32> to vector<16x16x4xf32>
    %42 = vector.shape_cast %41 : vector<16x16x4xf32> to vector<256x4xf32>
    %c1_28 = arith.constant 1 : index
    %c2_29 = arith.constant 2 : index
    %c0_30 = arith.constant 0 : index
    %c0_31 = arith.constant 0 : index
    %43 = vector.load %arg5[%c1_28, %c2_29, %c0_30, %c0_31] : memref<3x3x4x4xf32, #tpu.memory_space<vmem>>, vector<1x1x4x4xf32>
    %44 = vector.shape_cast %43 : vector<1x1x4x4xf32> to vector<4x4xf32>
    %cst_32 = arith.constant dense<0.000000e+00> : vector<256x4xf32>
    %45 = tpu.matmul %42, %44, %cst_32 {dimension_numbers = #tpu.dot_dimension_numbers<[1], [0], [0], [1], [0, 0, 1, 1], [], []>} : vector<256x4xf32>, vector<4x4xf32>, vector<256x4xf32> -> vector<256x4xf32>
    %46 = arith.addf %40, %45 : vector<256x4xf32>
    %c2_i32 = arith.constant 2 : i32
    %47 = arith.addi %3, %c2_i32 : i32
    %48 = arith.index_cast %47 : i32 to index
    %c0_33 = arith.constant 0 : index
    %c0_34 = arith.constant 0 : index
    %49 = vector.load %arg8[%48, %c0_33, %c0_34] : memref<18x18x4xf32, #tpu.memory_space<vmem>>, vector<16x18x4xf32>
    %50 = vector.extract_strided_slice %49 {offsets = [0, 0, 0], sizes = [16, 16, 4], strides = [1, 1, 1]} : vector<16x18x4xf32> to vector<16x16x4xf32>
    %51 = vector.shape_cast %50 : vector<16x16x4xf32> to vector<256x4xf32>
    %c2_35 = arith.constant 2 : index
    %c0_36 = arith.constant 0 : index
    %c0_37 = arith.constant 0 : index
    %c0_38 = arith.constant 0 : index
    %52 = vector.load %arg5[%c2_35, %c0_36, %c0_37, %c0_38] : memref<3x3x4x4xf32, #tpu.memory_space<vmem>>, vector<1x1x4x4xf32>
    %53 = vector.shape_cast %52 : vector<1x1x4x4xf32> to vector<4x4xf32>
    %cst_39 = arith.constant dense<0.000000e+00> : vector<256x4xf32>
    %54 = tpu.matmul %51, %53, %cst_39 {dimension_numbers = #tpu.dot_dimension_numbers<[1], [0], [0], [1], [0, 0, 1, 1], [], []>} : vector<256x4xf32>, vector<4x4xf32>, vector<256x4xf32> -> vector<256x4xf32>
    %55 = arith.addf %46, %54 : vector<256x4xf32>
    %56 = vector.extract_strided_slice %49 {offsets = [0, 1, 0], sizes = [16, 16, 4], strides = [1, 1, 1]} : vector<16x18x4xf32> to vector<16x16x4xf32>
    %57 = vector.shape_cast %56 : vector<16x16x4xf32> to vector<256x4xf32>
    %c2_40 = arith.constant 2 : index
    %c1_41 = arith.constant 1 : index
    %c0_42 = arith.constant 0 : index
    %c0_43 = arith.constant 0 : index
    %58 = vector.load %arg5[%c2_40, %c1_41, %c0_42, %c0_43] : memref<3x3x4x4xf32, #tpu.memory_space<vmem>>, vector<1x1x4x4xf32>
    %59 = vector.shape_cast %58 : vector<1x1x4x4xf32> to vector<4x4xf32>
    %cst_44 = arith.constant dense<0.000000e+00> : vector<256x4xf32>
    %60 = tpu.matmul %57, %59, %cst_44 {dimension_numbers = #tpu.dot_dimension_numbers<[1], [0], [0], [1], [0, 0, 1, 1], [], []>} : vector<256x4xf32>, vector<4x4xf32>, vector<256x4xf32> -> vector<256x4xf32>
    %61 = arith.addf %55, %60 : vector<256x4xf32>
    %62 = vector.extract_strided_slice %49 {offsets = [0, 2, 0], sizes = [16, 16, 4], strides = [1, 1, 1]} : vector<16x18x4xf32> to vector<16x16x4xf32>
    %63 = vector.shape_cast %62 : vector<16x16x4xf32> to vector<256x4xf32>
    %c2_45 = arith.constant 2 : index
    %c2_46 = arith.constant 2 : index
    %c0_47 = arith.constant 0 : index
    %c0_48 = arith.constant 0 : index
    %64 = vector.load %arg5[%c2_45, %c2_46, %c0_47, %c0_48] : memref<3x3x4x4xf32, #tpu.memory_space<vmem>>, vector<1x1x4x4xf32>
    %65 = vector.shape_cast %64 : vector<1x1x4x4xf32> to vector<4x4xf32>
    %cst_49 = arith.constant dense<0.000000e+00> : vector<256x4xf32>
    %66 = tpu.matmul %63, %65, %cst_49 {dimension_numbers = #tpu.dot_dimension_numbers<[1], [0], [0], [1], [0, 0, 1, 1], [], []>} : vector<256x4xf32>, vector<4x4xf32>, vector<256x4xf32> -> vector<256x4xf32>
    %67 = arith.addf %61, %66 : vector<256x4xf32>
    %c0_50 = arith.constant 0 : index
    %c0_51 = arith.constant 0 : index
    %68 = vector.load %arg6[%c0_50, %c0_51] : memref<1x4xf32, #tpu.memory_space<vmem>>, vector<1x4xf32>
    %69 = vector.broadcast %68 : vector<1x4xf32> to vector<256x4xf32>
    %70 = arith.addf %67, %69 : vector<256x4xf32>
    %cst_52 = arith.constant 0.000000e+00 : f32
    %71 = vector.broadcast %cst_52 : f32 to vector<256x4xf32>
    %72 = arith.maximumf %70, %71 : vector<256x4xf32>
    %73 = vector.shape_cast %72 : vector<256x4xf32> to vector<16x16x4xf32>
    %c0_53 = arith.constant 0 : index
    %c0_54 = arith.constant 0 : index
    %c0_55 = arith.constant 0 : index
    %c0_56 = arith.constant 0 : index
    %74 = vector.load %arg7[%c0_53, %c0_54, %c0_55, %c0_56] : memref<1x16x16x4xf32, #tpu.memory_space<vmem>>, vector<1x16x16x4xf32>
    %75 = vector.shape_cast %74 : vector<1x16x16x4xf32> to vector<16x16x4xf32>
    %76 = vector.shape_cast %73 : vector<16x16x4xf32> to vector<1x16x16x4xf32>
    tpu.vector_store %arg7[%c0_53, %c0_54, %c0_55, %c0_56], %76 {strides = array<i32>} : memref<1x16x16x4xf32, #tpu.memory_space<vmem>>, vector<1x16x16x4xf32>,
    return
  }
  func.func @transform_0(%arg0: i32, %arg1: i32) -> (i32, i32, i32, i32) {
    %c0_i32 = arith.constant 0 : i32
    %c0_i32_0 = arith.constant 0 : i32
    %c0_i32_1 = arith.constant 0 : i32
    %c0_i32_2 = arith.constant 0 : i32
    return %arg0, %c0_i32, %c0_i32_0, %c0_i32_1 : i32, i32, i32, i32
  }
  func.func @transform_1(%arg0: i32, %arg1: i32) -> (i32, i32) {
    %c0_i32 = arith.constant 0 : i32
    %c0_i32_0 = arith.constant 0 : i32
    %c0_i32_1 = arith.constant 0 : i32
    return %c0_i32, %c0_i32_0 : i32, i32
  }
  func.func @transform_2(%arg0: i32, %arg1: i32) -> (i32, i32) {
    %c0_i32 = arith.constant 0 : i32
    %c0_i32_0 = arith.constant 0 : i32
    %c0_i32_1 = arith.constant 0 : i32
    return %c0_i32, %c0_i32_0 : i32, i32
  }
  func.func @transform_3(%arg0: i32, %arg1: i32) -> (i32, i32, i32, i32) {
    %c0_i32 = arith.constant 0 : i32
    %c0_i32_0 = arith.constant 0 : i32
    %c0_i32_1 = arith.constant 0 : i32
    %c0_i32_2 = arith.constant 0 : i32
    %c0_i32_3 = arith.constant 0 : i32
    return %c0_i32, %c0_i32_0, %c0_i32_1, %c0_i32_2 : i32, i32, i32, i32
  }
  func.func @transform_4(%arg0: i32, %arg1: i32) -> (i32, i32) {
    %c0_i32 = arith.constant 0 : i32
    %c0_i32_0 = arith.constant 0 : i32
    %c0_i32_1 = arith.constant 0 : i32
    return %c0_i32, %c0_i32_0 : i32, i32
  }
  func.func @transform_5(%arg0: i32, %arg1: i32) -> (i32, i32, i32, i32) {
    %c0_i32 = arith.constant 0 : i32
    %c0_i32_0 = arith.constant 0 : i32
    %c0_i32_1 = arith.constant 0 : i32
    return %arg0, %arg1, %c0_i32, %c0_i32_0 : i32, i32, i32, i32
  }
}

</mosaic_0001>

<bundles_post_ra>
// kernel: tpu_custom_call.1
= control target key start
LH: loop header
LB: loop body
LE: loop exit
PB: predicated region body
PF: predicated region fallthrough
CT: control target
= control target key end

     0   :  { %s3998_s18 = smov 0   ;;  %s4000_s19 = smov 0   ;;  %s6117_s0 = inlined_call_operand.vmem [shape: f32[2,16,16,4], index: 0, kind: input, shape index: {}]   ;;  %s6118_s1 = inlined_call_operand.vmem [shape: f32[4,4], index: 1, kind: input, shape index: {}]   ;;  %s6119_s2 = inlined_call_operand.vmem [shape: f32[1,4], index: 2, kind: input, shape index: {}]   ;;  %s6120_s3 = inlined_call_operand.vmem [shape: f32[3,3,4,4], index: 3, kind: input, shape index: {}]   ;;  %s6121_s4 = inlined_call_operand.vmem [shape: f32[1,4], index: 4, kind: input, shape index: {}]   ;;  %s6122_s5 = inlined_call_operand.vmem [shape: f32[2,16,16,4], index: 5, kind: output, shape index: {}]  }
   0x1   :  { %s4002_s20 = smov 0  }
   0x2 LB: > { %s27_s21 = sadd.s32 1, %s3961_s19  ;;  %p3468_p0 = scmp.ge.s32.totalorder %s3965_s20, 1  ;;  %s3965_s20 = sphi %s4002_s20, %s15_s20   ;;  %s3961_s19 = sphi %s4000_s19, %s6398_s19   ;;  %s3957_s18 = sphi %s3998_s18, %s6397_s18  }
   0x3   : > { %p29_p1 = scmp.ge.s32.totalorder %s27_s21, 2  ;;  %p201_p2 = scmp.lt.s32.totalorder %s3965_s20, 3 }
   0x5   : > { %s6400_s21 = smov (%p29_p1, %s27_s21), 0  ;;  %p202_p3 = pnand %p3468_p0, %p201_p2 }
   0x7   : > { %205 = sbr.rel (%p202_p3) target bundleno = 1054 (0x41e), region = 40 }
   0xc   : > { %v342_v0 = vld [vmem:[%s6118_s1] sm:$0xf]  ;;  %vm443_vm0 = vcmask 1043456   ;;  %p234_p4 = scmp.lt.s32.totalorder %s3957_s18, 1  ;;  %vm254_vm1 = vcmask 31744   ;;  %v3967_v25 = vmov 0.0  }
   0xd   : > { %3473 = vmatpush.msk.msra.mxu0 %vm443_vm0, %v342_v0  ;;  %3911 = vmatpush.msk.msra.mxu2 %vm443_vm0, %v342_v0  ;;  %259 = vst.msk [vmem:[#allocation2 + $0x18] sm:$0xff] %vm254_vm1, %v3967_v25  ;;  %v676_v28 = vld [vmem:[%s6120_s3] sm:$0xf]  ;;  %v3506_v32 = vld [vmem:[%s6120_s3 + $0x4] sm:$0xf]  ;;  %vm725_vm2 = vcmask 1046528  }
   0xe   : > { %s6402_s18 = smov (!%p234_p4, %s3957_s18), 1  ;;  %260 = vst.msk [vmem:[#allocation2 + $0x20] sm:$0xff] %vm254_vm1, %v3967_v25  ;;  %3507 = vmatpush.msk.msra.mxu1 %vm443_vm0, %v3506_v32  ;;  %3912 = vmatpush.msk.msra.mxu3 %vm443_vm0, %v3506_v32  ;;  %v3655_v37 = vld [vmem:[%s6120_s3 + $0xc] sm:$0xf]  ;;  %v4186_v42 = vld [vmem:[%s6119_s2] ss:$0 sm:$0xff] }
   0xf   : > { %s3909_s24 = sshll.u32 %s6402_s18, 8  ;;  %255 = vst.msk [vmem:[#allocation2] sm:$0xff] %vm254_vm1, %v3967_v25  ;;  %3540 = vmatpush.msk.msrb.mxu2 %vm443_vm0, %v676_v28  ;;  %3656 = vmatpush.msk.msrb.mxu0 %vm443_vm0, %v3655_v37  ;;  %vm257_vm3 = vcmask 25600   ;;  %vm1170_vm4 = vcmask 1045504  }
  0x10   : > { %s4029_s27 = scalar_lea.vmem %s6117_s0, %s3909_s24  ;;  %256 = vst.msk [vmem:[#allocation2 + $0x8] sm:$0xff] %vm254_vm1, %v3967_v25  ;;  %s5808_s7 = scalar_lea.vmem %s6122_s5, %s3909_s24 }
  0x11   : > { %v310_v1 = vld [vmem:[%s4029_s27] sm:$0xff]  ;;  %v311_v3 = vld [vmem:[%s4029_s27 + $0x8] sm:$0xff]  ;;  %v312_v5 = vld [vmem:[%s4029_s27 + $0x10] sm:$0xff]  ;;  %262 = vst.msk [vmem:[#allocation2 + $0x30] sm:$0xff] %vm254_vm1, %v3967_v25 }
  0x12   : > { %v326_v2 = vld [vmem:[%s4029_s27 + $0x80] sm:$0xff]  ;;  %3474 = vmatmul.msk.f32.vlgmr.msra.gmra.mxu0 %vm254_vm1, %v310_v1  ;;  %v327_v4 = vld [vmem:[%s4029_s27 + $0x88] sm:$0xff]  ;;  %v328_v6 = vld [vmem:[%s4029_s27 + $0x90] sm:$0xff]  ;;  %263 = vst.msk [vmem:[#allocation2 + $0x38] sm:$0xff] %vm254_vm1, %v3967_v25 }
  0x13   : > { %3490 = vmatmul.msk.f32.vlgmr.msra.gmra.mxu2 %vm254_vm1, %v326_v2  ;;  %v313_v7 = vld [vmem:[%s4029_s27 + $0x18] sm:$0xff]  ;;  %v314_v9 = vld [vmem:[%s4029_s27 + $0x20] sm:$0xff]  ;;  %v315_v11 = vld [vmem:[%s4029_s27 + $0x28] sm:$0xff]  ;;  %265 = vst.msk [vmem:[#allocation2 + $0x48] sm:$0xff] %vm254_vm1, %v3967_v25 }
  0x14   : > { %v329_v8 = vld [vmem:[%s4029_s27 + $0x98] sm:$0xff]  ;;  %v330_v10 = vld [vmem:[%s4029_s27 + $0xa0] sm:$0xff]  ;;  %v331_v12 = vld [vmem:[%s4029_s27 + $0xa8] sm:$0xff]  ;;  %266 = vst.msk [vmem:[#allocation2 + $0x50] sm:$0xff] %vm254_vm1, %v3967_v25 }
  0x15   : > { %v316_v13 = vld [vmem:[%s4029_s27 + $0x30] sm:$0xff]  ;;  %v317_v15 = vld [vmem:[%s4029_s27 + $0x38] sm:$0xff]  ;;  %v318_v17 = vld [vmem:[%s4029_s27 + $0x40] sm:$0xff]  ;;  %268 = vst.msk [vmem:[#allocation2 + $0x60] sm:$0xff] %vm254_vm1, %v3967_v25 }
  0x16   : > { %v332_v14 = vld [vmem:[%s4029_s27 + $0xb0] sm:$0xff]  ;;  %v333_v16 = vld [vmem:[%s4029_s27 + $0xb8] sm:$0xff]  ;;  %v334_v18 = vld [vmem:[%s4029_s27 + $0xc0] sm:$0xff]  ;;  %269 = vst.msk [vmem:[#allocation2 + $0x68] sm:$0xff] %vm254_vm1, %v3967_v25 }
  0x17   : > { %v319_v19 = vld [vmem:[%s4029_s27 + $0x48] sm:$0xff]  ;;  %v320_v21 = vld [vmem:[%s4029_s27 + $0x50] sm:$0xff]  ;;  %v321_v23 = vld [vmem:[%s4029_s27 + $0x58] sm:$0xff]  ;;  %271 = vst.msk [vmem:[#allocation2 + $0x78] sm:$0xff] %vm254_vm1, %v3967_v25 }
  0x18   : > { %v335_v20 = vld [vmem:[%s4029_s27 + $0xc8] sm:$0xff]  ;;  %v336_v22 = vld [vmem:[%s4029_s27 + $0xd0] sm:$0xff]  ;;  %v337_v24 = vld [vmem:[%s4029_s27 + $0xd8] sm:$0xff]  ;;  %272 = vst.msk [vmem:[#allocation2 + $0x80] sm:$0xff] %vm254_vm1, %v3967_v25 }
  0x19   : > { %v322_v26 = vld [vmem:[%s4029_s27 + $0x60] sm:$0xff]  ;;  %v4109_v31 = vld [vmem:[#allocation2 + $0x8] sm:$0xff]  ;;  %274 = vst.msk [vmem:[#allocation2 + $0x90] sm:$0xff] %vm254_vm1, %v3967_v25  ;;  %v324_v38 = vld [vmem:[%s4029_s27 + $0x70] sm:$0xff] }
  0x1a   : > { %3475 = vmatmul.msk.f32.gmra.mxu0 %vm254_vm1, %v311_v3  ;;  %v338_v27 = vld [vmem:[%s4029_s27 + $0xe0] sm:$0xff]  ;;  %v727_v33 = vrot.slane %v4109_v31, 1  ;;  %v323_v34 = vld [vmem:[%s4029_s27 + $0x68] sm:$0xff]  ;;  %275 = vst.msk [vmem:[#allocation2 + $0x98] sm:$0xff] %vm254_vm1, %v3967_v25  ;;  %v340_v39 = vld [vmem:[%s4029_s27 + $0xf0] sm:$0xff] }
  0x1b   : > { %3491 = vmatmul.msk.f32.gmra.mxu2 %vm254_vm1, %v327_v4  ;;  %v628_v29 = vld [vmem:[#allocation2] sm:$0xff]  ;;  %v339_v35 = vld [vmem:[%s4029_s27 + $0xe8] sm:$0xff]  ;;  %277 = vst.msk [vmem:[#allocation2 + $0xa8] sm:$0xff] %vm254_vm1, %v3967_v25  ;;  %v325_v40 = vld [vmem:[%s4029_s27 + $0x78] sm:$0xff] }
  0x1c   : > { %v726_v30 = vrot.slane %v628_v29, 1  ;;  %278 = vst.msk [vmem:[#allocation2 + $0xb0] sm:$0xff] %vm254_vm1, %v3967_v25  ;;  %v341_v41 = vld [vmem:[%s4029_s27 + $0xf8] sm:$0xff] }
  0x1d   : > { %280 = vst.msk [vmem:[#allocation2 + $0xc0] sm:$0xff] %vm254_vm1, %v3967_v25 }
  0x1e   : > { %v728_v36 = vsel %vm725_vm2, %v726_v30, %v727_v33  ;;  %281 = vst.msk [vmem:[#allocation2 + $0xc8] sm:$0xff] %vm254_vm1, %v3967_v25 }
  0x1f   : > { %3508 = vmatmul.msk.f32.vlgmr.msra.gmra.mxu1 %vm254_vm1, %v728_v36  ;;  %283 = vst.msk [vmem:[#allocation2 + $0xd8] sm:$0xff] %vm254_vm1, %v3967_v25 }
  0x20   : > { %284 = vst.msk [vmem:[#allocation2 + $0xe0] sm:$0xff] %vm254_vm1, %v3967_v25 }
  0x21   : > { %286 = vst.msk [vmem:[#allocation2 + $0xf0] sm:$0xff] %vm254_vm1, %v3967_v25 }
  0x22   : > { %3476 = vmatmul.msk.f32.gmra.mxu0 %vm254_vm1, %v312_v5  ;;  %287 = vst.msk [vmem:[#allocation2 + $0xf8] sm:$0xff] %vm254_vm1, %v3967_v25 }
  0x23   : > { %3492 = vmatmul.msk.f32.gmra.mxu2 %vm254_vm1, %v328_v6  ;;  %289 = vst.msk [vmem:[#allocation2 + $0x108] sm:$0xff] %vm254_vm1, %v3967_v25 }
  0x24   : > { %290 = vst.msk [vmem:[#allocation2 + $0x110] sm:$0xff] %vm254_vm1, %v3967_v25 }
  0x25   : > { %292 = vst.msk [vmem:[#allocation2 + $0x120] sm:$0xff] %vm254_vm1, %v3967_v25 }
  0x26   : > { %293 = vst.msk [vmem:[#allocation2 + $0x128] sm:$0xff] %vm254_vm1, %v3967_v25 }
  0x27   : > { %295 = vst.msk [vmem:[#allocation2 + $0x138] sm:$0xff] %vm254_vm1, %v3967_v25 }
  0x28   : > { %296 = vst.msk [vmem:[#allocation2 + $0x140] sm:$0xff] %vm254_vm1, %v3967_v25 }
  0x29   : > { %298 = vst.msk [vmem:[#allocation2 + $0x150] sm:$0xff] %vm254_vm1, %v3967_v25 }
  0x2a   : > { %3477 = vmatmul.msk.f32.gmra.mxu0 %vm254_vm1, %v313_v7  ;;  %299 = vst.msk [vmem:[#allocation2 + $0x158] sm:$0xff] %vm254_vm1, %v3967_v25 }
  0x2b   : > { %3493 = vmatmul.msk.f32.gmra.mxu2 %vm254_vm1, %v329_v8  ;;  %301 = vst.msk [vmem:[#allocation2 + $0x168] sm:$0xff] %vm254_vm1, %v3967_v25 }
  0x2c   : > { %302 = vst.msk [vmem:[#allocation2 + $0x170] sm:$0xff] %vm254_vm1, %v3967_v25 }
  0x2d   : > { %304 = vst.msk [vmem:[#allocation2 + $0x180] sm:$0xff] %vm254_vm1, %v3967_v25 }
  0x2e   : > { %305 = vst.msk [vmem:[#allocation2 + $0x188] sm:$0xff] %vm254_vm1, %v3967_v25 }
  0x2f   : > { %307 = vst.msk [vmem:[#allocation2 + $0x198] sm:$0xff] %vm254_vm1, %v3967_v25 }
  0x30   : > { %308 = vst.msk [vmem:[#allocation2 + $0x1a0] sm:$0xff] %vm254_vm1, %v3967_v25 }
  0x31   : > { %261 = vst.msk [vmem:[#allocation2 + $0x28] sm:$0x3] %vm257_vm3, %v3967_v25 }
  0x32   : > { %3478 = vmatmul.msk.f32.gmra.mxu0 %vm254_vm1, %v314_v9  ;;  %258 = vst.msk [vmem:[#allocation2 + $0x10] sm:$0x3] %vm257_vm3, %v3967_v25 }
  0x33   : > { %3494 = vmatmul.msk.f32.gmra.mxu2 %vm254_vm1, %v330_v10  ;;  %264 = vst.msk [vmem:[#allocation2 + $0x40] sm:$0x3] %vm257_vm3, %v3967_v25 }
  0x34   : > { %267 = vst.msk [vmem:[#allocation2 + $0x58] sm:$0x3] %vm257_vm3, %v3967_v25 }
  0x35   : > { %270 = vst.msk [vmem:[#allocation2 + $0x70] sm:$0x3] %vm257_vm3, %v3967_v25 }
  0x36   : > { %273 = vst.msk [vmem:[#allocation2 + $0x88] sm:$0x3] %vm257_vm3, %v3967_v25 }
  0x37   : > { %276 = vst.msk [vmem:[#allocation2 + $0xa0] sm:$0x3] %vm257_vm3, %v3967_v25 }
  0x38   : > { %279 = vst.msk [vmem:[#allocation2 + $0xb8] sm:$0x3] %vm257_vm3, %v3967_v25 }
  0x39   : > { %v630_v48 = vld [vmem:[#allocation2 + $0x10] sm:$0x3]  ;;  %282 = vst.msk [vmem:[#allocation2 + $0xd0] sm:$0x3] %vm257_vm3, %v3967_v25 }
  0x3a   : > { %3479 = vmatmul.msk.f32.gmra.mxu0 %vm254_vm1, %v315_v11  ;;  %v729_v50 = vrot.slane %v630_v48, 1  ;;  %285 = vst.msk [vmem:[#allocation2 + $0xe8] sm:$0x3] %vm257_vm3, %v3967_v25 }
  0x3b   : > { %3495 = vmatmul.msk.f32.gmra.mxu2 %vm254_vm1, %v331_v12  ;;  %288 = vst.msk [vmem:[#allocation2 + $0x100] sm:$0x3] %vm257_vm3, %v3967_v25 }
  0x3c   : > { %v730_v53 = vsel %vm725_vm2, %v727_v33, %v729_v50  ;;  %291 = vst.msk [vmem:[#allocation2 + $0x118] sm:$0x3] %vm257_vm3, %v3967_v25 }
  0x3d   : > { %3509 = vmatmul.msk.f32.gmra.mxu1 %vm254_vm1, %v730_v53  ;;  %294 = vst.msk [vmem:[#allocation2 + $0x130] sm:$0x3] %vm257_vm3, %v3967_v25 }
  0x3e   : > { %297 = vst.msk [vmem:[#allocation2 + $0x148] sm:$0x3] %vm257_vm3, %v3967_v25 }
  0x3f   : > { %300 = vst.msk [vmem:[#allocation2 + $0x160] sm:$0x3] %vm257_vm3, %v3967_v25 }
  0x40   : > { %303 = vst.msk [vmem:[#allocation2 + $0x178] sm:$0x3] %vm257_vm3, %v3967_v25 }
  0x41   : > { %306 = vst.msk [vmem:[#allocation2 + $0x190] sm:$0x3] %vm257_vm3, %v3967_v25 }
  0x42   : > { %3480 = vmatmul.msk.f32.gmra.mxu0 %vm254_vm1, %v316_v13  ;;  %309 = vst.msk [vmem:[#allocation2 + $0x1a8] sm:$0x3] %vm257_vm3, %v3967_v25 }
  0x43   : > { %3496 = vmatmul.msk.f32.gmra.mxu2 %vm254_vm1, %v332_v14 }
  0x4a   : > { %3481 = vmatmul.msk.f32.gmra.mxu0 %vm254_vm1, %v317_v15 }
  0x4b   : > { %3497 = vmatmul.msk.f32.gmra.mxu2 %vm254_vm1, %v333_v16 }
  0x52   : > { %3482 = vmatmul.msk.f32.gmra.mxu0 %vm254_vm1, %v318_v17 }
  0x53   : > { %3498 = vmatmul.msk.f32.gmra.mxu2 %vm254_vm1, %v334_v18 }
  0x5a   : > { %3483 = vmatmul.msk.f32.gmra.mxu0 %vm254_vm1, %v319_v19 }
  0x5b   : > { %3499 = vmatmul.msk.f32.gmra.mxu2 %vm254_vm1, %v335_v20 }
  0x62   : > { %3484 = vmatmul.msk.f32.gmra.mxu0 %vm254_vm1, %v320_v21 }
  0x63   : > { %3500 = vmatmul.msk.f32.gmra.mxu2 %vm254_vm1, %v336_v22 }
  0x6a   : > { %3485 = vmatmul.msk.f32.gmra.mxu0 %vm254_vm1, %v321_v23 }
  0x6b   : > { %3501 = vmatmul.msk.f32.gmra.mxu2 %vm254_vm1, %v337_v24 }
  0x72   : > { %3486 = vmatmul.msk.f32.gmra.mxu0 %vm254_vm1, %v322_v26 }
  0x73   : > { %3502 = vmatmul.msk.f32.gmra.mxu2 %vm254_vm1, %v338_v27 }
  0x7a   : > { %3487 = vmatmul.msk.f32.gmra.mxu0 %vm254_vm1, %v323_v34 }
  0x7b   : > { %3503 = vmatmul.msk.f32.gmra.mxu2 %vm254_vm1, %v339_v35 }
  0x82   : > { %3488 = vmatmul.msk.f32.gmra.mxu0 %vm254_vm1, %v324_v38 }
  0x83   : > { %3504 = vmatmul.msk.f32.gmra.mxu2 %vm254_vm1, %v340_v39 }
  0x8a   : > { %3489 = vmatmul.msk.f32.gmra.mxu0 %vm254_vm1, %v325_v40 }
  0x8b   : > { %3505 = vmatmul.msk.f32.gmra.mxu2 %vm254_vm1, %v341_v41 }
  0x8f   : > { %v464_v43 = vpop.f32.mrf.mxu0 }
  0x90   : > { %v465_v44 = vadd.f32 %v4186_v42, %v464_v43 }
  0x92   : > { %v560_v45 = vmax.f32 %v465_v44, 0.0 }
  0x93   : > { %3541 = vmatmul.msk.f32.vlgmr.msrb.gmra.mxu2 %vm254_vm1, %v628_v29 }
  0x94   : > { %593 = vst.msk [vmem:[#allocation2 + $0x19] sm:$0xff] %vm254_vm1, %v560_v45 }
  0x96   : > { %v512_v46 = vpop.f32.mrf.mxu2 }
  0x97   : > { %v513_v47 = vadd.f32 %v4186_v42, %v512_v46  ;;  %v467_v49 = vpop.f32.mrf.mxu0 }
  0x98   : > { %v468_v52 = vadd.f32 %v4186_v42, %v467_v49 }
  0x99   : > { %v576_v51 = vmax.f32 %v513_v47, 0.0 }
  0x9a   : > { %v561_v54 = vmax.f32 %v468_v52, 0.0 }
  0x9b   : > { %609 = vst.msk [vmem:[#allocation2 + $0xd9] sm:$0xff] %vm254_vm1, %v576_v51  ;;  %3542 = vmatmul.msk.f32.gmra.mxu2 %vm254_vm1, %v4109_v31  ;;  %v3607_v55 = vld [vmem:[#allocation2 + $0x18] sm:$0xff] }
  0x9c   : > { %594 = vst.msk [vmem:[#allocation2 + $0x21] sm:$0xff] %vm254_vm1, %v561_v54  ;;  %3657 = vmatmul.msk.f32.vlgmr.msrb.gmra.mxu0 %vm254_vm1, %v3607_v55  ;;  %v1778_v1 = vrot.slane %v3607_v55, 1  ;;  %v2072_v4 = vrot.slane %v3607_v55, 2 }
  0x9e   : > { %v515_v56 = vpop.f32.mrf.mxu2 }
  0x9f   : > { %v516_v57 = vadd.f32 %v4186_v42, %v515_v56  ;;  %v470_v58 = vpop.f32.mrf.mxu0 }
  0xa0   : > { %v471_v60 = vadd.f32 %v4186_v42, %v470_v58 }
  0xa1   : > { %v577_v59 = vmax.f32 %v516_v57, 0.0 }
  0xa2   : > { %v562_v61 = vmax.f32 %v471_v60, 0.0 }
  0xa3   : > { %3543 = vmatmul.msk.f32.gmra.mxu2 %vm254_vm1, %v3607_v55  ;;  %610 = vst.msk [vmem:[#allocation2 + $0xe1] sm:$0xff] %vm254_vm1, %v577_v59  ;;  %v3608_v62 = vld [vmem:[#allocation2 + $0x20] sm:$0xff]  ;;  %v633_v63 = vld [vmem:[#allocation2 + $0x28] sm:$0x3] }
  0xa4   : > { %v4246_v0 = vld [vmem:[#allocation2 + $0x28] sm:$0x3]  ;;  %595 = vst.msk [vmem:[#allocation2 + $0x31] sm:$0xff] %vm254_vm1, %v562_v61  ;;  %3658 = vmatmul.msk.f32.gmra.mxu0 %vm254_vm1, %v3608_v62  ;;  %v4250_v2 = vrot.slane %v3608_v62, 1  ;;  %v2073_v3 = vrot.slane %v3608_v62, 2  ;;  %v1179_v7 = vrot.slane %v633_v63, 2 }
  0xa5   : > { %v2075_v6 = vrot.slane %v4246_v0, 2  ;;  %v734_v17 = vrot.slane %v633_v63, 1 }
  0xa6   : > { %v518_v5 = vpop.f32.mrf.mxu2  ;;  %v4256_v9 = vsel %vm725_vm2, %v1778_v1, %v4250_v2  ;;  %v4261_v11 = vsel %vm1170_vm4, %v2072_v4, %v2073_v3  ;;  %v4268_v15 = vsel %vm1170_vm4, %v2073_v3, %v1179_v7 }
  0xa7   : > { %v519_v8 = vadd.f32 %v4186_v42, %v518_v5  ;;  %v473_v10 = vpop.f32.mrf.mxu0  ;;  %3510 = vmatmul.msk.f32.gmra.mxu1 %vm254_vm1, %v4256_v9  ;;  %v4264_v12 = vsel %vm1170_vm4, %v2073_v3, %v2075_v6  ;;  %v735_v21 = vsel %vm725_vm2, %v4250_v2, %v734_v17 }
  0xa8   : > { %v474_v14 = vadd.f32 %v4186_v42, %v473_v10 }
  0xa9   : > { %v578_v13 = vmax.f32 %v519_v8, 0.0 }
  0xaa   : > { %v563_v16 = vmax.f32 %v474_v14, 0.0 }
  0xab   : > { %611 = vst.msk [vmem:[#allocation2 + $0xf1] sm:$0xff] %vm254_vm1, %v578_v13  ;;  %3544 = vmatmul.msk.f32.gmra.mxu2 %vm254_vm1, %v3608_v62  ;;  %v3610_v18 = vld [vmem:[#allocation2 + $0x30] sm:$0xff] }
  0xac   : > { %596 = vst.msk [vmem:[#allocation2 + $0x39] sm:$0xff] %vm254_vm1, %v563_v16  ;;  %3659 = vmatmul.msk.f32.gmra.mxu0 %vm254_vm1, %v3610_v18  ;;  %v1783_v29 = vrot.slane %v3610_v18, 1  ;;  %v2077_v32 = vrot.slane %v3610_v18, 2 }
  0xae   : > { %v521_v19 = vpop.f32.mrf.mxu2 }
  0xaf   : > { %v522_v20 = vadd.f32 %v4186_v42, %v521_v19  ;;  %v476_v22 = vpop.f32.mrf.mxu0  ;;  %3511 = vmatmul.msk.f32.gmra.mxu1 %vm254_vm1, %v735_v21 }
  0xb0   : > { %v477_v24 = vadd.f32 %v4186_v42, %v476_v22 }
  0xb1   : > { %v579_v23 = vmax.f32 %v522_v20, 0.0 }
  0xb2   : > { %v564_v25 = vmax.f32 %v477_v24, 0.0 }
  0xb3   : > { %612 = vst.msk [vmem:[#allocation2 + $0xf9] sm:$0xff] %vm254_vm1, %v579_v23  ;;  %3545 = vmatmul.msk.f32.gmra.mxu2 %vm254_vm1, %v3610_v18  ;;  %v3611_v26 = vld [vmem:[#allocation2 + $0x38] sm:$0xff]  ;;  %v636_v27 = vld [vmem:[#allocation2 + $0x40] sm:$0x3] }
  0xb4   : > { %v4281_v28 = vld [vmem:[#allocation2 + $0x40] sm:$0x3]  ;;  %597 = vst.msk [vmem:[#allocation2 + $0x49] sm:$0xff] %vm254_vm1, %v564_v25  ;;  %3660 = vmatmul.msk.f32.gmra.mxu0 %vm254_vm1, %v3611_v26  ;;  %v4285_v30 = vrot.slane %v3611_v26, 1  ;;  %v2078_v31 = vrot.slane %v3611_v26, 2  ;;  %v1184_v35 = vrot.slane %v636_v27, 2 }
  0xb5   : > { %v2080_v34 = vrot.slane %v4281_v28, 2  ;;  %v739_v46 = vrot.slane %v636_v27, 1 }
  0xb6   : > { %v524_v33 = vpop.f32.mrf.mxu2  ;;  %v4291_v37 = vsel %vm725_vm2, %v1783_v29, %v4285_v30  ;;  %v4296_v39 = vsel %vm1170_vm4, %v2077_v32, %v2078_v31  ;;  %v4303_v44 = vsel %vm1170_vm4, %v2078_v31, %v1184_v35 }
  0xb7   : > { %v525_v36 = vadd.f32 %v4186_v42, %v524_v33  ;;  %v479_v38 = vpop.f32.mrf.mxu0  ;;  %3512 = vmatmul.msk.f32.gmra.mxu1 %vm254_vm1, %v4291_v37  ;;  %v4300_v43 = vsel %vm1170_vm4, %v2078_v31, %v2080_v34  ;;  %v740_v50 = vsel %vm725_vm2, %v4285_v30, %v739_v46 }
  0xb8   : > { %v480_v41 = vadd.f32 %v4186_v42, %v479_v38 }
  0xb9   : > { %v580_v40 = vmax.f32 %v525_v36, 0.0 }
  0xba   : > { %v565_v45 = vmax.f32 %v480_v41, 0.0 }
  0xbb   : > { %613 = vst.msk [vmem:[#allocation2 + $0x109] sm:$0xff] %vm254_vm1, %v580_v40  ;;  %3546 = vmatmul.msk.f32.gmra.mxu2 %vm254_vm1, %v3611_v26  ;;  %v3613_v47 = vld [vmem:[#allocation2 + $0x48] sm:$0xff] }
  0xbc   : > { %598 = vst.msk [vmem:[#allocation2 + $0x51] sm:$0xff] %vm254_vm1, %v565_v45  ;;  %3661 = vmatmul.msk.f32.gmra.mxu0 %vm254_vm1, %v3613_v47  ;;  %v1788_v58 = vrot.slane %v3613_v47, 1  ;;  %v2082_v61 = vrot.slane %v3613_v47, 2 }
  0xbe   : > { %v527_v48 = vpop.f32.mrf.mxu2 }
  0xbf   : > { %v528_v49 = vadd.f32 %v4186_v42, %v527_v48  ;;  %v482_v51 = vpop.f32.mrf.mxu0  ;;  %3513 = vmatmul.msk.f32.gmra.mxu1 %vm254_vm1, %v740_v50 }
  0xc0   : > { %v483_v53 = vadd.f32 %v4186_v42, %v482_v51 }
  0xc1   : > { %v581_v52 = vmax.f32 %v528_v49, 0.0 }
  0xc2   : > { %v566_v54 = vmax.f32 %v483_v53, 0.0 }
  0xc3   : > { %614 = vst.msk [vmem:[#allocation2 + $0x111] sm:$0xff] %vm254_vm1, %v581_v52  ;;  %3547 = vmatmul.msk.f32.gmra.mxu2 %vm254_vm1, %v3613_v47  ;;  %v3614_v55 = vld [vmem:[#allocation2 + $0x50] sm:$0xff]  ;;  %v639_v56 = vld [vmem:[#allocation2 + $0x58] sm:$0x3] }
  0xc4   : > { %v4316_v57 = vld [vmem:[#allocation2 + $0x58] sm:$0x3]  ;;  %599 = vst.msk [vmem:[#allocation2 + $0x61] sm:$0xff] %vm254_vm1, %v566_v54  ;;  %3662 = vmatmul.msk.f32.gmra.mxu0 %vm254_vm1, %v3614_v55  ;;  %v4320_v59 = vrot.slane %v3614_v55, 1  ;;  %v2083_v60 = vrot.slane %v3614_v55, 2  ;;  %v1189_v1 = vrot.slane %v639_v56, 2 }
  0xc5   : > { %v2085_v63 = vrot.slane %v4316_v57, 2  ;;  %v744_v16 = vrot.slane %v639_v56, 1 }
  0xc6   : > { %v530_v62 = vpop.f32.mrf.mxu2  ;;  %v4326_v4 = vsel %vm725_vm2, %v1788_v58, %v4320_v59  ;;  %v4331_v6 = vsel %vm1170_vm4, %v2082_v61, %v2083_v60  ;;  %v4338_v13 = vsel %vm1170_vm4, %v2083_v60, %v1189_v1 }
  0xc7   : > { %v531_v3 = vadd.f32 %v4186_v42, %v530_v62  ;;  %v485_v5 = vpop.f32.mrf.mxu0  ;;  %3514 = vmatmul.msk.f32.gmra.mxu1 %vm254_vm1, %v4326_v4  ;;  %v4335_v10 = vsel %vm1170_vm4, %v2083_v60, %v2085_v63  ;;  %v745_v20 = vsel %vm725_vm2, %v4320_v59, %v744_v16 }
  0xc8   : > { %v486_v8 = vadd.f32 %v4186_v42, %v485_v5 }
  0xc9   : > { %v582_v7 = vmax.f32 %v531_v3, 0.0 }
  0xca   : > { %v567_v14 = vmax.f32 %v486_v8, 0.0 }
  0xcb   : > { %615 = vst.msk [vmem:[#allocation2 + $0x121] sm:$0xff] %vm254_vm1, %v582_v7  ;;  %3548 = vmatmul.msk.f32.gmra.mxu2 %vm254_vm1, %v3614_v55  ;;  %v3616_v17 = vld [vmem:[#allocation2 + $0x60] sm:$0xff] }
  0xcc   : > { %600 = vst.msk [vmem:[#allocation2 + $0x69] sm:$0xff] %vm254_vm1, %v567_v14  ;;  %3663 = vmatmul.msk.f32.gmra.mxu0 %vm254_vm1, %v3616_v17  ;;  %v1793_v29 = vrot.slane %v3616_v17, 1  ;;  %v2087_v33 = vrot.slane %v3616_v17, 2 }
  0xce   : > { %v533_v18 = vpop.f32.mrf.mxu2 }
  0xcf   : > { %v534_v19 = vadd.f32 %v4186_v42, %v533_v18  ;;  %v488_v21 = vpop.f32.mrf.mxu0  ;;  %3515 = vmatmul.msk.f32.gmra.mxu1 %vm254_vm1, %v745_v20 }
  0xd0   : > { %v489_v23 = vadd.f32 %v4186_v42, %v488_v21 }
  0xd1   : > { %v583_v22 = vmax.f32 %v534_v19, 0.0 }
  0xd2   : > { %v568_v24 = vmax.f32 %v489_v23, 0.0 }
  0xd3   : > { %616 = vst.msk [vmem:[#allocation2 + $0x129] sm:$0xff] %vm254_vm1, %v583_v22  ;;  %3549 = vmatmul.msk.f32.gmra.mxu2 %vm254_vm1, %v3616_v17  ;;  %v3617_v25 = vld [vmem:[#allocation2 + $0x68] sm:$0xff]  ;;  %v642_v26 = vld [vmem:[#allocation2 + $0x70] sm:$0x3] }
  0xd4   : > { %v4351_v27 = vld [vmem:[#allocation2 + $0x70] sm:$0x3]  ;;  %601 = vst.msk [vmem:[#allocation2 + $0x79] sm:$0xff] %vm254_vm1, %v568_v24  ;;  %3664 = vmatmul.msk.f32.gmra.mxu0 %vm254_vm1, %v3617_v25  ;;  %v4355_v31 = vrot.slane %v3617_v25, 1  ;;  %v2088_v32 = vrot.slane %v3617_v25, 2  ;;  %v1194_v36 = vrot.slane %v642_v26, 2 }
  0xd5   : > { %v2090_v35 = vrot.slane %v4351_v27, 2  ;;  %v749_v51 = vrot.slane %v642_v26, 1 }
  0xd6   : > { %v536_v34 = vpop.f32.mrf.mxu2  ;;  %v4361_v40 = vsel %vm725_vm2, %v1793_v29, %v4355_v31  ;;  %v4366_v45 = vsel %vm1170_vm4, %v2087_v33, %v2088_v32  ;;  %v4373_v49 = vsel %vm1170_vm4, %v2088_v32, %v1194_v36 }
  0xd7   : > { %v537_v38 = vadd.f32 %v4186_v42, %v536_v34  ;;  %v491_v41 = vpop.f32.mrf.mxu0  ;;  %3516 = vmatmul.msk.f32.gmra.mxu1 %vm254_vm1, %v4361_v40  ;;  %v4370_v48 = vsel %vm1170_vm4, %v2088_v32, %v2090_v35  ;;  %6136 = vst [vmem:[#allocation3_spill] sm:$0xff] %v4373_v49  ;;  %v750_v55 = vsel %vm725_vm2, %v4355_v31, %v749_v51 }
  0xd8   : > { %v492_v47 = vadd.f32 %v4186_v42, %v491_v41 }
  0xd9   : > { %v584_v46 = vmax.f32 %v537_v38, 0.0 }
  0xda   : > { %v569_v50 = vmax.f32 %v492_v47, 0.0 }
  0xdb   : > { %617 = vst.msk [vmem:[#allocation2 + $0x139] sm:$0xff] %vm254_vm1, %v584_v46  ;;  %3550 = vmatmul.msk.f32.gmra.mxu2 %vm254_vm1, %v3617_v25  ;;  %v3619_v52 = vld [vmem:[#allocation2 + $0x78] sm:$0xff] }
  0xdc   : > { %602 = vst.msk [vmem:[#allocation2 + $0x81] sm:$0xff] %vm254_vm1, %v569_v50  ;;  %3665 = vmatmul.msk.f32.gmra.mxu0 %vm254_vm1, %v3619_v52  ;;  %v1798_v3 = vrot.slane %v3619_v52, 1  ;;  %v2092_v8 = vrot.slane %v3619_v52, 2 }
  0xde   : > { %v539_v53 = vpop.f32.mrf.mxu2 }
  0xdf   : > { %v540_v54 = vadd.f32 %v4186_v42, %v539_v53  ;;  %v494_v56 = vpop.f32.mrf.mxu0  ;;  %3517 = vmatmul.msk.f32.gmra.mxu1 %vm254_vm1, %v750_v55 }
  0xe0   : > { %v495_v60 = vadd.f32 %v4186_v42, %v494_v56  ;;  %v3689_v56 = vld [vmem:[%s6120_s3 + $0x10] sm:$0xf] }
  0xe1   : > { %v585_v58 = vmax.f32 %v540_v54, 0.0  ;;  %3690 = vmatpush.msk.msrb.mxu1 %vm443_vm0, %v3689_v56 }
  0xe2   : > { %v570_v61 = vmax.f32 %v495_v60, 0.0 }
  0xe3   : > { %618 = vst.msk [vmem:[#allocation2 + $0x141] sm:$0xff] %vm254_vm1, %v585_v58  ;;  %3551 = vmatmul.msk.f32.gmra.mxu2 %vm254_vm1, %v3619_v52  ;;  %v3620_v62 = vld [vmem:[#allocation2 + $0x80] sm:$0xff]  ;;  %v645_v63 = vld [vmem:[#allocation2 + $0x88] sm:$0x3] }
  0xe4   : > { %v4386_v1 = vld [vmem:[#allocation2 + $0x88] sm:$0x3]  ;;  %603 = vst.msk [vmem:[#allocation2 + $0x91] sm:$0xff] %vm254_vm1, %v570_v61  ;;  %3666 = vmatmul.msk.f32.gmra.mxu0 %vm254_vm1, %v3620_v62  ;;  %v4390_v5 = vrot.slane %v3620_v62, 1  ;;  %v2093_v7 = vrot.slane %v3620_v62, 2  ;;  %v1199_v17 = vrot.slane %v645_v63, 2 }
  0xe5   : > { %v2095_v16 = vrot.slane %v4386_v1, 2  ;;  %v754_v29 = vrot.slane %v645_v63, 1 }
  0xe6   : > { %v542_v14 = vpop.f32.mrf.mxu2  ;;  %v4396_v19 = vsel %vm725_vm2, %v1798_v3, %v4390_v5  ;;  %v4401_v21 = vsel %vm1170_vm4, %v2092_v8, %v2093_v7  ;;  %v4408_v25 = vsel %vm1170_vm4, %v2093_v7, %v1199_v17  ;;  %v3573_v3 = vld [vmem:[%s6120_s3 + $0x8] sm:$0xf] }
  0xe7   : > { %v543_v18 = vadd.f32 %v4186_v42, %v542_v14  ;;  %v497_v20 = vpop.f32.mrf.mxu0  ;;  %3518 = vmatmul.msk.f32.gmra.mxu1 %vm254_vm1, %v4396_v19  ;;  %v4405_v24 = vsel %vm1170_vm4, %v2093_v7, %v2095_v16  ;;  %6137 = vst [vmem:[#allocation4_spill] sm:$0xff] %v4408_v25  ;;  %v755_v35 = vsel %vm725_vm2, %v4390_v5, %v754_v29 }
  0xe8   : > { %v498_v23 = vadd.f32 %v4186_v42, %v497_v20  ;;  %3574 = vmatpush.msk.msrb.mxu3 %vm443_vm0, %v3573_v3 }
  0xe9   : > { %v586_v22 = vmax.f32 %v543_v18, 0.0 }
  0xea   : > { %v571_v26 = vmax.f32 %v498_v23, 0.0 }
  0xeb   : > { %619 = vst.msk [vmem:[#allocation2 + $0x151] sm:$0xff] %vm254_vm1, %v586_v22  ;;  %3552 = vmatmul.msk.f32.gmra.mxu2 %vm254_vm1, %v3620_v62  ;;  %v3622_v32 = vld [vmem:[#allocation2 + $0x90] sm:$0xff]  ;;  %v4452_v22 = vld [vmem:[#allocation2 + $0xd8] sm:$0xff] }
  0xec   : > { %604 = vst.msk [vmem:[#allocation2 + $0x99] sm:$0xff] %vm254_vm1, %v571_v26  ;;  %3667 = vmatmul.msk.f32.gmra.mxu0 %vm254_vm1, %v3622_v32  ;;  %v1803_v51 = vrot.slane %v3622_v32, 1  ;;  %v2097_v54 = vrot.slane %v3622_v32, 2  ;;  %v1818_v29 = vrot.slane %v4452_v22, 1 }
  0xee   : > { %v545_v33 = vpop.f32.mrf.mxu2 }
  0xef   : > { %v546_v34 = vadd.f32 %v4186_v42, %v545_v33  ;;  %v500_v36 = vpop.f32.mrf.mxu0  ;;  %3519 = vmatmul.msk.f32.gmra.mxu1 %vm254_vm1, %v755_v35 }
  0xf0   : > { %v501_v41 = vadd.f32 %v4186_v42, %v500_v36 }
  0xf1   : > { %v587_v38 = vmax.f32 %v546_v34, 0.0 }
  0xf2   : > { %v572_v46 = vmax.f32 %v501_v41, 0.0 }
  0xf3   : > { %620 = vst.msk [vmem:[#allocation2 + $0x159] sm:$0xff] %vm254_vm1, %v587_v38  ;;  %3553 = vmatmul.msk.f32.gmra.mxu2 %vm254_vm1, %v3622_v32  ;;  %v3623_v47 = vld [vmem:[#allocation2 + $0x98] sm:$0xff]  ;;  %v4421_v50 = vld [vmem:[#allocation2 + $0xa0] sm:$0x3]  ;;  %v4468_v38 = vld [vmem:[#allocation2 + $0xe8] sm:$0x3] }
  0xf4   : > { %605 = vst.msk [vmem:[#allocation2 + $0xa9] sm:$0xff] %vm254_vm1, %v572_v46  ;;  %3668 = vmatmul.msk.f32.gmra.mxu0 %vm254_vm1, %v3623_v47  ;;  %v4425_v52 = vrot.slane %v3623_v47, 1  ;;  %v2098_v53 = vrot.slane %v3623_v47, 2  ;;  %v2100_v58 = vrot.slane %v4421_v50, 2  ;;  %v648_v62 = vld [vmem:[#allocation2 + $0xa0] sm:$0x3] }
  0xf5   : > { %v1204_v17 = vrot.slane %v648_v62, 2  ;;  %v759_v20 = vrot.slane %v648_v62, 1  ;;  %v4460_v32 = vld [vmem:[#allocation2 + $0xe0] sm:$0xff]  ;;  %v2112_v46 = vrot.slane %v4452_v22, 2 }
  0xf6   : > { %v548_v55 = vpop.f32.mrf.mxu2  ;;  %v4434_v61 = vsel %vm725_vm2, %v1803_v51, %v4425_v52  ;;  %v4443_v7 = vsel %vm1170_vm4, %v2097_v54, %v2098_v53  ;;  %v4448_v16 = vsel %vm1170_vm4, %v2098_v53, %v2100_v58  ;;  %v4463_v34 = vrot.slane %v4460_v32, 1  ;;  %v4481_v58 = vld [vmem:[#allocation2 + $0xe8] sm:$0x3] }
  0xf7   : > { %v549_v60 = vadd.f32 %v4186_v42, %v548_v55  ;;  %v503_v63 = vpop.f32.mrf.mxu0  ;;  %3520 = vmatmul.msk.f32.gmra.mxu1 %vm254_vm1, %v4434_v61  ;;  %6138 = vst [vmem:[#allocation5_spill] sm:$0xff] %v4443_v7  ;;  %v4455_v26 = vsel %vm1170_vm4, %v2098_v53, %v1204_v17  ;;  %v760_v36 = vsel %vm725_vm2, %v4425_v52, %v759_v20  ;;  %v2115_v55 = vrot.slane %v4468_v38, 2 }
  0xf8   : > { %v504_v14 = vadd.f32 %v4186_v42, %v503_v63  ;;  %6139 = vst [vmem:[#allocation6_spill] sm:$0xff] %v4448_v16  ;;  %v4475_v51 = vsel %vm725_vm2, %v1818_v29, %v4463_v34 }
  0xf9   : > { %v588_v8 = vmax.f32 %v549_v60, 0.0  ;;  %6140 = vst [vmem:[#allocation7_spill] sm:$0xff] %v4455_v26 }
  0xfa   : > { %v573_v18 = vmax.f32 %v504_v14, 0.0 }
  0xfb   : > { %621 = vst.msk [vmem:[#allocation2 + $0x169] sm:$0xff] %vm254_vm1, %v588_v8  ;;  %3554 = vmatmul.msk.f32.gmra.mxu2 %vm254_vm1, %v3623_v47  ;;  %v3625_v23 = vld [vmem:[#allocation2 + $0xa8] sm:$0xff]  ;;  %v2113_v47 = vrot.slane %v4460_v32, 2 }
  0xfc   : > { %606 = vst.msk [vmem:[#allocation2 + $0xb1] sm:$0xff] %vm254_vm1, %v573_v18  ;;  %3669 = vmatmul.msk.f32.gmra.mxu0 %vm254_vm1, %v3625_v23  ;;  %v1808_v60 = vrot.slane %v3625_v23, 1  ;;  %v2102_v17 = vrot.slane %v3625_v23, 2 }
  0xfd   : > { %v4486_v8 = vsel %vm1170_vm4, %v2112_v46, %v2113_v47  ;;  %v4489_v14 = vsel %vm1170_vm4, %v2113_v47, %v2115_v55 }
  0xfe   : > { %v551_v33 = vpop.f32.mrf.mxu2  ;;  %6141 = vst [vmem:[#allocation8_spill] sm:$0xff] %v4486_v8 }
  0xff   : > { %v552_v35 = vadd.f32 %v4186_v42, %v551_v33  ;;  %v506_v41 = vpop.f32.mrf.mxu0  ;;  %3521 = vmatmul.msk.f32.gmra.mxu1 %vm254_vm1, %v760_v36  ;;  %6142 = vst [vmem:[#allocation9_spill] sm:$0xff] %v4489_v14  ;;  %v1219_v36 = vrot.slane %v4481_v58, 2 }
 0x100   : > { %v507_v54 = vadd.f32 %v4186_v42, %v506_v41 }
 0x101   : > { %v589_v53 = vmax.f32 %v552_v35, 0.0 }
 0x102   : > { %v574_v56 = vmax.f32 %v507_v54, 0.0 }
 0x103   : > { %622 = vst.msk [vmem:[#allocation2 + $0x171] sm:$0xff] %vm254_vm1, %v589_v53  ;;  %3555 = vmatmul.msk.f32.gmra.mxu2 %vm254_vm1, %v3625_v23  ;;  %v3626_v62 = vld [vmem:[#allocation2 + $0xb0] sm:$0xff]  ;;  %v651_v63 = vld [vmem:[#allocation2 + $0xb8] sm:$0x3] }
 0x104   : > { %v4483_v3 = vld [vmem:[#allocation2 + $0xb8] sm:$0x3]  ;;  %607 = vst.msk [vmem:[#allocation2 + $0xc1] sm:$0xff] %vm254_vm1, %v574_v56  ;;  %3670 = vmatmul.msk.f32.gmra.mxu0 %vm254_vm1, %v3626_v62  ;;  %v4493_v18 = vrot.slane %v3626_v62, 1  ;;  %v2103_v20 = vrot.slane %v3626_v62, 2  ;;  %v1209_v35 = vrot.slane %v651_v63, 2 }
 0x105   : > { %v2105_v33 = vrot.slane %v4483_v3, 2  ;;  %v764_v8 = vrot.slane %v651_v63, 1 }
 0x106   : > { %v554_v29 = vpop.f32.mrf.mxu2  ;;  %v4500_v46 = vsel %vm725_vm2, %v1808_v60, %v4493_v18  ;;  %v4505_v53 = vsel %vm1170_vm4, %v2102_v17, %v2103_v20  ;;  %v4512_v14 = vsel %vm1170_vm4, %v2103_v20, %v1209_v35 }
 0x107   : > { %v555_v41 = vadd.f32 %v4186_v42, %v554_v29  ;;  %v509_v23 = vpop.f32.mrf.mxu0  ;;  %3522 = vmatmul.msk.f32.gmra.mxu1 %vm254_vm1, %v4500_v46  ;;  %6143 = vst [vmem:[#allocation10_spill] sm:$0xff] %v4505_v53  ;;  %v4509_v56 = vsel %vm1170_vm4, %v2103_v20, %v2105_v33  ;;  %v4515_v29 = vsel %vm1170_vm4, %v2113_v47, %v1219_v36  ;;  %v4523_v33 = vld [vmem:[#allocation2 + $0xf8] sm:$0xff] }
 0x108   : > { %v510_v55 = vadd.f32 %v4186_v42, %v509_v23  ;;  %6144 = vst [vmem:[#allocation11_spill] sm:$0xff] %v4509_v56  ;;  %v4527_v47 = vrot.slane %v4523_v33, 1  ;;  %v2118_v23 = vrot.slane %v4523_v33, 2 }
 0x109   : > { %v590_v54 = vmax.f32 %v555_v41, 0.0  ;;  %6145 = vst [vmem:[#allocation12_spill] sm:$0xff] %v4512_v14  ;;  %v4521_v41 = vld [vmem:[#allocation2 + $0xf0] sm:$0xff] }
 0x10a   : > { %6146 = vst [vmem:[#allocation13_spill] sm:$0xff] %v4515_v29  ;;  %v575_v60 = vmax.f32 %v510_v55, 0.0  ;;  %v1823_v35 = vrot.slane %v4521_v41, 1  ;;  %v2117_v63 = vrot.slane %v4521_v41, 2  ;;  %v4535_v55 = vpop.f32.mrf.mxu1  ;;  %v4541_v29 = vld [vmem:[#allocation2 + $0x100] sm:$0x3] }
 0x10b   : > { %623 = vst.msk [vmem:[#allocation2 + $0x181] sm:$0xff] %vm254_vm1, %v590_v54  ;;  %3556 = vmatmul.msk.f32.gmra.mxu2 %vm254_vm1, %v3626_v62  ;;  %v3628_v17 = vld [vmem:[#allocation2 + $0xc0] sm:$0xff]  ;;  %v765_v62 = vsel %vm725_vm2, %v4493_v18, %v764_v8  ;;  %v2120_v56 = vrot.slane %v4541_v29, 2 }
 0x10c   : > { %608 = vst.msk [vmem:[#allocation2 + $0xc9] sm:$0xff] %vm254_vm1, %v575_v60  ;;  %3671 = vmatmul.msk.f32.gmra.mxu0 %vm254_vm1, %v3628_v17  ;;  %v4539_v60 = vsel %vm725_vm2, %v1823_v35, %v4527_v47  ;;  %v1813_v14 = vrot.slane %v3628_v17, 1  ;;  %v2107_v8 = vrot.slane %v3628_v17, 2 }
 0x10d   : > { %6147 = vst [vmem:[#allocation14_spill] sm:$0xff] %v4535_v55 }
 0x10e   : > { %v557_v20 = vpop.f32.mrf.mxu2 }
 0x10f   : > { %v558_v36 = vadd.f32 %v4186_v42, %v557_v20  ;;  %3523 = vmatmul.msk.f32.gmra.mxu1 %vm254_vm1, %v765_v62  ;;  %v4545_v42 = vld [vmem:[#allocation2 + $0x100] sm:$0x3] }
 0x111   : > { %v591_v54 = vmax.f32 %v558_v36, 0.0  ;;  %v4550_v36 = vsel %vm1170_vm4, %v2117_v63, %v2118_v23 }
 0x112   : > { %6148 = vst [vmem:[#allocation15_spill] sm:$0xff] %v4550_v36 }
 0x113   : > { %624 = vst.msk [vmem:[#allocation2 + $0x189] sm:$0xff] %vm254_vm1, %v591_v54  ;;  %3557 = vmatmul.msk.f32.gmra.mxu2 %vm254_vm1, %v3628_v17  ;;  %v3629_v20 = vld [vmem:[#allocation2 + $0xc8] sm:$0xff]  ;;  %v654_v62 = vld [vmem:[#allocation2 + $0xd0] sm:$0x3]  ;;  %v1224_v17 = vrot.slane %v4545_v42, 2 }
 0x114   : > { %v4547_v26 = vld [vmem:[#allocation2 + $0xd0] sm:$0x3]  ;;  %3672 = vmatmul.msk.f32.gmra.mxu0 %vm254_vm1, %v3629_v20  ;;  %v4553_v35 = vrot.slane %v3629_v20, 1  ;;  %v2108_v55 = vrot.slane %v3629_v20, 2  ;;  %v1214_v25 = vrot.slane %v654_v62, 2 }
 0x115   : > { %v2110_v53 = vrot.slane %v4547_v26, 2  ;;  %v4583_v49 = vsel %vm1170_vm4, %v2118_v23, %v1224_v17 }
 0x116   : > { %v4556_v54 = vpop.f32.mrf.mxu2  ;;  %v4562_v16 = vsel %vm725_vm2, %v1813_v14, %v4553_v35  ;;  %v4569_v63 = vsel %vm1170_vm4, %v2107_v8, %v2108_v55  ;;  %v4580_v14 = vsel %vm1170_vm4, %v2118_v23, %v2120_v56  ;;  %6152 = vst [vmem:[#allocation19_spill] sm:$0xff] %v4583_v49  ;;  %v769_v8 = vrot.slane %v654_v62, 1  ;;  %v4609_v49 = vld [vmem:[#allocation2 + $0x118] sm:$0x3] }
 0x117   : > { %6149 = vst [vmem:[#allocation16_spill] sm:$0xff] %v4556_v54  ;;  %3524 = vmatmul.msk.f32.vlgmr.msra.gmra.mxu3 %vm254_vm1, %v4562_v16  ;;  %3691 = vmatmul.msk.f32.vlgmr.msrb.gmra.mxu1 %vm254_vm1, %v4256_v9  ;;  %v4572_v36 = vsel %vm1170_vm4, %v2108_v55, %v2110_v53  ;;  %v4575_v54 = vsel %vm1170_vm4, %v2108_v55, %v1214_v25  ;;  %v4586_v9 = vpop.f32.mrf.mxu1  ;;  %v4591_v25 = vld [vmem:[#allocation2 + $0x108] sm:$0xff]  ;;  %v4593_v53 = vld [vmem:[#allocation2 + $0x110] sm:$0xff] }
 0x118   : > { %6150 = vst [vmem:[#allocation17_spill] sm:$0xff] %v4569_v63  ;;  %v1781_v63 = vrot.slane %v4246_v0, 1  ;;  %v1828_v56 = vrot.slane %v4591_v25, 1  ;;  %v4599_v23 = vrot.slane %v4593_v53, 1  ;;  %v2122_v62 = vrot.slane %v4591_v25, 2 }
 0x119   : > { %v4577_v7 = vpop.f32.mrf.mxu0  ;;  %6151 = vst [vmem:[#allocation18_spill] sm:$0xff] %v4580_v14  ;;  %v2123_v17 = vrot.slane %v4593_v53, 2  ;;  %v4611_v14 = vld [vmem:[#allocation2 + $0x118] sm:$0x3] }
 0x11a   : > { %6153 = vst [vmem:[#allocation20_spill] sm:$0xff] %v4586_v9  ;;  %v1782_v0 = vsel %vm725_vm2, %v4250_v2, %v1781_v63  ;;  %v2125_v2 = vrot.slane %v4611_v14, 2  ;;  %v1229_v63 = vrot.slane %v4609_v49, 2 }
 0x11b   : > { %3558 = vmatmul.msk.f32.gmra.mxu2 %vm254_vm1, %v3629_v20  ;;  %v770_v20 = vsel %vm725_vm2, %v4553_v35, %v769_v8  ;;  %v4617_v8 = vsel %vm725_vm2, %v1828_v56, %v4599_v23 }
 0x11c   : > { %3673 = vmatmul.msk.f32.gmra.mxu0 %vm254_vm1, %v4452_v22  ;;  %v4634_v56 = vsel %vm1170_vm4, %v2123_v17, %v1229_v63  ;;  %v4654_v63 = vld [vmem:[#allocation2 + $0x128] sm:$0xff] }
 0x11d   : > { %6159 = vst [vmem:[#allocation26_spill] sm:$0xff] %v4634_v56 }
 0x11e   : > { %v4595_v55 = vpop.f32.mrf.mxu2 }
 0x11f   : > { %6154 = vst [vmem:[#allocation21_spill] sm:$0xff] %v4595_v55  ;;  %3525 = vmatmul.msk.f32.gmra.mxu3 %vm254_vm1, %v770_v20  ;;  %3692 = vmatmul.msk.f32.gmra.mxu1 %vm254_vm1, %v1782_v0  ;;  %v4624_v20 = vsel %vm1170_vm4, %v2122_v62, %v2123_v17  ;;  %v774_v62 = vrot.slane %v4481_v58, 1 }
 0x120   : > { %6156 = vst [vmem:[#allocation23_spill] sm:$0xff] %v4624_v20  ;;  %v4660_v20 = vrot.slane %v4654_v63, 1 }
 0x121   : > { %v4613_v55 = vpop.f32.mrf.mxu0 }
 0x122   : > { %6155 = vst [vmem:[#allocation22_spill] sm:$0xff] %v4613_v55  ;;  %v4631_v55 = vsel %vm1170_vm4, %v2123_v17, %v2125_v2  ;;  %v1786_v2 = vrot.slane %v4281_v28, 1  ;;  %v4652_v17 = vld [vmem:[#allocation2 + $0x120] sm:$0xff] }
 0x123   : > { %3559 = vmatmul.msk.f32.gmra.mxu2 %vm254_vm1, %v4452_v22  ;;  %6158 = vst [vmem:[#allocation25_spill] sm:$0xff] %v4631_v55  ;;  %v2127_v58 = vrot.slane %v4652_v17, 2 }
 0x124   : > { %v4626_v0 = vpop.f32.mrf.mxu1  ;;  %3674 = vmatmul.msk.f32.gmra.mxu0 %vm254_vm1, %v4460_v32  ;;  %v1787_v28 = vsel %vm725_vm2, %v4285_v30, %v1786_v2 }
 0x125   : > { %6157 = vst [vmem:[#allocation24_spill] sm:$0xff] %v4626_v0 }
 0x126   : > { %v4636_v9 = vpop.f32.mrf.mxu2 }
 0x127   : > { %6160 = vst [vmem:[#allocation27_spill] sm:$0xff] %v4636_v9  ;;  %3526 = vmatmul.msk.f32.gmra.mxu3 %vm254_vm1, %v4475_v51  ;;  %3693 = vmatmul.msk.f32.gmra.mxu1 %vm254_vm1, %v4291_v37  ;;  %v1833_v37 = vrot.slane %v4652_v17, 1 }
 0x129   : > { %v4642_v22 = vpop.f32.mrf.mxu0 }
 0x12a   : > { %6161 = vst [vmem:[#allocation28_spill] sm:$0xff] %v4642_v22  ;;  %v4672_v22 = vld [vmem:[#allocation2 + $0x130] sm:$0x3] }
 0x12b   : > { %3560 = vmatmul.msk.f32.gmra.mxu2 %vm254_vm1, %v4460_v32  ;;  %v775_v32 = vsel %vm725_vm2, %v4463_v34, %v774_v62  ;;  %v4678_v62 = vsel %vm725_vm2, %v1833_v37, %v4660_v20  ;;  %v2130_v30 = vrot.slane %v4672_v22, 2 }
 0x12c   : > { %v4648_v55 = vpop.f32.mrf.mxu1  ;;  %3675 = vmatmul.msk.f32.gmra.mxu0 %vm254_vm1, %v4521_v41 }
 0x12d   : > { %6162 = vst [vmem:[#allocation29_spill] sm:$0xff] %v4648_v55  ;;  %v2128_v55 = vrot.slane %v4654_v63, 2 }
 0x12e   : > { %v4656_v56 = vpop.f32.mrf.mxu2 }
 0x12f   : > { %6163 = vst [vmem:[#allocation30_spill] sm:$0xff] %v4656_v56  ;;  %3527 = vmatmul.msk.f32.gmra.mxu3 %vm254_vm1, %v775_v32  ;;  %3694 = vmatmul.msk.f32.gmra.mxu1 %vm254_vm1, %v1787_v28  ;;  %v4670_v56 = vld [vmem:[#allocation2 + $0x130] sm:$0x3]  ;;  %v4685_v32 = vsel %vm1170_vm4, %v2127_v58, %v2128_v55  ;;  %v779_v58 = vrot.slane %v4545_v42, 1 }
 0x130   : > { %v1234_v2 = vrot.slane %v4670_v56, 2  ;;  %6165 = vst [vmem:[#allocation32_spill] sm:$0xff] %v4685_v32 }
 0x131   : > { %v4674_v9 = vpop.f32.mrf.mxu0 }
 0x132   : > { %6164 = vst [vmem:[#allocation31_spill] sm:$0xff] %v4674_v9  ;;  %v4692_v9 = vsel %vm1170_vm4, %v2128_v55, %v2130_v30  ;;  %v4695_v37 = vsel %vm1170_vm4, %v2128_v55, %v1234_v2  ;;  %v1791_v30 = vrot.slane %v4316_v57, 1  ;;  %v4713_v55 = vld [vmem:[#allocation2 + $0x138] sm:$0xff]  ;;  %v4715_v2 = vld [vmem:[#allocation2 + $0x140] sm:$0xff] }
 0x133   : > { %3561 = vmatmul.msk.f32.gmra.mxu2 %vm254_vm1, %v4521_v41  ;;  %6167 = vst [vmem:[#allocation34_spill] sm:$0xff] %v4692_v9  ;;  %v4721_v32 = vrot.slane %v4715_v2, 1  ;;  %v2132_v42 = vrot.slane %v4713_v55, 2 }
 0x134   : > { %v4687_v28 = vpop.f32.mrf.mxu1  ;;  %3676 = vmatmul.msk.f32.gmra.mxu0 %vm254_vm1, %v4523_v33  ;;  %6168 = vst [vmem:[#allocation35_spill] sm:$0xff] %v4695_v37  ;;  %v1792_v57 = vsel %vm725_vm2, %v4320_v59, %v1791_v30 }
 0x135   : > { %6166 = vst [vmem:[#allocation33_spill] sm:$0xff] %v4687_v28 }
 0x136   : > { %v4697_v0 = vpop.f32.mrf.mxu2 }
 0x137   : > { %6169 = vst [vmem:[#allocation36_spill] sm:$0xff] %v4697_v0  ;;  %3528 = vmatmul.msk.f32.gmra.mxu3 %vm254_vm1, %v4539_v60  ;;  %3695 = vmatmul.msk.f32.gmra.mxu1 %vm254_vm1, %v4326_v4  ;;  %v1838_v4 = vrot.slane %v4713_v55, 1 }
 0x139   : > { %v4703_v41 = vpop.f32.mrf.mxu0  ;;  %v4737_v0 = vsel %vm725_vm2, %v1838_v4, %v4721_v32 }
 0x13a   : > { %6170 = vst [vmem:[#allocation37_spill] sm:$0xff] %v4703_v41  ;;  %v4733_v41 = vld [vmem:[#allocation2 + $0x148] sm:$0x3] }
 0x13b   : > { %3562 = vmatmul.msk.f32.gmra.mxu2 %vm254_vm1, %v4523_v33  ;;  %v780_v33 = vsel %vm725_vm2, %v4527_v47, %v779_v58  ;;  %v2135_v59 = vrot.slane %v4733_v41, 2 }
 0x13c   : > { %v4709_v9 = vpop.f32.mrf.mxu1  ;;  %3677 = vmatmul.msk.f32.gmra.mxu0 %vm254_vm1, %v4591_v25 }
 0x13d   : > { %6171 = vst [vmem:[#allocation38_spill] sm:$0xff] %v4709_v9  ;;  %v2133_v9 = vrot.slane %v4715_v2, 2 }
 0x13e   : > { %v4717_v37 = vpop.f32.mrf.mxu2 }
 0x13f   : > { %6172 = vst [vmem:[#allocation39_spill] sm:$0xff] %v4717_v37  ;;  %3529 = vmatmul.msk.f32.gmra.mxu3 %vm254_vm1, %v780_v33  ;;  %3696 = vmatmul.msk.f32.gmra.mxu1 %vm254_vm1, %v1792_v57  ;;  %v4731_v37 = vld [vmem:[#allocation2 + $0x148] sm:$0x3]  ;;  %v4744_v30 = vsel %vm1170_vm4, %v2132_v42, %v2133_v9  ;;  %v4753_v4 = vsel %vm1170_vm4, %v2133_v9, %v2135_v59  ;;  %v784_v42 = vrot.slane %v4609_v49, 1 }
 0x140   : > { %v1239_v58 = vrot.slane %v4731_v37, 2  ;;  %6173 = vst [vmem:[#allocation40_spill] sm:$0xff] %v4744_v30  ;;  %v1796_v30 = vrot.slane %v4351_v27, 1 }
 0x141   : > { %v4746_v33 = vpop.f32.mrf.mxu0  ;;  %6176 = vst [vmem:[#allocation43_spill] sm:$0xff] %v4753_v4  ;;  %v785_v27 = vsel %vm725_vm2, %v4599_v23, %v784_v42 }
 0x142   : > { %6174 = vst [vmem:[#allocation41_spill] sm:$0xff] %v4746_v33  ;;  %v4756_v28 = vsel %vm1170_vm4, %v2133_v9, %v1239_v58  ;;  %v4772_v9 = vld [vmem:[#allocation2 + $0x150] sm:$0xff]  ;;  %v4774_v58 = vld [vmem:[#allocation2 + $0x158] sm:$0xff]  ;;  %v1797_v49 = vsel %vm725_vm2, %v4355_v31, %v1796_v30 }
 0x143   : > { %3563 = vmatmul.msk.f32.gmra.mxu2 %vm254_vm1, %v4591_v25  ;;  %6177 = vst [vmem:[#allocation44_spill] sm:$0xff] %v4756_v28  ;;  %v4780_v4 = vrot.slane %v4774_v58, 1 }
 0x144   : > { %v4748_v57 = vpop.f32.mrf.mxu1  ;;  %3678 = vmatmul.msk.f32.gmra.mxu0 %vm254_vm1, %v4593_v53 }
 0x145   : > { %6175 = vst [vmem:[#allocation42_spill] sm:$0xff] %v4748_v57  ;;  %v4794_v57 = vld [vmem:[#allocation2 + $0x160] sm:$0x3] }
 0x146   : > { %v4758_v25 = vpop.f32.mrf.mxu2 }
 0x147   : > { %6178 = vst [vmem:[#allocation45_spill] sm:$0xff] %v4758_v25  ;;  %3530 = vmatmul.msk.f32.gmra.mxu3 %vm254_vm1, %v4617_v8  ;;  %3697 = vmatmul.msk.f32.gmra.mxu1 %vm254_vm1, %v4361_v40  ;;  %v1843_v40 = vrot.slane %v4772_v9, 1  ;;  %v4792_v25 = vld [vmem:[#allocation2 + $0x160] sm:$0x3] }
 0x148   : > { %v2140_v31 = vrot.slane %v4792_v25, 2 }
 0x14b   : > { %3564 = vmatmul.msk.f32.gmra.mxu2 %vm254_vm1, %v4593_v53  ;;  %v4782_v53 = vpop.f32.mrf.mxu0 }
 0x14c   : > { %v4768_v59 = vpop.f32.mrf.mxu1  ;;  %3679 = vmatmul.msk.f32.gmra.mxu0 %vm254_vm1, %v4652_v17  ;;  %6181 = vst [vmem:[#allocation48_spill] sm:$0xff] %v4782_v53  ;;  %v4798_v53 = vsel %vm725_vm2, %v1843_v40, %v4780_v4 }
 0x14d   : > { %6179 = vst [vmem:[#allocation46_spill] sm:$0xff] %v4768_v59  ;;  %v2137_v59 = vrot.slane %v4772_v9, 2 }
 0x14e   : > { %v4776_v28 = vpop.f32.mrf.mxu2 }
 0x14f   : > { %6180 = vst [vmem:[#allocation47_spill] sm:$0xff] %v4776_v28  ;;  %3531 = vmatmul.msk.f32.gmra.mxu3 %vm254_vm1, %v785_v27  ;;  %3698 = vmatmul.msk.f32.gmra.mxu1 %vm254_vm1, %v1797_v49  ;;  %v2138_v28 = vrot.slane %v4774_v58, 2  ;;  %v1244_v49 = vrot.slane %v4794_v57, 2 }
 0x151   : > { %v4804_v30 = vsel %vm1170_vm4, %v2137_v59, %v2138_v28  ;;  %v4811_v27 = vsel %vm1170_vm4, %v2138_v28, %v2140_v31  ;;  %v4817_v33 = vsel %vm1170_vm4, %v2138_v28, %v1244_v49  ;;  %v789_v59 = vrot.slane %v4670_v56, 1  ;;  %v3649_v28 = vld [vmem:[#allocation2 + $0x168] sm:$0xff]  ;;  %v4833_v49 = vld [vmem:[#allocation2 + $0x170] sm:$0xff] }
 0x152   : > { %6182 = vst [vmem:[#allocation49_spill] sm:$0xff] %v4804_v30  ;;  %v1801_v31 = vrot.slane %v4386_v1, 1  ;;  %v1848_v30 = vrot.slane %v3649_v28, 1  ;;  %v4842_v56 = vrot.slane %v4833_v49, 1  ;;  %v4846_v1 = vld [vmem:[#allocation2 + $0x178] sm:$0x3] }
 0x153   : > { %3565 = vmatmul.msk.f32.gmra.mxu2 %vm254_vm1, %v4652_v17  ;;  %6184 = vst [vmem:[#allocation51_spill] sm:$0xff] %v4811_v27  ;;  %v4823_v17 = vpop.f32.mrf.mxu0 }
 0x154   : > { %v4806_v42 = vpop.f32.mrf.mxu1  ;;  %3680 = vmatmul.msk.f32.gmra.mxu0 %vm254_vm1, %v4654_v63  ;;  %6186 = vst [vmem:[#allocation53_spill] sm:$0xff] %v4817_v33 }
 0x155   : > { %6183 = vst [vmem:[#allocation50_spill] sm:$0xff] %v4806_v42 }
 0x156   : > { %v4814_v40 = vpop.f32.mrf.mxu2 }
 0x157   : > { %6185 = vst [vmem:[#allocation52_spill] sm:$0xff] %v4814_v40  ;;  %3532 = vmatmul.msk.f32.gmra.mxu3 %vm254_vm1, %v4678_v62  ;;  %3699 = vmatmul.msk.f32.gmra.mxu1 %vm254_vm1, %v4396_v19  ;;  %v790_v19 = vsel %vm725_vm2, %v4660_v20, %v789_v59  ;;  %v2143_v59 = vrot.slane %v4833_v49, 2  ;;  %v4853_v40 = vld [vmem:[#allocation2 + $0x178] sm:$0x3] }
 0x15b   : > { %3566 = vmatmul.msk.f32.gmra.mxu2 %vm254_vm1, %v4654_v63  ;;  %v1802_v63 = vsel %vm725_vm2, %v4390_v5, %v1801_v31  ;;  %v4857_v5 = vsel %vm725_vm2, %v1848_v30, %v4842_v56 }
 0x15c   : > { %v4829_v27 = vpop.f32.mrf.mxu1  ;;  %3681 = vmatmul.msk.f32.gmra.mxu0 %vm254_vm1, %v4713_v55 }
 0x15d   : > { %6187 = vst [vmem:[#allocation54_spill] sm:$0xff] %v4829_v27  ;;  %v4848_v27 = vpop.f32.mrf.mxu0 }
 0x15e   : > { %v4835_v33 = vpop.f32.mrf.mxu2  ;;  %6189 = vst [vmem:[#allocation56_spill] sm:$0xff] %v4848_v27 }
 0x15f   : > { %6188 = vst [vmem:[#allocation55_spill] sm:$0xff] %v4835_v33  ;;  %3533 = vmatmul.msk.f32.gmra.mxu3 %vm254_vm1, %v790_v19  ;;  %3700 = vmatmul.msk.f32.gmra.mxu1 %vm254_vm1, %v1802_v63  ;;  %v2142_v33 = vrot.slane %v3649_v28, 2  ;;  %v2145_v19 = vrot.slane %v4846_v1, 2 }
 0x161   : > { %v4868_v27 = vsel %vm1170_vm4, %v2142_v33, %v2143_v59  ;;  %v4871_v42 = vsel %vm1170_vm4, %v2143_v59, %v2145_v19  ;;  %v1806_v33 = vrot.slane %v4421_v50, 1  ;;  %v3723_v50 = vld [vmem:[%s6120_s3 + $0x14] sm:$0xf] }
 0x162   : > { %6191 = vst [vmem:[#allocation58_spill] sm:$0xff] %v4868_v27  ;;  %3724 = vmatpush.msk.msra.mxu2 %vm443_vm0, %v3723_v50 }
 0x163   : > { %3567 = vmatmul.msk.f32.gmra.mxu2 %vm254_vm1, %v4713_v55  ;;  %v1249_v55 = vrot.slane %v4853_v40, 2  ;;  %6192 = vst [vmem:[#allocation59_spill] sm:$0xff] %v4871_v42 }
 0x164   : > { %v4859_v31 = vpop.f32.mrf.mxu1  ;;  %3682 = vmatmul.msk.f32.gmra.mxu0 %vm254_vm1, %v4715_v2 }
 0x165   : > { %v4878_v30 = vsel %vm1170_vm4, %v2143_v59, %v1249_v55  ;;  %v4884_v27 = vpop.f32.mrf.mxu0  ;;  %v1807_v59 = vsel %vm725_vm2, %v4425_v52, %v1806_v33  ;;  %v1811_v55 = vrot.slane %v4483_v3, 1  ;;  %v3839_v33 = vld [vmem:[%s6120_s3 + $0x1c] sm:$0xf] }
 0x166   : > { %v4864_v63 = vpop.f32.mrf.mxu2  ;;  %6193 = vst [vmem:[#allocation60_spill] sm:$0xff] %v4878_v30  ;;  %3840 = vmatpush.msk.msra.mxu0 %vm443_vm0, %v3839_v33  ;;  %v5006_v30 = vld [vmem:[#allocation2 + $0x40] sm:$0x3] }
 0x167   : > { %6190 = vst [vmem:[#allocation57_spill] sm:$0xff] %v4864_v63  ;;  %3534 = vmatmul.msk.f32.gmra.mxu3 %vm254_vm1, %v4737_v0  ;;  %3701 = vmatmul.msk.f32.gmra.mxu1 %vm254_vm1, %v4434_v61  ;;  %v794_v63 = vrot.slane %v4731_v37, 1 }
 0x168   : > { %6194 = vst [vmem:[#allocation61_spill] sm:$0xff] %v4884_v27 }
 0x169   : > { %v795_v61 = vsel %vm725_vm2, %v4721_v32, %v794_v63  ;;  %v799_v63 = vrot.slane %v4794_v57, 1  ;;  %v1812_v57 = vsel %vm725_vm2, %v4493_v18, %v1811_v55  ;;  %v1816_v55 = vrot.slane %v4547_v26, 1  ;;  %v3941_v26 = vld [vmem:[#allocation2 + $0x8] sm:$0xff] }
 0x16b   : > { %3568 = vmatmul.msk.f32.gmra.mxu2 %vm254_vm1, %v4715_v2 }
 0x16c   : > { %v4886_v19 = vpop.f32.mrf.mxu1  ;;  %3683 = vmatmul.msk.f32.gmra.mxu0 %vm254_vm1, %v4772_v9 }
 0x16d   : > { %v4910_v52 = vpop.f32.mrf.mxu0 }
 0x16e   : > { %v4890_v42 = vpop.f32.mrf.mxu2  ;;  %6195 = vst [vmem:[#allocation62_spill] sm:$0xff] %v4910_v52 }
 0x16f   : > { %3535 = vmatmul.msk.f32.gmra.mxu3 %vm254_vm1, %v795_v61  ;;  %3702 = vmatmul.msk.f32.gmra.mxu1 %vm254_vm1, %v1807_v59  ;;  %v800_v59 = vsel %vm725_vm2, %v4780_v4, %v799_v63 }
 0x173   : > { %3569 = vmatmul.msk.f32.gmra.mxu2 %vm254_vm1, %v4772_v9  ;;  %v3805_v9 = vld [vmem:[%s6120_s3 + $0x18] sm:$0xf] }
 0x174   : > { %v4904_v37 = vpop.f32.mrf.mxu1  ;;  %3684 = vmatmul.msk.f32.gmra.mxu0 %vm254_vm1, %v4774_v58  ;;  %3806 = vmatpush.msk.msra.mxu3 %vm443_vm0, %v3805_v9  ;;  %v4956_v9 = vld [vmem:[#allocation2 + $0x180] sm:$0xff] }
 0x175   : > { %v4939_v3 = vpop.f32.mrf.mxu0 }
 0x176   : > { %v4908_v2 = vpop.f32.mrf.mxu2  ;;  %6196 = vst [vmem:[#allocation63_spill] sm:$0xff] %v4939_v3 }
 0x177   : > { %3536 = vmatmul.msk.f32.gmra.mxu3 %vm254_vm1, %v4798_v53  ;;  %3703 = vmatmul.msk.f32.gmra.mxu1 %vm254_vm1, %v4500_v46 }
 0x17b   : > { %3570 = vmatmul.msk.f32.gmra.mxu2 %vm254_vm1, %v4774_v58  ;;  %v3873_v58 = vld [vmem:[%s6120_s3 + $0x20] sm:$0xf] }
 0x17c   : > { %v4927_v61 = vpop.f32.mrf.mxu1  ;;  %3685 = vmatmul.msk.f32.gmra.mxu0 %vm254_vm1, %v3649_v28  ;;  %3874 = vmatpush.msk.msra.mxu1 %vm443_vm0, %v3873_v58  ;;  %v1172_v58 = vrot.slane %v3941_v26, 2  ;;  %v3942_v26 = vld [vmem:[#allocation2 + $0x10] sm:$0x3] }
 0x17d   : > { %v4958_v63 = vpop.f32.mrf.mxu0 }
 0x17e   : > { %v4930_v46 = vpop.f32.mrf.mxu2  ;;  %6198 = vst [vmem:[#allocation65_spill] sm:$0xff] %v4958_v63  ;;  %v4976_v63 = vld [vmem:[#allocation2 + $0x188] sm:$0xff] }
 0x17f   : > { %3537 = vmatmul.msk.f32.gmra.mxu3 %vm254_vm1, %v800_v59  ;;  %3704 = vmatmul.msk.f32.gmra.mxu1 %vm254_vm1, %v1812_v57  ;;  %v1817_v57 = vsel %vm725_vm2, %v4553_v35, %v1816_v55  ;;  %v4987_v55 = vld [vmem:[#allocation2 + $0x38] sm:$0xff] }
 0x180   : > { %6202 = vst [vmem:[#allocation69_spill] sm:$0xff] %v4987_v55 }
 0x183   : > { %3571 = vmatmul.msk.f32.gmra.mxu2 %vm254_vm1, %v3649_v28  ;;  %v804_v28 = vrot.slane %v4853_v40, 1  ;;  %v3940_v40 = vld [vmem:[#allocation2] sm:$0xff] }
 0x184   : > { %v4946_v50 = vpop.f32.mrf.mxu1  ;;  %3686 = vmatmul.msk.f32.gmra.mxu0 %vm254_vm1, %v4833_v49 }
 0x185   : > { %v4980_v3 = vpop.f32.mrf.mxu0 }
 0x186   : > { %v4950_v18 = vpop.f32.mrf.mxu2  ;;  %6201 = vst [vmem:[#allocation68_spill] sm:$0xff] %v4980_v3  ;;  %v1174_v3 = vrot.slane %v3942_v26, 2 }
 0x187   : > { %6197 = vst [vmem:[#allocation64_spill] sm:$0xff] %v4950_v18  ;;  %3538 = vmatmul.msk.f32.gmra.mxu3 %vm254_vm1, %v4857_v5  ;;  %3705 = vmatmul.msk.f32.gmra.mxu1 %vm254_vm1, %v4562_v16  ;;  %v805_v16 = vsel %vm725_vm2, %v4842_v56, %v804_v28 }
 0x18b   : > { %3572 = vmatmul.msk.f32.gmra.mxu2 %vm254_vm1, %v4833_v49  ;;  %v1171_v49 = vrot.slane %v3940_v40, 2  ;;  %v2680_v40 = vrot.slane %v4987_v55, 1 }
 0x18c   : > { %v4964_v33 = vpop.f32.mrf.mxu1  ;;  %3687 = vmatmul.msk.f32.gmra.mxu0 %vm254_vm1, %v4956_v9 }
 0x18d   : > { %6199 = vst [vmem:[#allocation66_spill] sm:$0xff] %v4964_v33  ;;  %v1173_v35 = vsel %vm1170_vm4, %v1171_v49, %v1172_v58  ;;  %v1821_v49 = vrot.slane %v4468_v38, 1  ;;  %v5008_v18 = vpop.f32.mrf.mxu0  ;;  %v2682_v38 = vrot.slane %v5006_v30, 1 }
 0x18e   : > { %v4968_v59 = vpop.f32.mrf.mxu2  ;;  %6203 = vst [vmem:[#allocation70_spill] sm:$0xff] %v5008_v18 }
 0x18f   : > { %6200 = vst [vmem:[#allocation67_spill] sm:$0xff] %v4968_v59  ;;  %3539 = vmatmul.msk.f32.gmra.mxu3 %vm254_vm1, %v805_v16  ;;  %3706 = vmatmul.msk.f32.gmra.mxu1 %vm254_vm1, %v1817_v57  ;;  %v4989_v57 = vld [vmem:[#allocation2 + $0x30] sm:$0xff] }
 0x190   : > { %v2679_v52 = vrot.slane %v4989_v57, 1 }
 0x192   : > { %v2681_v33 = vsel %vm725_vm2, %v2679_v52, %v2680_v40 }
 0x193   : > { %3725 = vmatmul.msk.f32.vlgmr.msra.gmra.mxu2 %vm254_vm1, %v4261_v11 }
 0x194   : > { %3688 = vmatmul.msk.f32.gmra.mxu0 %vm254_vm1, %v4976_v63  ;;  %v4984_v28 = vpop.f32.mrf.mxu1 }
 0x196   : > { %v1122_v16 = vpop.f32.mrf.mxu2 }
 0x197   : > { %3575 = vmatmul.msk.f32.vlgmr.msrb.gmra.mxu3 %vm254_vm1, %v1173_v35  ;;  %3707 = vmatmul.msk.f32.gmra.mxu1 %vm254_vm1, %v4475_v51  ;;  %v1175_v51 = vsel %vm1170_vm4, %v1172_v58, %v1174_v3  ;;  %v2683_v3 = vsel %vm725_vm2, %v2680_v40, %v2682_v38  ;;  %v5023_v58 = vld [vmem:[#allocation2 + $0x50] sm:$0xff] }
 0x198   : > { %6205 = vst [vmem:[#allocation72_spill] sm:$0xff] %v5023_v58 }
 0x19a   : > { %v942_v27 = vpop.f32.mrf.mxu3 }
 0x19b   : > { %3726 = vmatmul.msk.f32.gmra.mxu2 %vm254_vm1, %v4264_v12  ;;  %v4999_v59 = vadd.f32 %v1122_v16, %v942_v27  ;;  %v1822_v12 = vsel %vm725_vm2, %v4463_v34, %v1821_v49  ;;  %v5025_v16 = vld [vmem:[#allocation2 + $0x48] sm:$0xff]  ;;  %v2685_v49 = vrot.slane %v5023_v58, 1 }
 0x19c   : > { %v5002_v35 = vpop.f32.mrf.mxu1  ;;  %3841 = vmatmul.msk.f32.vlgmr.msra.gmra.mxu0 %vm254_vm1, %v2681_v33  ;;  %v2684_v40 = vrot.slane %v5025_v16, 1 }
 0x19e   : > { %v1125_v26 = vpop.f32.mrf.mxu2 }
 0x19f   : > { %3576 = vmatmul.msk.f32.gmra.mxu3 %vm254_vm1, %v1175_v51  ;;  %3708 = vmatmul.msk.f32.gmra.mxu1 %vm254_vm1, %v1822_v12  ;;  %v5032_v51 = vpop.f32.mrf.mxu0  ;;  %v1826_v12 = vrot.slane %v4541_v29, 1 }
 0x1a0   : > { %6206 = vst [vmem:[#allocation73_spill] sm:$0xff] %v5032_v51 }
 0x1a1   : > { %v1827_v51 = vsel %vm725_vm2, %v4527_v47, %v1826_v12  ;;  %v5060_v47 = vld [vmem:[#allocation2 + $0x68] sm:$0xff] }
 0x1a2   : > { %v945_v27 = vpop.f32.mrf.mxu3 }
 0x1a3   : > { %3727 = vmatmul.msk.f32.gmra.mxu2 %vm254_vm1, %v4296_v39  ;;  %v5017_v52 = vadd.f32 %v1125_v26, %v945_v27  ;;  %v2686_v27 = vsel %vm725_vm2, %v2684_v40, %v2685_v49 }
 0x1a4   : > { %v5020_v33 = vpop.f32.mrf.mxu1  ;;  %3842 = vmatmul.msk.f32.gmra.mxu0 %vm254_vm1, %v2683_v3 }
 0x1a5   : > { %6204 = vst [vmem:[#allocation71_spill] sm:$0xff] %v5017_v52 }
 0x1a6   : > { %v1128_v34 = vpop.f32.mrf.mxu2 }
 0x1a7   : > { %3577 = vmatmul.msk.f32.gmra.mxu3 %vm254_vm1, %v4261_v11  ;;  %3709 = vmatmul.msk.f32.gmra.mxu1 %vm254_vm1, %v4539_v60  ;;  %v5044_v60 = vld [vmem:[#allocation2 + $0x58] sm:$0x3]  ;;  %v5052_v29 = vpop.f32.mrf.mxu0 }
 0x1a8   : > { %6208 = vst [vmem:[#allocation75_spill] sm:$0xff] %v5052_v29 }
 0x1aa   : > { %v948_v26 = vpop.f32.mrf.mxu3 }
 0x1ab   : > { %3728 = vmatmul.msk.f32.gmra.mxu2 %vm254_vm1, %v4300_v43  ;;  %v5038_v38 = vadd.f32 %v1128_v34, %v948_v26  ;;  %v2687_v43 = vrot.slane %v5044_v60, 1 }
 0x1ac   : > { %v5041_v11 = vpop.f32.mrf.mxu1  ;;  %3843 = vmatmul.msk.f32.gmra.mxu0 %vm254_vm1, %v2686_v27  ;;  %v2690_v27 = vrot.slane %v5060_v47, 1 }
 0x1ad   : > { %6207 = vst [vmem:[#allocation74_spill] sm:$0xff] %v5038_v38  ;;  %v2688_v26 = vsel %vm725_vm2, %v2685_v49, %v2687_v43  ;;  %v1831_v43 = vrot.slane %v4611_v14, 1  ;;  %v6252_v38 = vld [vmem:[#allocation9_spill] sm:$0xff] }
 0x1ae   : > { %v1131_v3 = vpop.f32.mrf.mxu2 }
 0x1af   : > { %3578 = vmatmul.msk.f32.gmra.mxu3 %vm254_vm1, %v4268_v15  ;;  %3710 = vmatmul.msk.f32.gmra.mxu1 %vm254_vm1, %v1827_v51  ;;  %v5064_v51 = vld [vmem:[#allocation2 + $0x60] sm:$0xff]  ;;  %v5078_v29 = vpop.f32.mrf.mxu0  ;;  %v1832_v18 = vsel %vm725_vm2, %v4599_v23, %v1831_v43 }
 0x1b0   : > { %6211 = vst [vmem:[#allocation78_spill] sm:$0xff] %v5078_v29  ;;  %v5097_v23 = vld [vmem:[#allocation2 + $0x80] sm:$0xff] }
 0x1b2   : > { %v951_v34 = vpop.f32.mrf.mxu3 }
 0x1b3   : > { %3729 = vmatmul.msk.f32.gmra.mxu2 %vm254_vm1, %v4331_v6  ;;  %v5056_v40 = vadd.f32 %v1131_v3, %v951_v34  ;;  %v2689_v3 = vrot.slane %v5064_v51, 1 }
 0x1b4   : > { %3844 = vmatmul.msk.f32.gmra.mxu0 %vm254_vm1, %v2688_v26  ;;  %v5062_v12 = vpop.f32.mrf.mxu1 }
 0x1b5   : > { %6209 = vst [vmem:[#allocation76_spill] sm:$0xff] %v5056_v40  ;;  %v2691_v26 = vsel %vm725_vm2, %v2689_v3, %v2690_v27 }
 0x1b6   : > { %v1134_v15 = vpop.f32.mrf.mxu2 }
 0x1b7   : > { %3579 = vmatmul.msk.f32.gmra.mxu3 %vm254_vm1, %v4296_v39  ;;  %3711 = vmatmul.msk.f32.gmra.mxu1 %vm254_vm1, %v4617_v8  ;;  %v5081_v39 = vld [vmem:[#allocation2 + $0x70] sm:$0x3]  ;;  %v5099_v43 = vpop.f32.mrf.mxu0 }
 0x1b8   : > { %6213 = vst [vmem:[#allocation80_spill] sm:$0xff] %v5099_v43 }
 0x1ba   : > { %v954_v49 = vpop.f32.mrf.mxu3 }
 0x1bb   : > { %3730 = vmatmul.msk.f32.gmra.mxu2 %vm254_vm1, %v4335_v10  ;;  %v5075_v34 = vadd.f32 %v1134_v15, %v954_v49  ;;  %v2692_v10 = vrot.slane %v5081_v39, 1 }
 0x1bc   : > { %3845 = vmatmul.msk.f32.gmra.mxu0 %vm254_vm1, %v2691_v26  ;;  %v5085_v40 = vpop.f32.mrf.mxu1 }
 0x1bd   : > { %6210 = vst [vmem:[#allocation77_spill] sm:$0xff] %v5075_v34  ;;  %v2693_v3 = vsel %vm725_vm2, %v2690_v27, %v2692_v10  ;;  %v1836_v10 = vrot.slane %v4672_v22, 1 }
 0x1be   : > { %v1137_v8 = vpop.f32.mrf.mxu2 }
 0x1bf   : > { %3580 = vmatmul.msk.f32.gmra.mxu3 %vm254_vm1, %v4303_v44  ;;  %3712 = vmatmul.msk.f32.gmra.mxu1 %vm254_vm1, %v1832_v18  ;;  %v5101_v44 = vld [vmem:[#allocation2 + $0x78] sm:$0xff]  ;;  %v2695_v18 = vrot.slane %v5097_v23, 1  ;;  %v1837_v43 = vsel %vm725_vm2, %v4660_v20, %v1836_v10  ;;  %v5126_v22 = vpop.f32.mrf.mxu0 }
 0x1c0   : > { %v2694_v27 = vrot.slane %v5101_v44, 1  ;;  %6215 = vst [vmem:[#allocation82_spill] sm:$0xff] %v5126_v22  ;;  %v5136_v20 = vld [vmem:[#allocation2 + $0x98] sm:$0xff] }
 0x1c1   : > { %v2700_v10 = vrot.slane %v5136_v20, 1 }
 0x1c2   : > { %v957_v14 = vpop.f32.mrf.mxu3 }
 0x1c3   : > { %3731 = vmatmul.msk.f32.gmra.mxu2 %vm254_vm1, %v4366_v45  ;;  %v5093_v15 = vadd.f32 %v1137_v8, %v957_v14 }
 0x1c4   : > { %3846 = vmatmul.msk.f32.gmra.mxu0 %vm254_vm1, %v2693_v3  ;;  %v5108_v26 = vpop.f32.mrf.mxu1  ;;  %v2696_v3 = vsel %vm725_vm2, %v2694_v27, %v2695_v18 }
 0x1c5   : > { %6212 = vst [vmem:[#allocation79_spill] sm:$0xff] %v5093_v15 }
 0x1c6   : > { %v1140_v49 = vpop.f32.mrf.mxu2 }
 0x1c7   : > { %3581 = vmatmul.msk.f32.gmra.mxu3 %vm254_vm1, %v4331_v6  ;;  %3713 = vmatmul.msk.f32.gmra.mxu1 %vm254_vm1, %v4678_v62  ;;  %v5118_v6 = vld [vmem:[#allocation2 + $0x88] sm:$0x3] }
 0x1ca   : > { %v960_v8 = vpop.f32.mrf.mxu3 }
 0x1cb   : > { %3732 = vmatmul.msk.f32.gmra.mxu2 %vm254_vm1, %v4370_v48  ;;  %v5114_v14 = vadd.f32 %v1140_v49, %v960_v8  ;;  %v2697_v48 = vrot.slane %v5118_v6, 1 }
 0x1cc   : > { %3847 = vmatmul.msk.f32.gmra.mxu0 %vm254_vm1, %v2696_v3  ;;  %v5130_v27 = vpop.f32.mrf.mxu1 }
 0x1cd   : > { %6214 = vst [vmem:[#allocation81_spill] sm:$0xff] %v5114_v14  ;;  %v2698_v3 = vsel %vm725_vm2, %v2695_v18, %v2697_v48  ;;  %v1841_v48 = vrot.slane %v4733_v41, 1 }
 0x1ce   : > { %v1143_v62 = vpop.f32.mrf.mxu2 }
 0x1cf   : > { %3582 = vmatmul.msk.f32.gmra.mxu3 %vm254_vm1, %v4338_v13  ;;  %3714 = vmatmul.msk.f32.gmra.mxu1 %vm254_vm1, %v1837_v43  ;;  %v5138_v43 = vld [vmem:[#allocation2 + $0x90] sm:$0xff] }
 0x1d2   : > { %v963_v49 = vpop.f32.mrf.mxu3 }
 0x1d3   : > { %3733 = vmatmul.msk.f32.gmra.mxu2 %vm254_vm1, %v4401_v21  ;;  %v5132_v8 = vadd.f32 %v1143_v62, %v963_v49  ;;  %v2699_v62 = vrot.slane %v5138_v43, 1  ;;  %v5146_v49 = vpop.f32.mrf.mxu0 }
 0x1d4   : > { %3848 = vmatmul.msk.f32.gmra.mxu0 %vm254_vm1, %v2698_v3  ;;  %6217 = vst [vmem:[#allocation84_spill] sm:$0xff] %v5146_v49  ;;  %v1842_v49 = vsel %vm725_vm2, %v4721_v32, %v1841_v48  ;;  %v5177_v48 = vld [vmem:[#allocation2 + $0xa8] sm:$0xff] }
 0x1d5   : > { %6216 = vst [vmem:[#allocation83_spill] sm:$0xff] %v5132_v8  ;;  %v2701_v22 = vsel %vm725_vm2, %v2699_v62, %v2700_v10  ;;  %v6220_v8 = vld [vmem:[#allocation3_spill] sm:$0xff]  ;;  %v6133_v62 = vrot.slane %v4976_v63, 1 }
 0x1d6   : > { %v1146_v13 = vpop.f32.mrf.mxu2 }
 0x1d7   : > { %3583 = vmatmul.msk.f32.gmra.mxu3 %vm254_vm1, %v4366_v45  ;;  %3715 = vmatmul.msk.f32.gmra.mxu1 %vm254_vm1, %v4737_v0  ;;  %v5155_v45 = vld [vmem:[#allocation2 + $0xa0] sm:$0x3]  ;;  %v5157_v0 = vpop.f32.mrf.mxu1 }
 0x1d8   : > { %6219 = vst [vmem:[#allocation86_spill] sm:$0xff] %v5157_v0 }
 0x1da   : > { %v966_v18 = vpop.f32.mrf.mxu3 }
 0x1db   : > { %3734 = vmatmul.msk.f32.gmra.mxu2 %vm254_vm1, %v4405_v24  ;;  %v5151_v3 = vadd.f32 %v1146_v13, %v966_v18  ;;  %v2702_v24 = vrot.slane %v5155_v45, 1  ;;  %v6221_v13 = vld [vmem:[#allocation5_spill] sm:$0xff]  ;;  %v5172_v32 = vpop.f32.mrf.mxu0 }
 0x1dc   : > { %3849 = vmatmul.msk.f32.gmra.mxu0 %vm254_vm1, %v2701_v22  ;;  %v1853_v22 = vrot.slane %v4956_v9, 1  ;;  %6223 = vst [vmem:[#allocation5_spill] sm:$0xff] %v5172_v32  ;;  %v1846_v32 = vrot.slane %v4792_v25, 1 }
 0x1dd   : > { %6218 = vst [vmem:[#allocation85_spill] sm:$0xff] %v5151_v3  ;;  %v2703_v0 = vsel %vm725_vm2, %v2700_v10, %v2702_v24 }
 0x1de   : > { %v1149_v29 = vpop.f32.mrf.mxu2  ;;  %v1855_v10 = vsel %vm725_vm2, %v1853_v22, %v6133_v62  ;;  %v1847_v22 = vsel %vm725_vm2, %v4780_v4, %v1846_v32  ;;  %v6228_v62 = vld [vmem:[#allocation4_spill] sm:$0xff]  ;;  %v5215_v4 = vld [vmem:[#allocation2 + $0xc8] sm:$0xff] }
 0x1df   : > { %3584 = vmatmul.msk.f32.gmra.mxu3 %vm254_vm1, %v6220_v8  ;;  %3716 = vmatmul.msk.f32.gmra.mxu1 %vm254_vm1, %v1842_v49  ;;  %v5175_v8 = vld [vmem:[#allocation2 + $0xb0] sm:$0xff]  ;;  %v5179_v3 = vpop.f32.mrf.mxu1 }
 0x1e0   : > { %6224 = vst [vmem:[#allocation87_spill] sm:$0xff] %v5179_v3 }
 0x1e2   : > { %v969_v41 = vpop.f32.mrf.mxu3 }
 0x1e3   : > { %3735 = vmatmul.msk.f32.gmra.mxu2 %vm254_vm1, %v6221_v13  ;;  %v5169_v18 = vadd.f32 %v1149_v29, %v969_v41  ;;  %v2705_v29 = vrot.slane %v5175_v8, 1  ;;  %v6225_v41 = vld [vmem:[#allocation6_spill] sm:$0xff]  ;;  %v5199_v14 = vpop.f32.mrf.mxu0 }
 0x1e4   : > { %3850 = vmatmul.msk.f32.gmra.mxu0 %vm254_vm1, %v2703_v0  ;;  %v2704_v0 = vrot.slane %v5177_v48, 1  ;;  %6227 = vst [vmem:[#allocation88_spill] sm:$0xff] %v5199_v14 }
 0x1e5   : > { %6222 = vst [vmem:[#allocation3_spill] sm:$0xff] %v5169_v18 }
 0x1e6   : > { %v1152_v49 = vpop.f32.mrf.mxu2 }
 0x1e7   : > { %3585 = vmatmul.msk.f32.gmra.mxu3 %vm254_vm1, %v4401_v21  ;;  %3717 = vmatmul.msk.f32.gmra.mxu1 %vm254_vm1, %v4798_v53  ;;  %v2706_v21 = vsel %vm725_vm2, %v2704_v0, %v2705_v29  ;;  %v5197_v53 = vld [vmem:[#allocation2 + $0xb8] sm:$0x3] }
 0x1e8   : > { %v2707_v25 = vrot.slane %v5197_v53, 1 }
 0x1ea   : > { %v972_v24 = vpop.f32.mrf.mxu3 }
 0x1eb   : > { %3736 = vmatmul.msk.f32.gmra.mxu2 %vm254_vm1, %v6225_v41  ;;  %v5193_v3 = vadd.f32 %v1152_v49, %v972_v24  ;;  %v5207_v49 = vpop.f32.mrf.mxu1  ;;  %v6230_v24 = vld [vmem:[#allocation10_spill] sm:$0xff]  ;;  %v5224_v14 = vpop.f32.mrf.mxu0 }
 0x1ec   : > { %3851 = vmatmul.msk.f32.gmra.mxu0 %vm254_vm1, %v2706_v21  ;;  %6229 = vst [vmem:[#allocation4_spill] sm:$0xff] %v5207_v49  ;;  %v2708_v21 = vsel %vm725_vm2, %v2705_v29, %v2707_v25  ;;  %v6233_v25 = vld [vmem:[#allocation11_spill] sm:$0xff]  ;;  %v2148_v49 = vrot.slane %v4976_v63, 2 }
 0x1ed   : > { %6226 = vst [vmem:[#allocation6_spill] sm:$0xff] %v5193_v3  ;;  %v3654_v3 = vld [vmem:[#allocation2 + $0x190] sm:$0x3] }
 0x1ee   : > { %v1155_v18 = vpop.f32.mrf.mxu2  ;;  %6232 = vst [vmem:[#allocation89_spill] sm:$0xff] %v5224_v14  ;;  %v5238_v14 = vld [vmem:[#allocation2 + $0xd0] sm:$0x3]  ;;  %v2150_v34 = vrot.slane %v3654_v3, 2 }
 0x1ef   : > { %3586 = vmatmul.msk.f32.gmra.mxu3 %vm254_vm1, %v6228_v62  ;;  %3718 = vmatmul.msk.f32.gmra.mxu1 %vm254_vm1, %v1847_v22  ;;  %v5217_v62 = vld [vmem:[#allocation2 + $0xc0] sm:$0xff]  ;;  %v2710_v22 = vrot.slane %v5215_v4, 1 }
 0x1f2   : > { %v975_v0 = vpop.f32.mrf.mxu3 }
 0x1f3   : > { %3737 = vmatmul.msk.f32.gmra.mxu2 %vm254_vm1, %v6230_v24  ;;  %v5211_v41 = vadd.f32 %v1155_v18, %v975_v0  ;;  %v2709_v18 = vrot.slane %v5217_v62, 1  ;;  %v1851_v0 = vrot.slane %v4846_v1, 1 }
 0x1f4   : > { %3852 = vmatmul.msk.f32.gmra.mxu0 %vm254_vm1, %v2708_v21  ;;  %v2147_v21 = vrot.slane %v4956_v9, 2  ;;  %v2712_v9 = vrot.slane %v5238_v14, 1 }
 0x1f5   : > { %6231 = vst [vmem:[#allocation10_spill] sm:$0xff] %v5211_v41  ;;  %v1852_v1 = vsel %vm725_vm2, %v4842_v56, %v1851_v0 }
 0x1f6   : > { %v1158_v32 = vpop.f32.mrf.mxu2  ;;  %v2713_v0 = vsel %vm725_vm2, %v2710_v22, %v2712_v9 }
 0x1f7   : > { %3587 = vmatmul.msk.f32.gmra.mxu3 %vm254_vm1, %v6221_v13  ;;  %3719 = vmatmul.msk.f32.gmra.mxu1 %vm254_vm1, %v4857_v5  ;;  %v5232_v13 = vpop.f32.mrf.mxu1  ;;  %v2711_v5 = vsel %vm725_vm2, %v2709_v18, %v2710_v22  ;;  %v5250_v18 = vsel %vm1170_vm4, %v2148_v49, %v2150_v34 }
 0x1f8   : > { %6234 = vst [vmem:[#allocation11_spill] sm:$0xff] %v5232_v13  ;;  %v6238_v13 = vld [vmem:[#allocation17_spill] sm:$0xff] }
 0x1fa   : > { %v978_v29 = vpop.f32.mrf.mxu3 }
 0x1fb   : > { %3738 = vmatmul.msk.f32.gmra.mxu2 %vm254_vm1, %v6233_v25  ;;  %v5234_v41 = vadd.f32 %v1158_v32, %v978_v29  ;;  %v6236_v25 = vld [vmem:[#allocation7_spill] sm:$0xff]  ;;  %v5247_v32 = vsel %vm1170_vm4, %v2147_v21, %v2148_v49  ;;  %v5252_v29 = vpop.f32.mrf.mxu0 }
 0x1fc   : > { %3853 = vmatmul.msk.f32.gmra.mxu0 %vm254_vm1, %v2711_v5  ;;  %6237 = vst [vmem:[#allocation7_spill] sm:$0xff] %v5252_v29 }
 0x1fd   : > { %6235 = vst [vmem:[#allocation90_spill] sm:$0xff] %v5234_v41  ;;  %v6245_v41 = vld [vmem:[#allocation12_spill] sm:$0xff] }
 0x1fe   : > { %v1161_v15 = vpop.f32.mrf.mxu2 }
 0x1ff   : > { %3588 = vmatmul.msk.f32.gmra.mxu3 %vm254_vm1, %v6236_v25  ;;  %3720 = vmatmul.msk.f32.gmra.mxu1 %vm254_vm1, %v1852_v1  ;;  %v5260_v1 = vld [vmem:[#allocation2 + $0xd8] sm:$0xff]  ;;  %v5262_v25 = vld [vmem:[#allocation2 + $0xe0] sm:$0xff]  ;;  %v5264_v21 = vpop.f32.mrf.mxu1 }
 0x200   : > { %6240 = vst [vmem:[#allocation91_spill] sm:$0xff] %v5264_v21  ;;  %v2714_v49 = vrot.slane %v5260_v1, 1  ;;  %v5282_v21 = vld [vmem:[#allocation2 + $0xe8] sm:$0x3] }
 0x202   : > { %v981_v5 = vpop.f32.mrf.mxu3 }
 0x203   : > { %3739 = vmatmul.msk.f32.gmra.mxu2 %vm254_vm1, %v6238_v13  ;;  %v5256_v56 = vadd.f32 %v1161_v15, %v981_v5  ;;  %v2715_v15 = vrot.slane %v5262_v25, 1  ;;  %v1856_v5 = vrot.slane %v3654_v3, 1  ;;  %v5276_v29 = vpop.f32.mrf.mxu0 }
 0x204   : > { %3854 = vmatmul.msk.f32.gmra.mxu0 %vm254_vm1, %v2713_v0  ;;  %6242 = vst [vmem:[#allocation93_spill] sm:$0xff] %v5276_v29 }
 0x205   : > { %6239 = vst [vmem:[#allocation17_spill] sm:$0xff] %v5256_v56  ;;  %v2716_v0 = vsel %vm725_vm2, %v2714_v49, %v2715_v15  ;;  %v6246_v49 = vld [vmem:[#allocation8_spill] sm:$0xff] }
 0x206   : > { %v1164_v34 = vpop.f32.mrf.mxu2 }
 0x207   : > { %3589 = vmatmul.msk.f32.gmra.mxu3 %vm254_vm1, %v6230_v24  ;;  %3721 = vmatmul.msk.f32.gmra.mxu1 %vm254_vm1, %v1855_v10  ;;  %v6243_v24 = vrot.slane %v4976_v63, 1  ;;  %v5284_v3 = vpop.f32.mrf.mxu1  ;;  %v2974_v63 = vrot.slane %v4987_v55, 2 }
 0x208   : > { %6244 = vst [vmem:[#allocation94_spill] sm:$0xff] %v5284_v3 }
 0x209   : > { %v1857_v10 = vsel %vm725_vm2, %v6243_v24, %v1856_v5  ;;  %v5298_v24 = vld [vmem:[#allocation2 + $0xf0] sm:$0xff] }
 0x20a   : > { %v984_v22 = vpop.f32.mrf.mxu3 }
 0x20b   : > { %3740 = vmatmul.msk.f32.gmra.mxu2 %vm254_vm1, %v4572_v36  ;;  %v5273_v9 = vadd.f32 %v1164_v34, %v984_v22  ;;  %v2717_v36 = vrot.slane %v5282_v21, 1  ;;  %v5302_v29 = vpop.f32.mrf.mxu0 }
 0x20c   : > { %3855 = vmatmul.msk.f32.gmra.mxu0 %vm254_vm1, %v2716_v0  ;;  %v2973_v0 = vrot.slane %v4989_v57, 2  ;;  %6248 = vst [vmem:[#allocation8_spill] sm:$0xff] %v5302_v29 }
 0x20d   : > { %6241 = vst [vmem:[#allocation92_spill] sm:$0xff] %v5273_v9  ;;  %v2718_v5 = vsel %vm725_vm2, %v2715_v15, %v2717_v36  ;;  %v6249_v36 = vld [vmem:[#allocation14_spill] sm:$0xff] }
 0x20e   : > { %v1167_v56 = vpop.f32.mrf.mxu2  ;;  %v2975_v3 = vsel %vm1170_vm4, %v2973_v0, %v2974_v63  ;;  %v2976_v0 = vrot.slane %v5006_v30, 2 }
 0x20f   : > { %3590 = vmatmul.msk.f32.gmra.mxu3 %vm254_vm1, %v6245_v41  ;;  %3722 = vmatmul.msk.f32.gmra.mxu1 %vm254_vm1, %v1857_v10  ;;  %v5300_v41 = vld [vmem:[#allocation2 + $0xf8] sm:$0xff] }
 0x210   : > { %v2720_v15 = vrot.slane %v5300_v41, 1 }
 0x212   : > { %v987_v34 = vpop.f32.mrf.mxu3 }
 0x213   : > { %3741 = vmatmul.msk.f32.gmra.mxu2 %vm254_vm1, %v6246_v49  ;;  %v5293_v22 = vadd.f32 %v1167_v56, %v987_v34  ;;  %v2719_v56 = vrot.slane %v5298_v24, 1  ;;  %v6250_v34 = vld [vmem:[#allocation16_spill] sm:$0xff] }
 0x214   : > { %3856 = vmatmul.msk.f32.gmra.mxu0 %vm254_vm1, %v2718_v5  ;;  %v1075_v5 = vadd.f32 %v6250_v34, %v6249_v36  ;;  %v2977_v36 = vsel %vm1170_vm4, %v2974_v63, %v2976_v0  ;;  %v6255_v34 = vld [vmem:[#allocation21_spill] sm:$0xff]  ;;  %v2979_v63 = vrot.slane %v5023_v58, 2  ;;  %v5365_v58 = vld [vmem:[#allocation2 + $0x118] sm:$0x3] }
 0x215   : > { %6247 = vst [vmem:[#allocation12_spill] sm:$0xff] %v5293_v22  ;;  %v5312_v22 = vpop.f32.mrf.mxu1 }
 0x216   : > { %v2238_v10 = vpop.f32.mrf.mxu2  ;;  %6251 = vst [vmem:[#allocation14_spill] sm:$0xff] %v5312_v22 }
 0x217   : > { %3591 = vmatmul.msk.f32.gmra.mxu3 %vm254_vm1, %v6238_v13  ;;  %3875 = vmatmul.msk.f32.vlgmr.msra.gmra.mxu1 %vm254_vm1, %v2975_v3  ;;  %v2721_v13 = vsel %vm725_vm2, %v2719_v56, %v2720_v15  ;;  %v5319_v3 = vld [vmem:[#allocation2 + $0x100] sm:$0x3]  ;;  %v6254_v56 = vld [vmem:[#allocation20_spill] sm:$0xff] }
 0x21a   : > { %v1337_v9 = vpop.f32.mrf.mxu3 }
 0x21b   : > { %3742 = vmatmul.msk.f32.gmra.mxu2 %vm254_vm1, %v6252_v38  ;;  %v1433_v29 = vadd.f32 %v1337_v9, %v1075_v5  ;;  %v2722_v38 = vrot.slane %v5319_v3, 1  ;;  %v5328_v9 = vpop.f32.mrf.mxu0  ;;  %v1078_v5 = vadd.f32 %v6255_v34, %v6254_v56  ;;  %v5344_v56 = vld [vmem:[#allocation2 + $0x110] sm:$0xff] }
 0x21c   : > { %3857 = vmatmul.msk.f32.gmra.mxu0 %vm254_vm1, %v2721_v13  ;;  %6253 = vst [vmem:[#allocation16_spill] sm:$0xff] %v5328_v9 }
 0x21d   : > { %v1730_v52 = vadd.f32 %v4577_v7, %v1433_v29  ;;  %v6257_v29 = vld [vmem:[#allocation15_spill] sm:$0xff] }
 0x21e   : > { %v2241_v55 = vpop.f32.mrf.mxu2 }
 0x21f   : > { %3592 = vmatmul.msk.f32.gmra.mxu3 %vm254_vm1, %v4575_v54  ;;  %3876 = vmatmul.msk.f32.gmra.mxu1 %vm254_vm1, %v2977_v36  ;;  %v2040_v30 = vadd.f32 %v4984_v28, %v1730_v52  ;;  %v5337_v54 = vpop.f32.mrf.mxu1  ;;  %v2723_v36 = vsel %vm725_vm2, %v2720_v15, %v2722_v38  ;;  %v2978_v28 = vrot.slane %v5025_v16, 2  ;;  %v5342_v52 = vld [vmem:[#allocation2 + $0x108] sm:$0xff]  ;;  %v2725_v38 = vrot.slane %v5344_v56, 1 }
 0x220   : > { %6258 = vst [vmem:[#allocation20_spill] sm:$0xff] %v5337_v54  ;;  %v2724_v15 = vrot.slane %v5342_v52, 1 }
 0x221   : > { %v5332_v13 = vadd.f32 %v2238_v10, %v2040_v30  ;;  %v6259_v10 = vld [vmem:[#allocation22_spill] sm:$0xff]  ;;  %v2980_v9 = vsel %vm1170_vm4, %v2978_v28, %v2979_v63 }
 0x222   : > { %v1340_v7 = vpop.f32.mrf.mxu3  ;;  %v6264_v28 = vld [vmem:[#allocation18_spill] sm:$0xff] }
 0x223   : > { %6256 = vst [vmem:[#allocation9_spill] sm:$0xff] %v5332_v13  ;;  %3743 = vmatmul.msk.f32.gmra.mxu2 %vm254_vm1, %v6257_v29  ;;  %v1434_v0 = vadd.f32 %v1340_v7, %v1078_v5  ;;  %v6260_v7 = vld [vmem:[#allocation24_spill] sm:$0xff]  ;;  %v2726_v13 = vsel %vm725_vm2, %v2724_v15, %v2725_v38 }
 0x224   : > { %3858 = vmatmul.msk.f32.gmra.mxu0 %vm254_vm1, %v2723_v36  ;;  %v6261_v36 = vld [vmem:[#allocation27_spill] sm:$0xff] }
 0x225   : > { %v1731_v30 = vadd.f32 %v6259_v10, %v1434_v0  ;;  %v1081_v54 = vadd.f32 %v6261_v36, %v6260_v7  ;;  %v5358_v0 = vpop.f32.mrf.mxu0  ;;  %v6267_v7 = vld [vmem:[#allocation13_spill] sm:$0xff] }
 0x226   : > { %v2244_v34 = vpop.f32.mrf.mxu2  ;;  %6263 = vst [vmem:[#allocation15_spill] sm:$0xff] %v5358_v0  ;;  %v6268_v36 = vld [vmem:[#allocation29_spill] sm:$0xff] }
 0x227   : > { %3593 = vmatmul.msk.f32.gmra.mxu3 %vm254_vm1, %v6246_v49  ;;  %3877 = vmatmul.msk.f32.gmra.mxu1 %vm254_vm1, %v2980_v9  ;;  %v2041_v5 = vadd.f32 %v5002_v35, %v1731_v30  ;;  %v2981_v49 = vrot.slane %v5044_v60, 2  ;;  %v5367_v35 = vpop.f32.mrf.mxu1  ;;  %v6266_v30 = vld [vmem:[#allocation28_spill] sm:$0xff]  ;;  %v2727_v60 = vrot.slane %v5365_v58, 1 }
 0x228   : > { %6265 = vst [vmem:[#allocation22_spill] sm:$0xff] %v5367_v35  ;;  %v6271_v35 = vld [vmem:[#allocation23_spill] sm:$0xff] }
 0x229   : > { %v5356_v22 = vadd.f32 %v2241_v55, %v2041_v5  ;;  %v2982_v5 = vsel %vm1170_vm4, %v2979_v63, %v2981_v49  ;;  %v2984_v63 = vrot.slane %v5060_v47, 2 }
 0x22a   : > { %v1343_v10 = vpop.f32.mrf.mxu3 }
 0x22b   : > { %6262 = vst [vmem:[#allocation21_spill] sm:$0xff] %v5356_v22  ;;  %3744 = vmatmul.msk.f32.gmra.mxu2 %vm254_vm1, %v6264_v28  ;;  %v1435_v9 = vadd.f32 %v1343_v10, %v1081_v54 }
 0x22c   : > { %3859 = vmatmul.msk.f32.gmra.mxu0 %vm254_vm1, %v2726_v13  ;;  %v6269_v13 = vld [vmem:[#allocation30_spill] sm:$0xff] }
 0x22d   : > { %v1732_v55 = vadd.f32 %v6266_v30, %v1435_v9  ;;  %v1084_v10 = vadd.f32 %v6269_v13, %v6268_v36  ;;  %v2728_v9 = vsel %vm725_vm2, %v2725_v38, %v2727_v60  ;;  %v5384_v30 = vpop.f32.mrf.mxu0  ;;  %v6275_v13 = vld [vmem:[#allocation33_spill] sm:$0xff] }
 0x22e   : > { %v2247_v15 = vpop.f32.mrf.mxu2  ;;  %6272 = vst [vmem:[#allocation27_spill] sm:$0xff] %v5384_v30 }
 0x22f   : > { %3594 = vmatmul.msk.f32.gmra.mxu3 %vm254_vm1, %v6267_v7  ;;  %3878 = vmatmul.msk.f32.gmra.mxu1 %vm254_vm1, %v2982_v5  ;;  %v2042_v54 = vadd.f32 %v5020_v33, %v1732_v55  ;;  %v2983_v33 = vrot.slane %v5064_v51, 2  ;;  %v5388_v55 = vld [vmem:[#allocation2 + $0x120] sm:$0xff]  ;;  %v5390_v5 = vld [vmem:[#allocation2 + $0x128] sm:$0xff]  ;;  %v5394_v36 = vpop.f32.mrf.mxu1 }
 0x230   : > { %6274 = vst [vmem:[#allocation18_spill] sm:$0xff] %v5394_v36  ;;  %v2729_v38 = vrot.slane %v5388_v55, 1 }
 0x231   : > { %v5378_v28 = vadd.f32 %v2244_v34, %v2042_v54  ;;  %v6273_v34 = vld [vmem:[#allocation31_spill] sm:$0xff]  ;;  %v2985_v54 = vsel %vm1170_vm4, %v2983_v33, %v2984_v63 }
 0x232   : > { %v1346_v0 = vpop.f32.mrf.mxu3 }
 0x233   : > { %6270 = vst [vmem:[#allocation24_spill] sm:$0xff] %v5378_v28  ;;  %3745 = vmatmul.msk.f32.gmra.mxu2 %vm254_vm1, %v6271_v35  ;;  %v1436_v49 = vadd.f32 %v1346_v0, %v1084_v10  ;;  %v2730_v0 = vrot.slane %v5390_v5, 1  ;;  %v6276_v10 = vld [vmem:[#allocation36_spill] sm:$0xff]  ;;  %v5411_v28 = vld [vmem:[#allocation2 + $0x130] sm:$0x3] }
 0x234   : > { %3860 = vmatmul.msk.f32.gmra.mxu0 %vm254_vm1, %v2728_v9  ;;  %v1087_v9 = vadd.f32 %v6276_v10, %v6275_v13  ;;  %v6282_v10 = vld [vmem:[#allocation39_spill] sm:$0xff] }
 0x235   : > { %v1733_v7 = vadd.f32 %v6273_v34, %v1436_v49  ;;  %v6277_v34 = vld [vmem:[#allocation25_spill] sm:$0xff]  ;;  %v5414_v22 = vpop.f32.mrf.mxu0 }
 0x236   : > { %v2250_v49 = vpop.f32.mrf.mxu2  ;;  %6279 = vst [vmem:[#allocation28_spill] sm:$0xff] %v5414_v22 }
 0x237   : > { %3595 = vmatmul.msk.f32.gmra.mxu3 %vm254_vm1, %v6257_v29  ;;  %3879 = vmatmul.msk.f32.gmra.mxu1 %vm254_vm1, %v2985_v54  ;;  %v2043_v60 = vadd.f32 %v5041_v11, %v1733_v7  ;;  %v2986_v29 = vrot.slane %v5081_v39, 2  ;;  %v2731_v54 = vsel %vm725_vm2, %v2729_v38, %v2730_v0  ;;  %v6278_v11 = vld [vmem:[#allocation37_spill] sm:$0xff]  ;;  %v2732_v39 = vrot.slane %v5411_v28, 1  ;;  %v6281_v38 = vld [vmem:[#allocation38_spill] sm:$0xff] }
 0x239   : > { %v5404_v30 = vadd.f32 %v2247_v15, %v2043_v60  ;;  %v2987_v15 = vsel %vm1170_vm4, %v2984_v63, %v2986_v29  ;;  %v6280_v60 = vld [vmem:[#allocation19_spill] sm:$0xff]  ;;  %v2989_v63 = vrot.slane %v5097_v23, 2 }
 0x23a   : > { %v1349_v33 = vpop.f32.mrf.mxu3 }
 0x23b   : > { %3746 = vmatmul.msk.f32.gmra.mxu2 %vm254_vm1, %v6277_v34  ;;  %v1437_v36 = vadd.f32 %v1349_v33, %v1087_v9  ;;  %v1090_v9 = vadd.f32 %v6282_v10, %v6281_v38  ;;  %v5424_v33 = vpop.f32.mrf.mxu1 }
 0x23c   : > { %3861 = vmatmul.msk.f32.gmra.mxu0 %vm254_vm1, %v2731_v54  ;;  %6283 = vst [vmem:[#allocation13_spill] sm:$0xff] %v5424_v33  ;;  %v6285_v54 = vld [vmem:[#allocation32_spill] sm:$0xff] }
 0x23d   : > { %v1734_v7 = vadd.f32 %v6278_v11, %v1437_v36  ;;  %v2733_v11 = vsel %vm725_vm2, %v2730_v0, %v2732_v39 }
 0x23f   : > { %3596 = vmatmul.msk.f32.gmra.mxu3 %vm254_vm1, %v6280_v60  ;;  %3880 = vmatmul.msk.f32.gmra.mxu1 %vm254_vm1, %v2987_v15  ;;  %v2044_v13 = vadd.f32 %v5062_v12, %v1734_v7  ;;  %v2253_v15 = vpop.f32.mrf.mxu2  ;;  %v2988_v12 = vrot.slane %v5101_v44, 2  ;;  %v5434_v7 = vld [vmem:[#allocation2 + $0x138] sm:$0xff]  ;;  %v5436_v60 = vld [vmem:[#allocation2 + $0x140] sm:$0xff] }
 0x240   : > { %v2734_v0 = vrot.slane %v5434_v7, 1  ;;  %v2735_v39 = vrot.slane %v5436_v60, 1 }
 0x241   : > { %v5426_v34 = vadd.f32 %v2250_v49, %v2044_v13  ;;  %v6286_v49 = vld [vmem:[#allocation41_spill] sm:$0xff]  ;;  %v2990_v38 = vsel %vm1170_vm4, %v2988_v12, %v2989_v63  ;;  %v6291_v12 = vld [vmem:[#allocation34_spill] sm:$0xff] }
 0x242   : > { %v1352_v36 = vpop.f32.mrf.mxu3 }
 0x243   : > { %6284 = vst [vmem:[#allocation29_spill] sm:$0xff] %v5426_v34  ;;  %3747 = vmatmul.msk.f32.gmra.mxu2 %vm254_vm1, %v6285_v54  ;;  %v1438_v29 = vadd.f32 %v1352_v36, %v1090_v9  ;;  %v5446_v9 = vpop.f32.mrf.mxu0  ;;  %v6288_v36 = vld [vmem:[#allocation42_spill] sm:$0xff]  ;;  %v2736_v34 = vsel %vm725_vm2, %v2734_v0, %v2735_v39  ;;  %v6296_v0 = vld [vmem:[#allocation47_spill] sm:$0xff] }
 0x244   : > { %3862 = vmatmul.msk.f32.gmra.mxu0 %vm254_vm1, %v2733_v11  ;;  %6287 = vst [vmem:[#allocation30_spill] sm:$0xff] %v5446_v9  ;;  %v6289_v11 = vld [vmem:[#allocation45_spill] sm:$0xff] }
 0x245   : > { %v1735_v13 = vadd.f32 %v6286_v49, %v1438_v29  ;;  %v1093_v22 = vadd.f32 %v6289_v11, %v6288_v36  ;;  %v5455_v49 = vpop.f32.mrf.mxu1  ;;  %v6295_v11 = vld [vmem:[#allocation46_spill] sm:$0xff] }
 0x246   : > { %6292 = vst [vmem:[#allocation31_spill] sm:$0xff] %v5455_v49 }
 0x247   : > { %3597 = vmatmul.msk.f32.gmra.mxu3 %vm254_vm1, %v6271_v35  ;;  %3881 = vmatmul.msk.f32.gmra.mxu1 %vm254_vm1, %v2990_v38  ;;  %v2045_v10 = vadd.f32 %v5085_v40, %v1735_v13  ;;  %v2991_v35 = vrot.slane %v5118_v6, 2  ;;  %v5459_v40 = vld [vmem:[#allocation2 + $0x148] sm:$0x3]  ;;  %v6293_v13 = vld [vmem:[#allocation48_spill] sm:$0xff]  ;;  %v2256_v36 = vpop.f32.mrf.mxu2 }
 0x248   : > { %v2737_v6 = vrot.slane %v5459_v40, 1 }
 0x249   : > { %v5450_v33 = vadd.f32 %v2253_v15, %v2045_v10  ;;  %v2992_v15 = vsel %vm1170_vm4, %v2989_v63, %v2991_v35  ;;  %v6294_v10 = vld [vmem:[#allocation26_spill] sm:$0xff]  ;;  %v2994_v63 = vrot.slane %v5136_v20, 2 }
 0x24a   : > { %v1355_v29 = vpop.f32.mrf.mxu3 }
 0x24b   : > { %6290 = vst [vmem:[#allocation23_spill] sm:$0xff] %v5450_v33  ;;  %3748 = vmatmul.msk.f32.gmra.mxu2 %vm254_vm1, %v6291_v12  ;;  %v1439_v38 = vadd.f32 %v1355_v29, %v1093_v22  ;;  %v1096_v29 = vadd.f32 %v6296_v0, %v6295_v11  ;;  %v5472_v12 = vpop.f32.mrf.mxu0  ;;  %v6314_v33 = vld [vmem:[#allocation44_spill] sm:$0xff] }
 0x24c   : > { %3863 = vmatmul.msk.f32.gmra.mxu0 %vm254_vm1, %v2736_v34 }
 0x24d   : > { %v1736_v9 = vadd.f32 %v6293_v13, %v1439_v38  ;;  %v6298_v13 = vld [vmem:[#allocation40_spill] sm:$0xff] }
 0x24f   : > { %3598 = vmatmul.msk.f32.gmra.mxu3 %vm254_vm1, %v6294_v10  ;;  %3882 = vmatmul.msk.f32.gmra.mxu1 %vm254_vm1, %v2992_v15  ;;  %v2046_v22 = vadd.f32 %v5108_v26, %v1736_v9  ;;  %v2738_v15 = vsel %vm725_vm2, %v2735_v39, %v2737_v6  ;;  %v2993_v26 = vrot.slane %v5138_v43, 2  ;;  %v5480_v9 = vld [vmem:[#allocation2 + $0x150] sm:$0xff]  ;;  %v5482_v10 = vld [vmem:[#allocation2 + $0x158] sm:$0xff] }
 0x250   : > { %v2739_v39 = vrot.slane %v5480_v9, 1  ;;  %v2740_v6 = vrot.slane %v5482_v10, 1 }
 0x251   : > { %v5470_v34 = vadd.f32 %v2256_v36, %v2046_v22  ;;  %v5484_v36 = vpop.f32.mrf.mxu1  ;;  %v2995_v11 = vsel %vm1170_vm4, %v2993_v26, %v2994_v63 }
 0x252   : > { %v1358_v38 = vpop.f32.mrf.mxu3  ;;  %6299 = vst [vmem:[#allocation36_spill] sm:$0xff] %v5484_v36 }
 0x253   : > { %6297 = vst [vmem:[#allocation33_spill] sm:$0xff] %v5470_v34  ;;  %3749 = vmatmul.msk.f32.gmra.mxu2 %vm254_vm1, %v6298_v13  ;;  %v1440_v35 = vadd.f32 %v1358_v38, %v1096_v29  ;;  %v2259_v29 = vpop.f32.mrf.mxu2  ;;  %v6300_v38 = vld [vmem:[#allocation50_spill] sm:$0xff]  ;;  %v5504_v34 = vpop.f32.mrf.mxu0 }
 0x254   : > { %3864 = vmatmul.msk.f32.gmra.mxu0 %vm254_vm1, %v2738_v15  ;;  %v6301_v15 = vld [vmem:[#allocation52_spill] sm:$0xff] }
 0x255   : > { %v1737_v22 = vadd.f32 %v4823_v17, %v1440_v35  ;;  %v1099_v49 = vadd.f32 %v6301_v15, %v6300_v38  ;;  %v6303_v35 = vld [vmem:[#allocation43_spill] sm:$0xff] }
 0x256   : > { %v6308_v38 = vld [vmem:[#allocation55_spill] sm:$0xff] }
 0x257   : > { %3599 = vmatmul.msk.f32.gmra.mxu3 %vm254_vm1, %v6285_v54  ;;  %3883 = vmatmul.msk.f32.gmra.mxu1 %vm254_vm1, %v2995_v11  ;;  %v2047_v0 = vadd.f32 %v5130_v27, %v1737_v22  ;;  %v2996_v54 = vrot.slane %v5155_v45, 2  ;;  %v2741_v11 = vsel %vm725_vm2, %v2739_v39, %v2740_v6  ;;  %v5507_v27 = vld [vmem:[#allocation2 + $0x160] sm:$0x3] }
 0x258   : > { %v2742_v45 = vrot.slane %v5507_v27, 1 }
 0x259   : > { %v5496_v36 = vadd.f32 %v2259_v29, %v2047_v0  ;;  %v2997_v22 = vsel %vm1170_vm4, %v2994_v63, %v2996_v54  ;;  %v5510_v0 = vpop.f32.mrf.mxu1  ;;  %v6306_v29 = vld [vmem:[#allocation35_spill] sm:$0xff]  ;;  %v2998_v54 = vrot.slane %v5177_v48, 2 }
 0x25a   : > { %v1361_v17 = vpop.f32.mrf.mxu3  ;;  %6305 = vst [vmem:[#allocation19_spill] sm:$0xff] %v5510_v0  ;;  %v2743_v63 = vsel %vm725_vm2, %v2740_v6, %v2742_v45  ;;  %v6311_v45 = vld [vmem:[#allocation57_spill] sm:$0xff] }
 0x25b   : > { %6302 = vst [vmem:[#allocation25_spill] sm:$0xff] %v5496_v36  ;;  %3750 = vmatmul.msk.f32.gmra.mxu2 %vm254_vm1, %v6303_v35  ;;  %v5501_v26 = vadd.f32 %v1361_v17, %v1099_v49  ;;  %v6307_v49 = vld [vmem:[#allocation54_spill] sm:$0xff]  ;;  %v6309_v17 = vld [vmem:[#allocation49_spill] sm:$0xff]  ;;  %v2999_v35 = vrot.slane %v5175_v8, 2  ;;  %v5530_v0 = vpop.f32.mrf.mxu0 }
 0x25c   : > { %3865 = vmatmul.msk.f32.gmra.mxu0 %vm254_vm1, %v2741_v11  ;;  %v1102_v39 = vadd.f32 %v6308_v38, %v6307_v49 }
 0x25d   : > { %6304 = vst [vmem:[#allocation37_spill] sm:$0xff] %v5501_v26  ;;  %v3000_v49 = vsel %vm1170_vm4, %v2998_v54, %v2999_v35  ;;  %v3001_v54 = vrot.slane %v5197_v53, 2  ;;  %v1108_v53 = vadd.f32 %v4890_v42, %v4886_v19 }
 0x25f   : > { %3600 = vmatmul.msk.f32.gmra.mxu3 %vm254_vm1, %v6306_v29  ;;  %3884 = vmatmul.msk.f32.gmra.mxu1 %vm254_vm1, %v2997_v22  ;;  %v5526_v22 = vld [vmem:[#allocation2 + $0x168] sm:$0xff]  ;;  %v5528_v29 = vld [vmem:[#allocation2 + $0x170] sm:$0xff]  ;;  %v3002_v26 = vsel %vm1170_vm4, %v2999_v35, %v3001_v54  ;;  %v5570_v54 = vld [vmem:[#allocation2 + $0x180] sm:$0xff] }
 0x260   : > { %v2744_v38 = vrot.slane %v5526_v22, 1  ;;  %v2745_v6 = vrot.slane %v5528_v29, 1  ;;  %v2749_v19 = vrot.slane %v5570_v54, 1 }
 0x262   : > { %v1364_v15 = vpop.f32.mrf.mxu3 }
 0x263   : > { %3751 = vmatmul.msk.f32.gmra.mxu2 %vm254_vm1, %v6309_v17  ;;  %v5521_v11 = vadd.f32 %v1364_v15, %v1102_v39  ;;  %v1105_v39 = vadd.f32 %v6311_v45, %v4859_v31  ;;  %v5540_v15 = vpop.f32.mrf.mxu1 }
 0x264   : > { %3866 = vmatmul.msk.f32.gmra.mxu0 %vm254_vm1, %v2743_v63  ;;  %6312 = vst [vmem:[#allocation39_spill] sm:$0xff] %v5540_v15 }
 0x265   : > { %6310 = vst [vmem:[#allocation38_spill] sm:$0xff] %v5521_v11  ;;  %v6313_v11 = vld [vmem:[#allocation51_spill] sm:$0xff] }
 0x267   : > { %3601 = vmatmul.msk.f32.gmra.mxu3 %vm254_vm1, %v6298_v13  ;;  %3885 = vmatmul.msk.f32.gmra.mxu1 %vm254_vm1, %v3000_v49  ;;  %v2746_v13 = vsel %vm725_vm2, %v2744_v38, %v2745_v6  ;;  %v5549_v49 = vld [vmem:[#allocation2 + $0x178] sm:$0x3]  ;;  %v6315_v38 = vld [vmem:[#allocation58_spill] sm:$0xff] }
 0x268   : > { %v2747_v31 = vrot.slane %v5549_v49, 1 }
 0x26a   : > { %v1367_v63 = vpop.f32.mrf.mxu3 }
 0x26b   : > { %3752 = vmatmul.msk.f32.gmra.mxu2 %vm254_vm1, %v6313_v11  ;;  %v5545_v36 = vadd.f32 %v1367_v63, %v1105_v39  ;;  %v5556_v11 = vpop.f32.mrf.mxu0  ;;  %v3004_v39 = vrot.slane %v5215_v4, 2  ;;  %v5563_v63 = vpop.f32.mrf.mxu1 }
 0x26c   : > { %3867 = vmatmul.msk.f32.gmra.mxu0 %vm254_vm1, %v2746_v13  ;;  %6316 = vst [vmem:[#allocation32_spill] sm:$0xff] %v5563_v63  ;;  %v5572_v13 = vld [vmem:[#allocation2 + $0x188] sm:$0xff] }
 0x26f   : > { %3602 = vmatmul.msk.f32.gmra.mxu3 %vm254_vm1, %v6314_v33  ;;  %3886 = vmatmul.msk.f32.gmra.mxu1 %vm254_vm1, %v3002_v26  ;;  %v2748_v33 = vsel %vm725_vm2, %v2745_v6, %v2747_v31  ;;  %v3003_v26 = vrot.slane %v5217_v62, 2  ;;  %v1111_v6 = vadd.f32 %v4908_v2, %v4904_v37  ;;  %v6318_v2 = vld [vmem:[#allocation53_spill] sm:$0xff] }
 0x271   : > { %v3005_v42 = vsel %vm1170_vm4, %v3003_v26, %v3004_v39  ;;  %v3006_v26 = vrot.slane %v5238_v14, 2  ;;  %v1114_v14 = vadd.f32 %v4930_v46, %v4927_v61  ;;  %v6319_v61 = vld [vmem:[#allocation64_spill] sm:$0xff] }
 0x272   : > { %v1370_v45 = vpop.f32.mrf.mxu3  ;;  %v1117_v46 = vadd.f32 %v6319_v61, %v4946_v50  ;;  %v3013_v61 = vrot.slane %v5298_v24, 2 }
 0x273   : > { %3753 = vmatmul.msk.f32.gmra.mxu2 %vm254_vm1, %v6315_v38  ;;  %v5565_v35 = vadd.f32 %v1370_v45, %v1108_v53  ;;  %v2750_v53 = vrot.slane %v5572_v13, 1  ;;  %v5582_v31 = vpop.f32.mrf.mxu0  ;;  %v5593_v15 = vpop.f32.mrf.mxu1  ;;  %v3007_v37 = vsel %vm1170_vm4, %v3004_v39, %v3006_v26 }
 0x274   : > { %3868 = vmatmul.msk.f32.gmra.mxu0 %vm254_vm1, %v2748_v33  ;;  %v6317_v33 = vld [vmem:[#allocation59_spill] sm:$0xff] }
 0x277   : > { %3603 = vmatmul.msk.f32.gmra.mxu3 %vm254_vm1, %v6309_v17  ;;  %3887 = vmatmul.msk.f32.gmra.mxu1 %vm254_vm1, %v3005_v42  ;;  %v2751_v17 = vsel %vm725_vm2, %v2749_v19, %v2750_v53  ;;  %v5591_v42 = vld [vmem:[#allocation2 + $0x190] sm:$0x3]  ;;  %v3008_v19 = vrot.slane %v5260_v1, 2 }
 0x27a   : > { %v1373_v45 = vpop.f32.mrf.mxu3 }
 0x27b   : > { %3754 = vmatmul.msk.f32.gmra.mxu2 %vm254_vm1, %v6317_v33  ;;  %v5587_v63 = vadd.f32 %v1373_v45, %v1111_v6  ;;  %v2752_v33 = vrot.slane %v5591_v42, 1  ;;  %v3009_v45 = vrot.slane %v5262_v25, 2  ;;  %v5609_v26 = vpop.f32.mrf.mxu0 }
 0x27c   : > { %3869 = vmatmul.msk.f32.gmra.mxu0 %vm254_vm1, %v2751_v17 }
 0x27d   : > { %v2753_v39 = vsel %vm725_vm2, %v2750_v53, %v2752_v33  ;;  %v3011_v53 = vrot.slane %v5282_v21, 2 }
 0x27f   : > { %3604 = vmatmul.msk.f32.gmra.mxu3 %vm254_vm1, %v6318_v2  ;;  %3888 = vmatmul.msk.f32.gmra.mxu1 %vm254_vm1, %v3007_v37  ;;  %v3010_v37 = vsel %vm1170_vm4, %v3008_v19, %v3009_v45  ;;  %v5613_v2 = vpop.f32.mrf.mxu1  ;;  %v6322_v19 = vld [vmem:[#allocation67_spill] sm:$0xff] }
 0x282   : > { %v1376_v6 = vpop.f32.mrf.mxu3 }
 0x283   : > { %3755 = vmatmul.msk.f32.gmra.mxu2 %vm254_vm1, %v5247_v32  ;;  %v5606_v17 = vadd.f32 %v1376_v6, %v1114_v14  ;;  %v3012_v14 = vsel %vm1170_vm4, %v3009_v45, %v3011_v53  ;;  %v6320_v6 = vld [vmem:[#allocation60_spill] sm:$0xff] }
 0x284   : > { %3870 = vmatmul.msk.f32.gmra.mxu0 %vm254_vm1, %v2753_v39 }
 0x287   : > { %3605 = vmatmul.msk.f32.gmra.mxu3 %vm254_vm1, %v6315_v38  ;;  %3889 = vmatmul.msk.f32.gmra.mxu1 %vm254_vm1, %v3010_v37  ;;  %v6321_v38 = vld [vmem:[#allocation66_spill] sm:$0xff]  ;;  %v5631_v37 = vpop.f32.mrf.mxu1 }
 0x288   : > { %v1120_v39 = vadd.f32 %v6322_v19, %v6321_v38  ;;  %v6323_v38 = vld [vmem:[#allocation69_spill] sm:$0xff] }
 0x28a   : > { %v1379_v32 = vpop.f32.mrf.mxu3 }
 0x28b   : > { %3756 = vmatmul.msk.f32.gmra.mxu2 %vm254_vm1, %v5250_v18  ;;  %v5623_v33 = vadd.f32 %v1379_v32, %v1117_v46  ;;  %v3014_v18 = vrot.slane %v5300_v41, 2  ;;  %v3016_v32 = vrot.slane %v5319_v3, 2 }
 0x28d   : > { %v3015_v46 = vsel %vm1170_vm4, %v3013_v61, %v3014_v18 }
 0x28f   : > { %3606 = vmatmul.msk.f32.gmra.mxu3 %vm254_vm1, %v6320_v6  ;;  %3890 = vmatmul.msk.f32.gmra.mxu1 %vm254_vm1, %v3012_v14  ;;  %v5642_v53 = vpop.f32.mrf.mxu1  ;;  %v3017_v6 = vsel %vm1170_vm4, %v3014_v18, %v3016_v32 }
 0x292   : > { %v1382_v50 = vpop.f32.mrf.mxu3 }
 0x293   : > { %v5635_v21 = vadd.f32 %v1382_v50, %v1120_v39  ;;  %v3019_v39 = vrot.slane %v5344_v56, 2  ;;  %v6324_v50 = vld [vmem:[#allocation71_spill] sm:$0xff] }
 0x297   : > { %3807 = vmatmul.msk.f32.vlgmr.msra.gmra.mxu3 %vm254_vm1, %v4989_v57  ;;  %3891 = vmatmul.msk.f32.gmra.mxu1 %vm254_vm1, %v3015_v46  ;;  %v3018_v57 = vrot.slane %v5342_v52, 2  ;;  %v5656_v3 = vpop.f32.mrf.mxu1  ;;  %v3021_v46 = vrot.slane %v5365_v58, 2 }
 0x298   : > { %6325 = vst [vmem:[#allocation41_spill] sm:$0xff] %v5656_v3 }
 0x29a   : > { %v1385_v45 = vpop.f32.mrf.mxu3 }
 0x29b   : > { %v5645_v14 = vadd.f32 %v1385_v45, %v4999_v59  ;;  %v3020_v59 = vsel %vm1170_vm4, %v3018_v57, %v3019_v39  ;;  %v6326_v45 = vld [vmem:[#allocation74_spill] sm:$0xff] }
 0x29f   : > { %3808 = vmatmul.msk.f32.gmra.mxu3 %vm254_vm1, %v6323_v38  ;;  %3892 = vmatmul.msk.f32.gmra.mxu1 %vm254_vm1, %v3017_v6  ;;  %v3022_v6 = vsel %vm1170_vm4, %v3019_v39, %v3021_v46  ;;  %v5667_v38 = vpop.f32.mrf.mxu1  ;;  %v3026_v46 = vrot.slane %v5411_v28, 2 }
 0x2a0   : > { %6327 = vst [vmem:[#allocation42_spill] sm:$0xff] %v5667_v38 }
 0x2a2   : > { %v1388_v19 = vpop.f32.mrf.mxu3 }
 0x2a3   : > { %v5654_v61 = vadd.f32 %v1388_v19, %v6324_v50  ;;  %v6328_v19 = vld [vmem:[#allocation72_spill] sm:$0xff]  ;;  %v3024_v50 = vrot.slane %v5390_v5, 2 }
 0x2a7   : > { %3809 = vmatmul.msk.f32.gmra.mxu3 %vm254_vm1, %v5025_v16  ;;  %3893 = vmatmul.msk.f32.gmra.mxu1 %vm254_vm1, %v3020_v59  ;;  %v3023_v16 = vrot.slane %v5388_v55, 2  ;;  %v6329_v59 = vld [vmem:[#allocation76_spill] sm:$0xff]  ;;  %v5681_v39 = vpop.f32.mrf.mxu1 }
 0x2a8   : > { %6330 = vst [vmem:[#allocation45_spill] sm:$0xff] %v5681_v39 }
 0x2a9   : > { %v3025_v58 = vsel %vm1170_vm4, %v3023_v16, %v3024_v50  ;;  %v3029_v16 = vrot.slane %v5436_v60, 2 }
 0x2aa   : > { %v1391_v18 = vpop.f32.mrf.mxu3 }
 0x2ab   : > { %v5664_v32 = vadd.f32 %v1391_v18, %v6326_v45  ;;  %v6331_v45 = vld [vmem:[#allocation77_spill] sm:$0xff] }
 0x2af   : > { %3810 = vmatmul.msk.f32.gmra.mxu3 %vm254_vm1, %v6328_v19  ;;  %3894 = vmatmul.msk.f32.gmra.mxu1 %vm254_vm1, %v3022_v6  ;;  %v3027_v19 = vsel %vm1170_vm4, %v3024_v50, %v3026_v46  ;;  %v3031_v50 = vrot.slane %v5459_v40, 2 }
 0x2b2   : > { %v1394_v57 = vpop.f32.mrf.mxu3 }
 0x2b3   : > { %v5675_v3 = vadd.f32 %v1394_v57, %v6329_v59  ;;  %v5693_v59 = vpop.f32.mrf.mxu1 }
 0x2b4   : > { %6332 = vst [vmem:[#allocation34_spill] sm:$0xff] %v5693_v59 }
 0x2b7   : > { %3811 = vmatmul.msk.f32.gmra.mxu3 %vm254_vm1, %v5064_v51  ;;  %3895 = vmatmul.msk.f32.gmra.mxu1 %vm254_vm1, %v3025_v58  ;;  %v3028_v51 = vrot.slane %v5434_v7, 2  ;;  %v6333_v58 = vld [vmem:[#allocation79_spill] sm:$0xff] }
 0x2b9   : > { %v3030_v28 = vsel %vm1170_vm4, %v3028_v51, %v3029_v16  ;;  %v3034_v51 = vrot.slane %v5482_v10, 2 }
 0x2ba   : > { %v1397_v18 = vpop.f32.mrf.mxu3 }
 0x2bb   : > { %v5685_v6 = vadd.f32 %v1397_v18, %v6331_v45  ;;  %v6334_v18 = vld [vmem:[#allocation81_spill] sm:$0xff]  ;;  %v5706_v45 = vpop.f32.mrf.mxu1 }
 0x2bf   : > { %3812 = vmatmul.msk.f32.gmra.mxu3 %vm254_vm1, %v5060_v47  ;;  %3896 = vmatmul.msk.f32.gmra.mxu1 %vm254_vm1, %v3027_v19  ;;  %v3032_v19 = vsel %vm1170_vm4, %v3029_v16, %v3031_v50  ;;  %v3036_v16 = vrot.slane %v5507_v27, 2  ;;  %v6336_v50 = vld [vmem:[#allocation85_spill] sm:$0xff] }
 0x2c2   : > { %v1400_v57 = vpop.f32.mrf.mxu3 }
 0x2c3   : > { %v5696_v39 = vadd.f32 %v1400_v57, %v6333_v58  ;;  %v6335_v58 = vld [vmem:[#allocation83_spill] sm:$0xff] }
 0x2c7   : > { %3813 = vmatmul.msk.f32.gmra.mxu3 %vm254_vm1, %v5101_v44  ;;  %3897 = vmatmul.msk.f32.gmra.mxu1 %vm254_vm1, %v3030_v28  ;;  %v3033_v44 = vrot.slane %v5480_v9, 2 }
 0x2c9   : > { %v3035_v40 = vsel %vm1170_vm4, %v3033_v44, %v3034_v51 }
 0x2ca   : > { %v1403_v47 = vpop.f32.mrf.mxu3 }
 0x2cb   : > { %v5704_v46 = vadd.f32 %v1403_v47, %v6334_v18  ;;  %v5718_v47 = vpop.f32.mrf.mxu1 }
 0x2cf   : > { %3814 = vmatmul.msk.f32.gmra.mxu3 %vm254_vm1, %v5097_v23  ;;  %3898 = vmatmul.msk.f32.gmra.mxu1 %vm254_vm1, %v3032_v19  ;;  %v3037_v19 = vsel %vm1170_vm4, %v3034_v51, %v3036_v16  ;;  %v3041_v51 = vrot.slane %v5549_v49, 2  ;;  %v6338_v16 = vld [vmem:[#allocation6_spill] sm:$0xff] }
 0x2d2   : > { %v1406_v57 = vpop.f32.mrf.mxu3 }
 0x2d3   : > { %v5715_v28 = vadd.f32 %v1406_v57, %v6335_v58  ;;  %v5731_v57 = vpop.f32.mrf.mxu1  ;;  %v3039_v58 = vrot.slane %v5528_v29, 2 }
 0x2d7   : > { %3815 = vmatmul.msk.f32.gmra.mxu3 %vm254_vm1, %v5138_v43  ;;  %3899 = vmatmul.msk.f32.gmra.mxu1 %vm254_vm1, %v3035_v40  ;;  %v3038_v43 = vrot.slane %v5526_v22, 2  ;;  %v6337_v40 = vld [vmem:[#allocation3_spill] sm:$0xff] }
 0x2d9   : > { %v3040_v27 = vsel %vm1170_vm4, %v3038_v43, %v3039_v58  ;;  %v3044_v43 = vrot.slane %v5572_v13, 2 }
 0x2da   : > { %v1409_v23 = vpop.f32.mrf.mxu3 }
 0x2db   : > { %v5725_v18 = vadd.f32 %v1409_v23, %v6336_v50  ;;  %v5743_v23 = vpop.f32.mrf.mxu1 }
 0x2df   : > { %3816 = vmatmul.msk.f32.gmra.mxu3 %vm254_vm1, %v5136_v20  ;;  %3900 = vmatmul.msk.f32.gmra.mxu1 %vm254_vm1, %v3037_v19  ;;  %v3042_v19 = vsel %vm1170_vm4, %v3039_v58, %v3041_v51  ;;  %v3046_v58 = vrot.slane %v5591_v42, 2  ;;  %v6340_v51 = vld [vmem:[#allocation90_spill] sm:$0xff] }
 0x2e2   : > { %v1412_v44 = vpop.f32.mrf.mxu3 }
 0x2e3   : > { %v5736_v59 = vadd.f32 %v1412_v44, %v6337_v40  ;;  %v6339_v40 = vld [vmem:[#allocation10_spill] sm:$0xff]  ;;  %v5757_v49 = vpop.f32.mrf.mxu1 }
 0x2e7   : > { %3817 = vmatmul.msk.f32.gmra.mxu3 %vm254_vm1, %v5177_v48  ;;  %3901 = vmatmul.msk.f32.gmra.mxu1 %vm254_vm1, %v3040_v27  ;;  %v3043_v48 = vrot.slane %v5570_v54, 2 }
 0x2ea   : > { %v1415_v20 = vpop.f32.mrf.mxu3 }
 0x2eb   : > { %v5746_v50 = vadd.f32 %v1415_v20, %v6338_v16  ;;  %v3045_v20 = vsel %vm1170_vm4, %v3043_v48, %v3044_v43  ;;  %v5768_v38 = vpop.f32.mrf.mxu1  ;;  %v6341_v48 = vld [vmem:[#allocation17_spill] sm:$0xff] }
 0x2ef   : > { %3818 = vmatmul.msk.f32.gmra.mxu3 %vm254_vm1, %v5175_v8  ;;  %3902 = vmatmul.msk.f32.gmra.mxu1 %vm254_vm1, %v3042_v19  ;;  %v3047_v19 = vsel %vm1170_vm4, %v3044_v43, %v3046_v58  ;;  %v5788_v58 = vpop.f32.mrf.mxu0 }
 0x2f2   : > { %v1418_v44 = vpop.f32.mrf.mxu3 }
 0x2f3   : > { %v5755_v27 = vadd.f32 %v1418_v44, %v6339_v40  ;;  %v6342_v40 = vld [vmem:[#allocation92_spill] sm:$0xff] }
 0x2f7   : > { %3819 = vmatmul.msk.f32.gmra.mxu3 %vm254_vm1, %v5217_v62  ;;  %3903 = vmatmul.msk.f32.gmra.mxu1 %vm254_vm1, %v3045_v20 }
 0x2fa   : > { %v1421_v8 = vpop.f32.mrf.mxu3 }
 0x2fb   : > { %v5765_v16 = vadd.f32 %v1421_v8, %v6340_v51  ;;  %v6343_v8 = vld [vmem:[#allocation12_spill] sm:$0xff] }
 0x2ff   : > { %3820 = vmatmul.msk.f32.gmra.mxu3 %vm254_vm1, %v5215_v4  ;;  %3904 = vmatmul.msk.f32.gmra.mxu1 %vm254_vm1, %v3047_v19  ;;  %v6344_v19 = vld [vmem:[#allocation9_spill] sm:$0xff] }
 0x302   : > { %v1424_v44 = vpop.f32.mrf.mxu3 }
 0x303   : > { %v5774_v62 = vadd.f32 %v1424_v44, %v6341_v48  ;;  %v5791_v44 = vpop.f32.mrf.mxu1 }
 0x307   : > { %3821 = vmatmul.msk.f32.gmra.mxu3 %vm254_vm1, %v5260_v1 }
 0x30a   : > { %v1427_v42 = vpop.f32.mrf.mxu3 }
 0x30b   : > { %v5779_v20 = vadd.f32 %v1427_v42, %v6342_v40 }
 0x30f   : > { %3822 = vmatmul.msk.f32.gmra.mxu3 %vm254_vm1, %v5262_v25  ;;  %v5797_v25 = vld [vmem:[%s6121_s4] ss:$0 sm:$0xff] }
 0x312   : > { %v1430_v43 = vpop.f32.mrf.mxu3 }
 0x313   : > { %v5784_v4 = vadd.f32 %v1430_v43, %v6343_v8  ;;  %v6345_v43 = vld [vmem:[#allocation21_spill] sm:$0xff] }
 0x317   : > { %3823 = vmatmul.msk.f32.gmra.mxu3 %vm254_vm1, %v5298_v24 }
 0x31a   : > { %v2535_v51 = vpop.f32.mrf.mxu3 }
 0x31b   : > { %v2631_v1 = vadd.f32 %v2535_v51, %v6344_v19  ;;  %v5811_v51 = vpop.f32.mrf.mxu0 }
 0x31d   : > { %v2941_v48 = vadd.f32 %v5472_v12, %v2631_v1 }
 0x31f   : > { %v3235_v42 = vadd.f32 %v5706_v45, %v2941_v48  ;;  %3824 = vmatmul.msk.f32.gmra.mxu3 %vm254_vm1, %v5300_v41  ;;  %v5816_v45 = vpop.f32.mrf.mxu1  ;;  %v5822_v48 = vpop.f32.mrf.mxu2 }
 0x321   : > { %v3271_v24 = vadd.f32 %v5797_v25, %v3235_v42 }
 0x322   : > { %v2538_v12 = vpop.f32.mrf.mxu3 }
 0x323   : > { %v3303_v40 = vmax.f32 %v3271_v24, 0.0  ;;  %v2632_v8 = vadd.f32 %v2538_v12, %v6345_v43  ;;  %v6346_v12 = vld [vmem:[#allocation24_spill] sm:$0xff] }
 0x325   : > { %3335 = vst.msk [vmem:[%s5808_s7] sm:$0xff] %vm254_vm1, %v3303_v40  ;;  %v2942_v41 = vadd.f32 %v5504_v34, %v2632_v8  ;;  %v5828_v40 = vpop.f32.mrf.mxu0 }
 0x327   : > { %v3236_v19 = vadd.f32 %v5718_v47, %v2942_v41  ;;  %3825 = vmatmul.msk.f32.gmra.mxu3 %vm254_vm1, %v5342_v52  ;;  %v5833_v52 = vpop.f32.mrf.mxu1 }
 0x329   : > { %v3272_v1 = vadd.f32 %v5797_v25, %v3236_v19 }
 0x32a   : > { %v2541_v42 = vpop.f32.mrf.mxu3 }
 0x32b   : > { %v3304_v24 = vmax.f32 %v3272_v1, 0.0  ;;  %v2633_v43 = vadd.f32 %v2541_v42, %v6346_v12  ;;  %v5837_v42 = vpop.f32.mrf.mxu2 }
 0x32d   : > { %3336 = vst.msk [vmem:[%s5808_s7 + $0x8] sm:$0xff] %vm254_vm1, %v3304_v24  ;;  %v2943_v34 = vadd.f32 %v5530_v0, %v2633_v43 }
 0x32f   : > { %v3237_v47 = vadd.f32 %v5731_v57, %v2943_v34  ;;  %3826 = vmatmul.msk.f32.gmra.mxu3 %vm254_vm1, %v5344_v56  ;;  %v5845_v56 = vpop.f32.mrf.mxu0  ;;  %v5848_v12 = vpop.f32.mrf.mxu1  ;;  %v6347_v34 = vld [vmem:[#allocation29_spill] sm:$0xff] }
 0x331   : > { %v3273_v8 = vadd.f32 %v5797_v25, %v3237_v47 }
 0x332   : > { %v2544_v41 = vpop.f32.mrf.mxu3 }
 0x333   : > { %v3305_v19 = vmax.f32 %v3273_v8, 0.0  ;;  %v2634_v1 = vadd.f32 %v2544_v41, %v5404_v30  ;;  %v5854_v8 = vpop.f32.mrf.mxu2 }
 0x335   : > { %3337 = vst.msk [vmem:[%s5808_s7 + $0x10] sm:$0xff] %vm254_vm1, %v3305_v19  ;;  %v2944_v0 = vadd.f32 %v5556_v11, %v2634_v1 }
 0x337   : > { %v3238_v57 = vadd.f32 %v5743_v23, %v2944_v0  ;;  %3827 = vmatmul.msk.f32.gmra.mxu3 %vm254_vm1, %v5388_v55  ;;  %v5860_v41 = vpop.f32.mrf.mxu0  ;;  %v6348_v0 = vld [vmem:[#allocation23_spill] sm:$0xff] }
 0x339   : > { %v3274_v24 = vadd.f32 %v5797_v25, %v3238_v57 }
 0x33a   : > { %v2547_v43 = vpop.f32.mrf.mxu3 }
 0x33b   : > { %v3306_v30 = vmax.f32 %v3274_v24, 0.0  ;;  %v2635_v47 = vadd.f32 %v2547_v43, %v6347_v34  ;;  %v5863_v24 = vpop.f32.mrf.mxu1 }
 0x33d   : > { %3338 = vst.msk [vmem:[%s5808_s7 + $0x18] sm:$0xff] %vm254_vm1, %v3306_v30  ;;  %v2945_v11 = vadd.f32 %v5582_v31, %v2635_v47  ;;  %v6349_v47 = vld [vmem:[#allocation33_spill] sm:$0xff] }
 0x33f   : > { %v3239_v23 = vadd.f32 %v5757_v49, %v2945_v11  ;;  %3828 = vmatmul.msk.f32.gmra.mxu3 %vm254_vm1, %v5390_v5  ;;  %v5871_v5 = vpop.f32.mrf.mxu2 }
 0x341   : > { %v3275_v55 = vadd.f32 %v5797_v25, %v3239_v23  ;;  %v5875_v23 = vpop.f32.mrf.mxu0 }
 0x342   : > { %v2550_v19 = vpop.f32.mrf.mxu3 }
 0x343   : > { %v3307_v1 = vmax.f32 %v3275_v55, 0.0  ;;  %v2636_v57 = vadd.f32 %v2550_v19, %v6348_v0  ;;  %v5880_v55 = vpop.f32.mrf.mxu1  ;;  %v6351_v19 = vld [vmem:[#allocation56_spill] sm:$0xff] }
 0x345   : > { %3339 = vst.msk [vmem:[%s5808_s7 + $0x20] sm:$0xff] %vm254_vm1, %v3307_v1  ;;  %v2946_v31 = vadd.f32 %v5609_v26, %v2636_v57 }
 0x347   : > { %v3240_v49 = vadd.f32 %v5768_v38, %v2946_v31  ;;  %3829 = vmatmul.msk.f32.gmra.mxu3 %vm254_vm1, %v5434_v7  ;;  %v6350_v7 = vld [vmem:[#allocation37_spill] sm:$0xff]  ;;  %v5888_v57 = vpop.f32.mrf.mxu2 }
 0x348   : > { %v1738_v1 = vadd.f32 %v6351_v19, %v6350_v7 }
 0x349   : > { %v3276_v43 = vadd.f32 %v5797_v25, %v3240_v49 }
 0x34a   : > { %v2553_v30 = vpop.f32.mrf.mxu3 }
 0x34b   : > { %v3308_v34 = vmax.f32 %v3276_v43, 0.0  ;;  %v2637_v11 = vadd.f32 %v2553_v30, %v6349_v47  ;;  %v6352_v43 = vld [vmem:[#allocation25_spill] sm:$0xff]  ;;  %v5895_v47 = vpop.f32.mrf.mxu0 }
 0x34d   : > { %3340 = vst.msk [vmem:[%s5808_s7 + $0x28] sm:$0xff] %vm254_vm1, %v3308_v34  ;;  %v2947_v26 = vadd.f32 %v5788_v58, %v2637_v11  ;;  %v5900_v11 = vpop.f32.mrf.mxu1 }
 0x34f   : > { %v3241_v38 = vadd.f32 %v5791_v44, %v2947_v26  ;;  %3830 = vmatmul.msk.f32.gmra.mxu3 %vm254_vm1, %v5436_v60  ;;  %v6353_v44 = vld [vmem:[#allocation86_spill] sm:$0xff] }
 0x350   : > { %v2048_v34 = vadd.f32 %v6353_v44, %v1738_v1  ;;  %v6354_v26 = vld [vmem:[#allocation38_spill] sm:$0xff] }
 0x351   : > { %v3277_v0 = vadd.f32 %v5797_v25, %v3241_v38  ;;  %v6355_v38 = vld [vmem:[#allocation61_spill] sm:$0xff] }
 0x352   : > { %v2556_v31 = vpop.f32.mrf.mxu3  ;;  %v1739_v7 = vadd.f32 %v6355_v38, %v6354_v26 }
 0x353   : > { %v3309_v49 = vmax.f32 %v3277_v0, 0.0  ;;  %v2638_v30 = vadd.f32 %v2556_v31, %v6352_v43  ;;  %v2342_v0 = vadd.f32 %v5822_v48, %v2048_v34  ;;  %v6357_v48 = vld [vmem:[#allocation62_spill] sm:$0xff] }
 0x354   : > { %v1740_v44 = vadd.f32 %v6357_v48, %v5545_v36  ;;  %v6360_v48 = vld [vmem:[#allocation11_spill] sm:$0xff] }
 0x355   : > { %3341 = vst.msk [vmem:[%s5808_s7 + $0x30] sm:$0xff] %vm254_vm1, %v3309_v49  ;;  %v2948_v58 = vadd.f32 %v5811_v51, %v2638_v30  ;;  %v5906_v49 = vpop.f32.mrf.mxu2  ;;  %v5921_v26 = vpop.f32.mrf.mxu1 }
 0x357   : > { %v3242_v60 = vadd.f32 %v5816_v45, %v2948_v58  ;;  %3831 = vmatmul.msk.f32.gmra.mxu3 %vm254_vm1, %v5480_v9  ;;  %v6356_v9 = vld [vmem:[#allocation87_spill] sm:$0xff]  ;;  %v5915_v58 = vpop.f32.mrf.mxu0 }
 0x358   : > { %v2049_v43 = vadd.f32 %v6356_v9, %v1739_v7 }
 0x359   : > { %v3278_v19 = vadd.f32 %v5797_v25, %v3242_v60 }
 0x35a   : > { %v2559_v31 = vpop.f32.mrf.mxu3  ;;  %v2343_v60 = vadd.f32 %v5837_v42, %v2049_v43  ;;  %v6359_v42 = vld [vmem:[#allocation63_spill] sm:$0xff] }
 0x35b   : > { %v3310_v51 = vmax.f32 %v3278_v19, 0.0  ;;  %v2639_v1 = vadd.f32 %v2559_v31, %v2342_v0  ;;  %v1741_v31 = vadd.f32 %v6359_v42, %v5565_v35 }
 0x35d   : > { %3342 = vst.msk [vmem:[%s5808_s7 + $0x38] sm:$0xff] %vm254_vm1, %v3310_v51  ;;  %v2949_v45 = vadd.f32 %v5828_v40, %v2639_v1  ;;  %v5927_v0 = vpop.f32.mrf.mxu2 }
 0x35f   : > { %v3243_v30 = vadd.f32 %v5833_v52, %v2949_v45  ;;  %3832 = vmatmul.msk.f32.gmra.mxu3 %vm254_vm1, %v5482_v10  ;;  %v6358_v10 = vld [vmem:[#allocation4_spill] sm:$0xff]  ;;  %v5936_v45 = vpop.f32.mrf.mxu0 }
 0x360   : > { %v2050_v19 = vadd.f32 %v6358_v10, %v1740_v44  ;;  %v6361_v44 = vld [vmem:[#allocation65_spill] sm:$0xff] }
 0x361   : > { %v3279_v34 = vadd.f32 %v5797_v25, %v3243_v30  ;;  %v5938_v30 = vpop.f32.mrf.mxu1 }
 0x362   : > { %v2562_v38 = vpop.f32.mrf.mxu3  ;;  %v2344_v1 = vadd.f32 %v5854_v8, %v2050_v19 }
 0x363   : > { %v3311_v40 = vmax.f32 %v3279_v34, 0.0  ;;  %v2640_v7 = vadd.f32 %v2562_v38, %v2343_v60  ;;  %v1742_v34 = vadd.f32 %v6361_v44, %v5587_v63 }
 0x365   : > { %3343 = vst.msk [vmem:[%s5808_s7 + $0x40] sm:$0xff] %vm254_vm1, %v3311_v40  ;;  %v2950_v52 = vadd.f32 %v5845_v56, %v2640_v7  ;;  %v5947_v8 = vpop.f32.mrf.mxu2  ;;  %v3802_v40 = vld [vmem:[#allocation2 + $0x198] sm:$0xff] }
 0x366   : > { %v3048_v19 = vrot.slane %v3802_v40, 2 }
 0x367   : > { %v3244_v36 = vadd.f32 %v5848_v12, %v2950_v52  ;;  %3833 = vmatmul.msk.f32.gmra.mxu3 %vm254_vm1, %v5526_v22  ;;  %v2051_v22 = vadd.f32 %v6360_v48, %v1741_v31  ;;  %v6362_v31 = vld [vmem:[#allocation91_spill] sm:$0xff] }
 0x368   : > { %v2052_v63 = vadd.f32 %v6362_v31, %v1742_v34  ;;  %v3804_v34 = vld [vmem:[#allocation2 + $0x1a8] sm:$0x3] }
 0x369   : > { %v3280_v51 = vadd.f32 %v5797_v25, %v3244_v36  ;;  %v2345_v38 = vadd.f32 %v5871_v5, %v2051_v22  ;;  %v3803_v36 = vld [vmem:[#allocation2 + $0x1a0] sm:$0xff] }
 0x36a   : > { %v2565_v9 = vpop.f32.mrf.mxu3  ;;  %v2755_v42 = vrot.slane %v3803_v36, 1  ;;  %v2346_v48 = vadd.f32 %v5888_v57, %v2052_v63 }
 0x36b   : > { %v3312_v56 = vmax.f32 %v3280_v51, 0.0  ;;  %v2641_v43 = vadd.f32 %v2565_v9, %v2344_v1  ;;  %v3049_v51 = vrot.slane %v3803_v36, 2  ;;  %v5959_v1 = vpop.f32.mrf.mxu1 }
 0x36d   : > { %3344 = vst.msk [vmem:[%s5808_s7 + $0x48] sm:$0xff] %vm254_vm1, %v3312_v56  ;;  %v2951_v12 = vadd.f32 %v5860_v41, %v2641_v43  ;;  %v2754_v41 = vrot.slane %v3802_v40, 1  ;;  %v3050_v56 = vsel %vm1170_vm4, %v3048_v19, %v3049_v51  ;;  %v2286_v22 = vpop.f32.mrf.mxu2 }
 0x36e   : > { %3905 = vmatmul.msk.f32.gmra.mxu1 %vm254_vm1, %v3050_v56 }
 0x36f   : > { %v3245_v35 = vadd.f32 %v5863_v24, %v2951_v12  ;;  %3834 = vmatmul.msk.f32.gmra.mxu3 %vm254_vm1, %v5528_v29  ;;  %v5953_v24 = vpop.f32.mrf.mxu0  ;;  %v2756_v5 = vsel %vm725_vm2, %v2754_v41, %v2755_v42  ;;  %v3051_v41 = vrot.slane %v3804_v34, 2 }
 0x370   : > { %3871 = vmatmul.msk.f32.gmra.mxu0 %vm254_vm1, %v2756_v5 }
 0x371   : > { %v3281_v60 = vadd.f32 %v5797_v25, %v3245_v35  ;;  %v3052_v57 = vsel %vm1170_vm4, %v3049_v51, %v3051_v41  ;;  %v6366_v51 = vld [vmem:[#allocation14_spill] sm:$0xff] }
 0x372   : > { %v2568_v7 = vpop.f32.mrf.mxu3 }
 0x373   : > { %v3313_v52 = vmax.f32 %v3281_v60, 0.0  ;;  %v2642_v10 = vadd.f32 %v2568_v7, %v2345_v38  ;;  %v2757_v60 = vrot.slane %v3804_v34, 1  ;;  %v6364_v38 = vld [vmem:[#allocation94_spill] sm:$0xff]  ;;  %v3187_v19 = vpop.f32.mrf.mxu1 }
 0x375   : > { %3345 = vst.msk [vmem:[%s5808_s7 + $0x50] sm:$0xff] %vm254_vm1, %v3313_v52  ;;  %v2952_v29 = vadd.f32 %v5875_v23, %v2642_v10  ;;  %v6363_v23 = vld [vmem:[#allocation68_spill] sm:$0xff] }
 0x376   : > { %v1743_v43 = vadd.f32 %v6363_v23, %v5606_v17  ;;  %v2758_v17 = vsel %vm725_vm2, %v2755_v42, %v2757_v60  ;;  %3906 = vmatmul.msk.f32.gmra.mxu1 %vm254_vm1, %v3052_v57 }
 0x377   : > { %v3246_v9 = vadd.f32 %v5880_v55, %v2952_v29  ;;  %3835 = vmatmul.msk.f32.gmra.mxu3 %vm254_vm1, %v5570_v54  ;;  %v2893_v52 = vpop.f32.mrf.mxu0 }
 0x378   : > { %v2053_v7 = vadd.f32 %v6364_v38, %v1743_v43  ;;  %3872 = vmatmul.msk.f32.gmra.mxu0 %vm254_vm1, %v2758_v17  ;;  %v6367_v43 = vld [vmem:[#allocation73_spill] sm:$0xff] }
 0x379   : > { %v3282_v12 = vadd.f32 %v5797_v25, %v3246_v9  ;;  %v2289_v9 = vpop.f32.mrf.mxu2 }
 0x37a   : > { %v2571_v35 = vpop.f32.mrf.mxu3  ;;  %v2347_v63 = vadd.f32 %v5906_v49, %v2053_v7 }
 0x37b   : > { %v3314_v44 = vmax.f32 %v3282_v12, 0.0  ;;  %v2643_v55 = vadd.f32 %v2571_v35, %v2346_v48  ;;  %v1745_v12 = vadd.f32 %v6367_v43, %v5635_v21  ;;  %v3190_v35 = vpop.f32.mrf.mxu1  ;;  %v6369_v21 = vld [vmem:[#allocation75_spill] sm:$0xff] }
 0x37c   : > { %v1746_v38 = vadd.f32 %v6369_v21, %v5645_v14  ;;  %v6371_v14 = vld [vmem:[#allocation78_spill] sm:$0xff] }
 0x37d   : > { %3346 = vst.msk [vmem:[%s5808_s7 + $0x58] sm:$0xff] %vm254_vm1, %v3314_v44  ;;  %v2953_v54 = vadd.f32 %v5895_v47, %v2643_v55  ;;  %v6365_v47 = vld [vmem:[#allocation70_spill] sm:$0xff] }
 0x37e   : > { %v1744_v29 = vadd.f32 %v6365_v47, %v5623_v33 }
 0x37f   : > { %v3247_v10 = vadd.f32 %v5900_v11, %v2953_v54  ;;  %3836 = vmatmul.msk.f32.gmra.mxu3 %vm254_vm1, %v5572_v13  ;;  %v2896_v33 = vpop.f32.mrf.mxu0 }
 0x380   : > { %v2054_v56 = vadd.f32 %v6366_v51, %v1744_v29 }
 0x381   : > { %v3283_v31 = vadd.f32 %v5797_v25, %v3247_v10 }
 0x382   : > { %v2574_v42 = vpop.f32.mrf.mxu3  ;;  %v2348_v48 = vadd.f32 %v5927_v0, %v2054_v56 }
 0x383   : > { %v3315_v5 = vmax.f32 %v3283_v31, 0.0  ;;  %v2644_v11 = vadd.f32 %v2574_v42, %v2347_v63  ;;  %v1747_v63 = vadd.f32 %v6371_v14, %v5654_v61 }
 0x385   : > { %3347 = vst.msk [vmem:[%s5808_s7 + $0x60] sm:$0xff] %vm254_vm1, %v3315_v5  ;;  %v2954_v13 = vadd.f32 %v5915_v58, %v2644_v11 }
 0x387   : > { %v3248_v23 = vadd.f32 %v5921_v26, %v2954_v13  ;;  %3837 = vmatmul.msk.f32.gmra.mxu3 %vm254_vm1, %v3802_v40  ;;  %v6368_v26 = vld [vmem:[#allocation20_spill] sm:$0xff]  ;;  %v2292_v40 = vpop.f32.mrf.mxu2  ;;  %v2899_v41 = vpop.f32.mrf.mxu0 }
 0x388   : > { %v2055_v60 = vadd.f32 %v6368_v26, %v1745_v12  ;;  %v6374_v26 = vld [vmem:[#allocation13_spill] sm:$0xff] }
 0x389   : > { %v3284_v49 = vadd.f32 %v5797_v25, %v3248_v23 }
 0x38a   : > { %v2577_v44 = vpop.f32.mrf.mxu3  ;;  %v2349_v7 = vadd.f32 %v5947_v8, %v2055_v60 }
 0x38b   : > { %v3316_v55 = vmax.f32 %v3284_v49, 0.0  ;;  %v2645_v34 = vadd.f32 %v2577_v44, %v2348_v48 }
 0x38d   : > { %3348 = vst.msk [vmem:[%s5808_s7 + $0x68] sm:$0xff] %vm254_vm1, %v3316_v55  ;;  %v2955_v58 = vadd.f32 %v5936_v45, %v2645_v34  ;;  %v3193_v45 = vpop.f32.mrf.mxu1 }
 0x38f   : > { %v3249_v54 = vadd.f32 %v5938_v30, %v2955_v58  ;;  %3838 = vmatmul.msk.f32.gmra.mxu3 %vm254_vm1, %v3803_v36  ;;  %v6370_v30 = vld [vmem:[#allocation22_spill] sm:$0xff]  ;;  %v2295_v31 = vpop.f32.mrf.mxu2  ;;  %v2902_v51 = vpop.f32.mrf.mxu0 }
 0x390   : > { %v2056_v29 = vadd.f32 %v6370_v30, %v1746_v38 }
 0x391   : > { %v3285_v0 = vadd.f32 %v5797_v25, %v3249_v54 }
 0x392   : > { %v2580_v17 = vpop.f32.mrf.mxu3  ;;  %v2350_v42 = vadd.f32 %v2286_v22, %v2056_v29 }
 0x393   : > { %v3317_v10 = vmax.f32 %v3285_v0, 0.0  ;;  %v2646_v57 = vadd.f32 %v2580_v17, %v2349_v7 }
 0x395   : > { %3349 = vst.msk [vmem:[%s5808_s7 + $0x70] sm:$0xff] %vm254_vm1, %v3317_v10  ;;  %v2956_v47 = vadd.f32 %v5953_v24, %v2646_v57  ;;  %v6372_v24 = vld [vmem:[#allocation18_spill] sm:$0xff]  ;;  %v3196_v43 = vpop.f32.mrf.mxu1 }
 0x396   : > { %v2057_v23 = vadd.f32 %v6372_v24, %v1747_v63 }
 0x397   : > { %v3250_v36 = vadd.f32 %v5959_v1, %v2956_v47  ;;  %v6373_v1 = vld [vmem:[#allocation80_spill] sm:$0xff]  ;;  %v2298_v44 = vpop.f32.mrf.mxu2  ;;  %v2905_v60 = vpop.f32.mrf.mxu0 }
 0x398   : > { %v1748_v49 = vadd.f32 %v6373_v1, %v5664_v32  ;;  %v2351_v48 = vadd.f32 %v2289_v9, %v2057_v23 }
 0x399   : > { %v3286_v8 = vadd.f32 %v5797_v25, %v3250_v36 }
 0x39a   : > { %v2583_v5 = vpop.f32.mrf.mxu3 }
 0x39b   : > { %v3318_v11 = vmax.f32 %v3286_v8, 0.0  ;;  %v2647_v13 = vadd.f32 %v2583_v5, %v2350_v42 }
 0x39d   : > { %3350 = vst.msk [vmem:[%s5808_s7 + $0x78] sm:$0xff] %vm254_vm1, %v3318_v11  ;;  %v2957_v56 = vadd.f32 %v2893_v52, %v2647_v13  ;;  %v2058_v52 = vadd.f32 %v6374_v26, %v1748_v49  ;;  %v3199_v21 = vpop.f32.mrf.mxu1  ;;  %v6378_v11 = vld [vmem:[#allocation36_spill] sm:$0xff] }
 0x39f   : > { %v3251_v12 = vadd.f32 %v3187_v19, %v2957_v56  ;;  %v6375_v19 = vld [vmem:[#allocation82_spill] sm:$0xff]  ;;  %v2352_v0 = vadd.f32 %v2292_v40, %v2058_v52  ;;  %v2301_v10 = vpop.f32.mrf.mxu2  ;;  %v2908_v29 = vpop.f32.mrf.mxu0 }
 0x3a0   : > { %v1749_v38 = vadd.f32 %v6375_v19, %v5675_v3 }
 0x3a1   : > { %v3287_v61 = vadd.f32 %v5797_v25, %v3251_v12 }
 0x3a2   : > { %v2586_v22 = vpop.f32.mrf.mxu3 }
 0x3a3   : > { %v3319_v55 = vmax.f32 %v3287_v61, 0.0  ;;  %v2648_v34 = vadd.f32 %v2586_v22, %v2351_v48 }
 0x3a5   : > { %3351 = vst.msk [vmem:[%s5808_s7 + $0x80] sm:$0xff] %vm254_vm1, %v3319_v55  ;;  %v2958_v58 = vadd.f32 %v2896_v33, %v2648_v34  ;;  %v6376_v33 = vld [vmem:[#allocation31_spill] sm:$0xff]  ;;  %v3202_v63 = vpop.f32.mrf.mxu1 }
 0x3a6   : > { %v2059_v47 = vadd.f32 %v6376_v33, %v1749_v38 }
 0x3a7   : > { %v3252_v54 = vadd.f32 %v3190_v35, %v2958_v58  ;;  %v6377_v35 = vld [vmem:[#allocation84_spill] sm:$0xff]  ;;  %v2304_v13 = vpop.f32.mrf.mxu2  ;;  %v2911_v12 = vpop.f32.mrf.mxu0 }
 0x3a8   : > { %v1750_v36 = vadd.f32 %v6377_v35, %v5685_v6  ;;  %v2353_v14 = vadd.f32 %v2295_v31, %v2059_v47  ;;  %v6384_v35 = vld [vmem:[#allocation32_spill] sm:$0xff] }
 0x3a9   : > { %v3288_v32 = vadd.f32 %v5797_v25, %v3252_v54 }
 0x3aa   : > { %v2589_v9 = vpop.f32.mrf.mxu3 }
 0x3ab   : > { %v3320_v7 = vmax.f32 %v3288_v32, 0.0  ;;  %v2649_v17 = vadd.f32 %v2589_v9, %v2352_v0  ;;  %v6382_v32 = vld [vmem:[#allocation39_spill] sm:$0xff] }
 0x3ad   : > { %3352 = vst.msk [vmem:[%s5808_s7 + $0x88] sm:$0xff] %vm254_vm1, %v3320_v7  ;;  %v2959_v57 = vadd.f32 %v2899_v41, %v2649_v17  ;;  %v2060_v41 = vadd.f32 %v6378_v11, %v1750_v36  ;;  %v3205_v61 = vpop.f32.mrf.mxu1 }
 0x3af   : > { %v3253_v30 = vadd.f32 %v3193_v45, %v2959_v57  ;;  %v6379_v45 = vld [vmem:[#allocation5_spill] sm:$0xff]  ;;  %v2354_v23 = vadd.f32 %v2298_v44, %v2060_v41  ;;  %v2307_v34 = vpop.f32.mrf.mxu2  ;;  %v2914_v19 = vpop.f32.mrf.mxu0 }
 0x3b0   : > { %v1751_v24 = vadd.f32 %v6379_v45, %v5696_v39 }
 0x3b1   : > { %v3289_v3 = vadd.f32 %v5797_v25, %v3253_v30 }
 0x3b2   : > { %v2592_v40 = vpop.f32.mrf.mxu3 }
 0x3b3   : > { %v3321_v8 = vmax.f32 %v3289_v3, 0.0  ;;  %v2650_v42 = vadd.f32 %v2592_v40, %v2353_v14 }
 0x3b5   : > { %3353 = vst.msk [vmem:[%s5808_s7 + $0x90] sm:$0xff] %vm254_vm1, %v3321_v8  ;;  %v2960_v5 = vadd.f32 %v2902_v51, %v2650_v42  ;;  %v6380_v51 = vld [vmem:[#allocation19_spill] sm:$0xff]  ;;  %v3208_v0 = vpop.f32.mrf.mxu1 }
 0x3b6   : > { %v2061_v22 = vadd.f32 %v6380_v51, %v1751_v24 }
 0x3b7   : > { %v3254_v56 = vadd.f32 %v3196_v43, %v2960_v5  ;;  %v6381_v43 = vld [vmem:[#allocation88_spill] sm:$0xff]  ;;  %v2310_v57 = vpop.f32.mrf.mxu2  ;;  %v2917_v36 = vpop.f32.mrf.mxu0 }
 0x3b8   : > { %v1752_v58 = vadd.f32 %v6381_v43, %v5704_v46  ;;  %v2355_v26 = vadd.f32 %v2301_v10, %v2061_v22 }
 0x3b9   : > { %v3290_v6 = vadd.f32 %v5797_v25, %v3254_v56 }
 0x3ba   : > { %v2595_v31 = vpop.f32.mrf.mxu3 }
 0x3bb   : > { %v3322_v1 = vmax.f32 %v3290_v6, 0.0  ;;  %v2651_v49 = vadd.f32 %v2595_v31, %v2354_v23  ;;  %v6386_v6 = vld [vmem:[#allocation93_spill] sm:$0xff] }
 0x3bc   : > { %v1755_v23 = vadd.f32 %v6386_v6, %v5736_v59  ;;  %v6392_v6 = vld [vmem:[#allocation42_spill] sm:$0xff] }
 0x3bd   : > { %3354 = vst.msk [vmem:[%s5808_s7 + $0x98] sm:$0xff] %vm254_vm1, %v3322_v1  ;;  %v2961_v48 = vadd.f32 %v2905_v60, %v2651_v49  ;;  %v2062_v60 = vadd.f32 %v6382_v32, %v1752_v58  ;;  %v3211_v14 = vpop.f32.mrf.mxu1  ;;  %v6388_v32 = vld [vmem:[#allocation16_spill] sm:$0xff] }
 0x3be   : > { %v2065_v51 = vadd.f32 %v5613_v2, %v1755_v23 }
 0x3bf   : > { %v3255_v55 = vadd.f32 %v3199_v21, %v2961_v48  ;;  %v6383_v21 = vld [vmem:[#allocation89_spill] sm:$0xff]  ;;  %v2356_v17 = vadd.f32 %v2304_v13, %v2062_v60  ;;  %v2313_v41 = vpop.f32.mrf.mxu2  ;;  %v2920_v24 = vpop.f32.mrf.mxu0  ;;  %v1757_v60 = vadd.f32 %v6388_v32, %v5755_v27  ;;  %v6396_v32 = vld [vmem:[#allocation34_spill] sm:$0xff] }
 0x3c0   : > { %v1753_v7 = vadd.f32 %v6383_v21, %v5715_v28  ;;  %v2359_v43 = vadd.f32 %v2313_v41, %v2065_v51 }
 0x3c1   : > { %v3291_v39 = vadd.f32 %v5797_v25, %v3255_v55  ;;  %v6387_v55 = vld [vmem:[#allocation8_spill] sm:$0xff] }
 0x3c2   : > { %v2598_v44 = vpop.f32.mrf.mxu3 }
 0x3c3   : > { %v3323_v52 = vmax.f32 %v3291_v39, 0.0  ;;  %v2652_v54 = vadd.f32 %v2598_v44, %v2355_v26 }
 0x3c5   : > { %3355 = vst.msk [vmem:[%s5808_s7 + $0xa0] sm:$0xff] %vm254_vm1, %v3323_v52  ;;  %v2962_v38 = vadd.f32 %v2908_v29, %v2652_v54  ;;  %v2063_v29 = vadd.f32 %v6384_v35, %v1753_v7  ;;  %v3214_v31 = vpop.f32.mrf.mxu1 }
 0x3c7   : > { %v3256_v9 = vadd.f32 %v3202_v63, %v2962_v38  ;;  %v6385_v63 = vld [vmem:[#allocation7_spill] sm:$0xff]  ;;  %v2357_v8 = vadd.f32 %v2307_v34, %v2063_v29  ;;  %v2316_v22 = vpop.f32.mrf.mxu2  ;;  %v1756_v34 = vadd.f32 %v6387_v55, %v5746_v50  ;;  %v2923_v58 = vpop.f32.mrf.mxu0  ;;  %v6394_v55 = vld [vmem:[#allocation45_spill] sm:$0xff] }
 0x3c8   : > { %v1754_v40 = vadd.f32 %v6385_v63, %v5725_v18  ;;  %v6390_v63 = vld [vmem:[#allocation41_spill] sm:$0xff] }
 0x3c9   : > { %v3292_v46 = vadd.f32 %v5797_v25, %v3256_v9 }
 0x3ca   : > { %v2601_v10 = vpop.f32.mrf.mxu3  ;;  %v2064_v56 = vadd.f32 %v5593_v15, %v1754_v40 }
 0x3cb   : > { %v3324_v33 = vmax.f32 %v3292_v46, 0.0  ;;  %v2653_v47 = vadd.f32 %v2601_v10, %v2356_v17 }
 0x3cd   : > { %3356 = vst.msk [vmem:[%s5808_s7 + $0xa8] sm:$0xff] %vm254_vm1, %v3324_v33  ;;  %v2963_v30 = vadd.f32 %v2911_v12, %v2653_v47  ;;  %v2358_v12 = vadd.f32 %v2310_v57, %v2064_v56  ;;  %v3217_v52 = vpop.f32.mrf.mxu1  ;;  %v2067_v57 = vadd.f32 %v5642_v53, %v1757_v60  ;;  %v6389_v33 = vld [vmem:[#allocation15_spill] sm:$0xff] }
 0x3ce   : > { %v1758_v47 = vadd.f32 %v6389_v33, %v5765_v16 }
 0x3cf   : > { %v3257_v3 = vadd.f32 %v3205_v61, %v2963_v30  ;;  %v2319_v38 = vpop.f32.mrf.mxu2  ;;  %v2926_v46 = vpop.f32.mrf.mxu0 }
 0x3d0   : > { %v2361_v30 = vadd.f32 %v2319_v38, %v2067_v57  ;;  %v2068_v40 = vadd.f32 %v6390_v63, %v1758_v47 }
 0x3d1   : > { %v3293_v28 = vadd.f32 %v5797_v25, %v3257_v3 }
 0x3d2   : > { %v2604_v42 = vpop.f32.mrf.mxu3 }
 0x3d3   : > { %v3325_v5 = vmax.f32 %v3293_v28, 0.0  ;;  %v2654_v11 = vadd.f32 %v2604_v42, %v2357_v8  ;;  %v6391_v42 = vld [vmem:[#allocation27_spill] sm:$0xff] }
 0x3d5   : > { %3357 = vst.msk [vmem:[%s5808_s7 + $0xb0] sm:$0xff] %vm254_vm1, %v3325_v5  ;;  %v2964_v13 = vadd.f32 %v2914_v19, %v2654_v11  ;;  %v2066_v19 = vadd.f32 %v5631_v37, %v1756_v34  ;;  %v3220_v10 = vpop.f32.mrf.mxu1  ;;  %v1759_v5 = vadd.f32 %v6391_v42, %v5774_v62 }
 0x3d7   : > { %v3258_v45 = vadd.f32 %v3208_v0, %v2964_v13  ;;  %v2360_v0 = vadd.f32 %v2316_v22, %v2066_v19  ;;  %v2322_v35 = vpop.f32.mrf.mxu2  ;;  %v2929_v28 = vpop.f32.mrf.mxu0  ;;  %v2069_v23 = vadd.f32 %v6392_v6, %v1759_v5 }
 0x3d8   : > { %v2362_v11 = vadd.f32 %v2322_v35, %v2068_v40 }
 0x3d9   : > { %v3294_v18 = vadd.f32 %v5797_v25, %v3258_v45 }
 0x3da   : > { %v2607_v1 = vpop.f32.mrf.mxu3 }
 0x3db   : > { %v3326_v49 = vmax.f32 %v3294_v18, 0.0  ;;  %v2655_v61 = vadd.f32 %v2607_v1, %v2358_v12 }
 0x3dd   : > { %3358 = vst.msk [vmem:[%s5808_s7 + $0xb8] sm:$0xff] %vm254_vm1, %v3326_v49  ;;  %v2965_v48 = vadd.f32 %v2917_v36, %v2655_v61  ;;  %v3223_v8 = vpop.f32.mrf.mxu1 }
 0x3df   : > { %v3259_v15 = vadd.f32 %v3211_v14, %v2965_v48  ;;  %v2325_v45 = vpop.f32.mrf.mxu2  ;;  %v2932_v12 = vpop.f32.mrf.mxu0 }
 0x3e0   : > { %v2363_v49 = vadd.f32 %v2325_v45, %v2069_v23 }
 0x3e1   : > { %v3295_v59 = vadd.f32 %v5797_v25, %v3259_v15 }
 0x3e2   : > { %v2610_v39 = vpop.f32.mrf.mxu3 }
 0x3e3   : > { %v3327_v26 = vmax.f32 %v3295_v59, 0.0  ;;  %v2656_v44 = vadd.f32 %v2610_v39, %v2359_v43  ;;  %v6395_v39 = vld [vmem:[#allocation30_spill] sm:$0xff] }
 0x3e5   : > { %3359 = vst.msk [vmem:[%s5808_s7 + $0xc0] sm:$0xff] %vm254_vm1, %v3327_v26  ;;  %v2966_v54 = vadd.f32 %v2920_v24, %v2656_v44  ;;  %v3226_v61 = vpop.f32.mrf.mxu1  ;;  %v1761_v26 = vadd.f32 %v6395_v39, %v5784_v4 }
 0x3e7   : > { %v3260_v2 = vadd.f32 %v3214_v31, %v2966_v54  ;;  %v6393_v31 = vld [vmem:[#allocation28_spill] sm:$0xff]  ;;  %v2328_v59 = vpop.f32.mrf.mxu2  ;;  %v2071_v60 = vadd.f32 %v6396_v32, %v1761_v26 }
 0x3e8   : > { %v1760_v1 = vadd.f32 %v6393_v31, %v5779_v20 }
 0x3e9   : > { %v3296_v50 = vadd.f32 %v5797_v25, %v3260_v2 }
 0x3ea   : > { %v2613_v9 = vpop.f32.mrf.mxu3  ;;  %v2070_v34 = vadd.f32 %v6394_v55, %v1760_v1 }
 0x3eb   : > { %v3328_v21 = vmax.f32 %v3296_v50, 0.0  ;;  %v2657_v7 = vadd.f32 %v2613_v9, %v2360_v0 }
 0x3ec   : > { %v2364_v44 = vadd.f32 %v2328_v59, %v2070_v34 }
 0x3ed   : > { %3360 = vst.msk [vmem:[%s5808_s7 + $0xc8] sm:$0xff] %vm254_vm1, %v3328_v21  ;;  %v2967_v17 = vadd.f32 %v2923_v58, %v2657_v7  ;;  %v2935_v58 = vpop.f32.mrf.mxu0  ;;  %v3229_v54 = vpop.f32.mrf.mxu1 }
 0x3ef   : > { %v3261_v37 = vadd.f32 %v3217_v52, %v2967_v17  ;;  %v2331_v0 = vpop.f32.mrf.mxu2 }
 0x3f0   : > { %v2365_v21 = vadd.f32 %v2331_v0, %v2071_v60 }
 0x3f1   : > { %v3297_v27 = vadd.f32 %v5797_v25, %v3261_v37 }
 0x3f2   : > { %v2616_v29 = vpop.f32.mrf.mxu3 }
 0x3f3   : > { %v3329_v36 = vmax.f32 %v3297_v27, 0.0  ;;  %v2658_v3 = vadd.f32 %v2616_v29, %v2361_v30 }
 0x3f5   : > { %3361 = vst.msk [vmem:[%s5808_s7 + $0xd0] sm:$0xff] %vm254_vm1, %v3329_v36  ;;  %v2968_v14 = vadd.f32 %v2926_v46, %v2658_v3  ;;  %v2938_v7 = vpop.f32.mrf.mxu0  ;;  %v3232_v57 = vpop.f32.mrf.mxu1 }
 0x3f7   : > { %v3262_v53 = vadd.f32 %v3220_v10, %v2968_v14 }
 0x3f9   : > { %v3298_v16 = vadd.f32 %v5797_v25, %v3262_v53 }
 0x3fa   : > { %v2619_v41 = vpop.f32.mrf.mxu3 }
 0x3fb   : > { %v3330_v13 = vmax.f32 %v3298_v16, 0.0  ;;  %v2659_v56 = vadd.f32 %v2619_v41, %v2362_v11 }
 0x3fd   : > { %3362 = vst.msk [vmem:[%s5808_s7 + $0xd8] sm:$0xff] %vm254_vm1, %v3330_v13  ;;  %v2969_v24 = vadd.f32 %v2929_v28, %v2659_v56 }
 0x3ff   : > { %v3263_v18 = vadd.f32 %v3223_v8, %v2969_v24 }
 0x401   : > { %v3299_v62 = vadd.f32 %v5797_v25, %v3263_v18 }
 0x402   : > { %v2622_v48 = vpop.f32.mrf.mxu3 }
 0x403   : > { %v3331_v51 = vmax.f32 %v3299_v62, 0.0  ;;  %v2660_v22 = vadd.f32 %v2622_v48, %v2363_v49 }
 0x405   : > { %3363 = vst.msk [vmem:[%s5808_s7 + $0xe0] sm:$0xff] %vm254_vm1, %v3331_v51  ;;  %v2970_v15 = vadd.f32 %v2932_v12, %v2660_v22 }
 0x407   : > { %v3264_v43 = vadd.f32 %v3226_v61, %v2970_v15 }
 0x409   : > { %v3300_v20 = vadd.f32 %v5797_v25, %v3264_v43 }
 0x40a   : > { %v2625_v52 = vpop.f32.mrf.mxu3 }
 0x40b   : > { %v3332_v19 = vmax.f32 %v3300_v20, 0.0  ;;  %v2661_v2 = vadd.f32 %v2625_v52, %v2364_v44 }
 0x40d   : > { %3364 = vst.msk [vmem:[%s5808_s7 + $0xe8] sm:$0xff] %vm254_vm1, %v3332_v19  ;;  %v2971_v38 = vadd.f32 %v2935_v58, %v2661_v2 }
 0x40f   : > { %v3265_v50 = vadd.f32 %v3229_v54, %v2971_v38 }
 0x411   : > { %v3301_v9 = vadd.f32 %v5797_v25, %v3265_v50 }
 0x412   : > { %v2628_v4 = vpop.f32.mrf.mxu3 }
 0x413   : > { %v3333_v46 = vmax.f32 %v3301_v9, 0.0  ;;  %v2662_v17 = vadd.f32 %v2628_v4, %v2365_v21 }
 0x415   : > { %3365 = vst.msk [vmem:[%s5808_s7 + $0xf0] sm:$0xff] %vm254_vm1, %v3333_v46  ;;  %v2972_v10 = vadd.f32 %v2938_v7, %v2662_v17 }
 0x417   : > { %v3266_v37 = vadd.f32 %v3232_v57, %v2972_v10 }
 0x419   : > { %v3302_v33 = vadd.f32 %v5797_v25, %v3266_v37 }
 0x41b   : > { %v3334_v47 = vmax.f32 %v3302_v33, 0.0 }
 0x41d   : > { %3366 = vst.msk [vmem:[%s5808_s7 + $0xf8] sm:$0xff] %vm254_vm1, %v3334_v47 }
 0x41e PF: > { %s15_s20 = sadd.s32 1, %s3965_s20   ;;  %s6397_s18 = smov %s3961_s19 }
 0x41f   : > { %p12_p5 = scmp.ge.s32.totalorder %s15_s20, 4   ;;  %s6398_s19 = smov %s6400_s21 }
 0x421   :  { %14 = sbr.rel (!%p12_p5) target bundleno = 2 (0x2), region = 86 }

</bundles_post_ra>
